<compile_context>
chip_gen: v5e
topology: v5e:2x2
jax: 0.10.0
libtpu: 0.0.40
codegen_flags: <defaults>
</compile_context>

<pallas_src>
import functools
import math

import jax
import jax.numpy as jnp
from jax.experimental import pallas as pl
from jax.experimental.pallas import tpu as pltpu


# ----------------------------------------------------------------------------
# In-kernel helpers
# ----------------------------------------------------------------------------
def _rmsnorm(x, w, eps=1e-5):
    # x: (S, D) f32, w: (1, D) f32
    means = jnp.mean(x * x, axis=-1, keepdims=True)
    return x * jax.lax.rsqrt(means + eps) * w


# ----------------------------------------------------------------------------
# Pallas kernels
# ----------------------------------------------------------------------------
def block_kernel(num_heads, head_dim,
                 x_ref, n1w_ref, qkvw_ref, projw_ref, n2w_ref,
                 fc12w_ref, fc3w_ref, cos_ref, sin_ref, mask_ref, o_ref):
    """One transformer block (pre-norm attention + pre-norm SwiGLU FFN)."""
    x = x_ref[0]                                   # (S, D) f32
    S, D = x.shape
    half = head_dim // 2

    # --- attention sub-block -------------------------------------------------
    h = _rmsnorm(x, n1w_ref[...])
    qkv = jnp.dot(h.astype(jnp.bfloat16), qkvw_ref[...],
                  preferred_element_type=jnp.float32)        # (S, 3D) f32

    def to_heads(t):                               # (S, D) -> (nh, S, hd)
        # TODO(synk): eliminate this materialized transpose (make heads a
        #             grid/block axis) for production shapes.
        return jnp.transpose(t.reshape(S, num_heads, head_dim), (1, 0, 2))

    cos = cos_ref[...]                             # (S, hd) bf16 (promoted below)
    sin = sin_ref[...]

    def rope(t):                                   # (nh, S, hd) f32
        x1 = t[..., :half]
        x2 = t[..., half:]
        rotated = jnp.concatenate([-x2, x1], axis=-1)
        return t * cos + rotated * sin             # bf16 tables promote to f32

    # 1/sqrt(head_dim) is pre-folded into the Q weight columns.
    q3 = rope(to_heads(qkv[:, :D])).astype(jnp.bfloat16)
    k3 = rope(to_heads(qkv[:, D:2 * D])).astype(jnp.bfloat16)
    v3 = to_heads(qkv[:, 2 * D:]).astype(jnp.bfloat16)

    # TODO(synk): replace full (nh,S,S) scores with flash-style KV tiling +
    #             online softmax for S >= 2k.
    scores = jnp.einsum('hqd,hkd->hqk', q3, k3,
                        preferred_element_type=jnp.float32)  # (nh, S, S) f32
    scores = scores + mask_ref[...]                          # additive causal bias

    m = jnp.max(scores, axis=-1, keepdims=True)
    p = jnp.exp(scores - m)
    l = jnp.sum(p, axis=-1, keepdims=True)
    ctx = jnp.einsum('hqk,hkd->hqd', p.astype(jnp.bfloat16), v3,
                     preferred_element_type=jnp.float32)     # (nh, S, hd) f32
    ctx = ctx * (1.0 / l)
    ctx = jnp.transpose(ctx, (1, 0, 2)).reshape(S, D)        # (S, D) f32

    x = x + jnp.dot(ctx.astype(jnp.bfloat16), projw_ref[...],
                    preferred_element_type=jnp.float32)

    # --- feed-forward sub-block (fused fc1+fc2) ------------------------------
    Hdim = fc12w_ref.shape[1] // 2
    h2 = _rmsnorm(x, n2w_ref[...]).astype(jnp.bfloat16)
    g12 = jnp.dot(h2, fc12w_ref[...], preferred_element_type=jnp.float32)  # (S, 2H)
    a = g12[:, :Hdim]
    b = g12[:, Hdim:]
    g = (a * jax.nn.sigmoid(a)) * b                                        # SwiGLU, f32
    x = x + jnp.dot(g.astype(jnp.bfloat16), fc3w_ref[...],
                    preferred_element_type=jnp.float32)
    o_ref[0] = x


def head_kernel(x_ref, nw_ref, w_ref, o_ref, h_ref):
    """Final RMSNorm (computed once per batch) + one vocab-tile of the LM head."""
    @pl.when(pl.program_id(1) == 0)
    def _():
        # Normalize the full (S, D) slab only on the first vocab tile; cache
        # it in bf16 VMEM scratch and reuse for all remaining vocab tiles.
        h_ref[...] = _rmsnorm(x_ref[0], nw_ref[...]).astype(jnp.bfloat16)

    o_ref[0] = jnp.dot(h_ref[...], w_ref[...],
                       preferred_element_type=jnp.float32)


# ----------------------------------------------------------------------------
# Wrappers
# ----------------------------------------------------------------------------
def transformer_block(x, p, cos_t, sin_t, mask_bias, num_heads, head_dim):
    B, S, D = x.shape
    H2 = p["fc12_wt"].shape[1]           # 2 * hidden_dim
    hd = head_dim
    kernel = functools.partial(block_kernel, num_heads, head_dim)
    # TODO(synk): K/N-tiled streamed weights + a second parallel grid axis
    #             (S-tiles) are needed for production shapes / v7x dual-TC.
    return pl.pallas_call(
        kernel,
        out_shape=jax.ShapeDtypeStruct((B, S, D), jnp.float32),
        grid=(B,),
        in_specs=[
            pl.BlockSpec((1, S, D), lambda b: (b, 0, 0)),      # x (f32)
            pl.BlockSpec((1, D), lambda b: (0, 0)),            # norm1 w (f32)
            pl.BlockSpec((D, 3 * D), lambda b: (0, 0)),        # qkv W (bf16, Q pre-scaled)
            pl.BlockSpec((D, D), lambda b: (0, 0)),            # proj W (bf16)
            pl.BlockSpec((1, D), lambda b: (0, 0)),            # norm2 w (f32)
            pl.BlockSpec((D, H2), lambda b: (0, 0)),           # fused fc1|fc2 W (bf16)
            pl.BlockSpec((H2 // 2, D), lambda b: (0, 0)),      # fc3 W (bf16)
            pl.BlockSpec((S, hd), lambda b: (0, 0)),           # cos (bf16)
            pl.BlockSpec((S, hd), lambda b: (0, 0)),           # sin (bf16)
            pl.BlockSpec((S, S), lambda b: (0, 0)),            # causal bias (f32)
        ],
        out_specs=pl.BlockSpec((1, S, D), lambda b: (b, 0, 0)),
        compiler_params=pltpu.CompilerParams(
            dimension_semantics=("parallel",),
            vmem_limit_bytes=32 * 1024 * 1024),
    )(x, p["n1w"], p["qkv_wt"], p["proj_wt"], p["n2w"],
      p["fc12_wt"], p["fc3_wt"], cos_t, sin_t, mask_bias)


def lm_head(x, norm_w, out_wt, tn=256):
    B, S, D = x.shape
    V = out_wt.shape[1]
    assert V % tn == 0, "vocab must be a multiple of the vocab tile"
    return pl.pallas_call(
        head_kernel,
        out_shape=jax.ShapeDtypeStruct((B, S, V), jnp.float32),
        grid=(B, V // tn),
        in_specs=[
            pl.BlockSpec((1, S, D), lambda b, j: (b, 0, 0)),   # x (f32)
            pl.BlockSpec((1, D), lambda b, j: (0, 0)),         # final norm w (f32)
            pl.BlockSpec((D, tn), lambda b, j: (0, j)),        # out W tile (bf16)
        ],
        out_specs=pl.BlockSpec((1, S, tn), lambda b, j: (b, 0, j)),
        scratch_shapes=[pltpu.VMEM((S, D), jnp.bfloat16)],     # cached normed x
        compiler_params=pltpu.CompilerParams(
            dimension_semantics=("parallel", "arbitrary"),
            vmem_limit_bytes=32 * 1024 * 1024),
    )(x, norm_w, out_wt)


def precompute_rope_params(head_dim, theta_base=10000, context_length=4096):
    inv_freq = 1.0 / (theta_base ** (jnp.arange(head_dim // 2, dtype=jnp.float32)
                                     / (head_dim // 2)))
    positions = jnp.arange(context_length, dtype=jnp.float32)
    angles = positions[:, None] * inv_freq[None, :]
    angles = jnp.concatenate([angles, angles], axis=1)
    return jnp.cos(angles), jnp.sin(angles)


def llama2_forward(tok_ids, params, num_heads, head_dim, vocab_tile=256):
    # Embedding gather stays in plain JAX (not a matmul hot path).
    # TODO(synk): embedding lookup (gather) left outside Pallas.
    x = jnp.take(params["tok_emb"], tok_ids, axis=0)            # (B, S, D) f32
    S = tok_ids.shape[1]
    cos_t = params["cos"][:S].astype(jnp.bfloat16)              # (S, hd)
    sin_t = params["sin"][:S].astype(jnp.bfloat16)
    mask_bias = jnp.where(jnp.tril(jnp.ones((S, S), dtype=bool)),
                          0.0, -1e30).astype(jnp.float32)
    # TODO(synk): cross-call weight-prefetch DMA futures to hide per-layer
    #             HBM weight loads on large models.
    for blk in params["blocks"]:
        x = transformer_block(x, blk, cos_t, sin_t, mask_bias,
                              num_heads, head_dim)
    return lm_head(x, params["final_nw"], params["out_wt"], vocab_tile)


# ----------------------------------------------------------------------------
# Pure-JAX reference (same bf16 matmul / f32-accumulate recipe as the kernels;
# uses the same prepared weights — the Q pre-scale fold and fc1|fc2 fusion are
# mathematically exact rewrites of the original module).
# ----------------------------------------------------------------------------
def _ref_rmsnorm(x, w, eps=1e-5):
    means = jnp.mean(x * x, axis=-1, keepdims=True)
    return x * jax.lax.rsqrt(means + eps) * w


def _ref_rope(x, cos, sin):
    hd = x.shape[-1]
    x1, x2 = x[..., :hd // 2], x[..., hd // 2:]
    rotated = jnp.concatenate([-x2, x1], axis=-1)
    return x * cos[None, None] + rotated * sin[None, None]


def _ref_block(x, p, cos, sin, nh, hd):
    B, S, D = x.shape
    shortcut = x
    h = _ref_rmsnorm(x, p["n1w"][0])
    qkv = jnp.einsum("bsd,df->bsf", h.astype(jnp.bfloat16), p["qkv_wt"],
                     preferred_element_type=jnp.float32)
    qkv = qkv.reshape(B, S, 3, nh, hd).transpose(2, 0, 3, 1, 4)
    q, k, v = qkv[0], qkv[1], qkv[2]
    q = _ref_rope(q, cos, sin)          # 1/sqrt(hd) already folded into Wq
    k = _ref_rope(k, cos, sin)
    scores = jnp.einsum("bhqd,bhkd->bhqk", q.astype(jnp.bfloat16),
                        k.astype(jnp.bfloat16),
                        preferred_element_type=jnp.float32)
    mask = jnp.tril(jnp.ones((S, S), dtype=bool))
    scores = jnp.where(mask, scores, -1e30)
    attn = jax.nn.softmax(scores, axis=-1)
    ctx = jnp.einsum("bhqk,bhkd->bhqd", attn.astype(jnp.bfloat16),
                     v.astype(jnp.bfloat16),
                     preferred_element_type=jnp.float32)
    ctx = ctx.transpose(0, 2, 1, 3).reshape(B, S, D)
    x = shortcut + jnp.einsum("bsd,de->bse", ctx.astype(jnp.bfloat16),
                              p["proj_wt"], preferred_element_type=jnp.float32)
    shortcut = x
    h = _ref_rmsnorm(x, p["n2w"][0]).astype(jnp.bfloat16)
    Hdim = p["fc12_wt"].shape[1] // 2
    g12 = jnp.einsum("bsd,dh->bsh", h, p["fc12_wt"],
                     preferred_element_type=jnp.float32)
    a, b = g12[..., :Hdim], g12[..., Hdim:]
    g = (a * jax.nn.sigmoid(a)) * b
    return shortcut + jnp.einsum("bsh,hd->bsd", g.astype(jnp.bfloat16),
                                 p["fc3_wt"], preferred_element_type=jnp.float32)


def llama2_reference(tok_ids, params, num_heads, head_dim):
    x = jnp.take(params["tok_emb"], tok_ids, axis=0)
    S = tok_ids.shape[1]
    cos = params["cos"][:S].astype(jnp.bfloat16)
    sin = params["sin"][:S].astype(jnp.bfloat16)
    for blk in params["blocks"]:
        x = _ref_block(x, blk, cos, sin, num_heads, head_dim)
    x = _ref_rmsnorm(x, params["final_nw"][0])
    return jnp.einsum("bsd,dv->bsv", x.astype(jnp.bfloat16), params["out_wt"],
                      preferred_element_type=jnp.float32)


# ----------------------------------------------------------------------------
# Parameter construction (deterministic, synthetic)
# ----------------------------------------------------------------------------
def init_params(key, vocab, D, H, n_layers, n_heads, context_length):
    head_dim = D // n_heads
    qscale = 1.0 / math.sqrt(head_dim)
    keys = jax.random.split(key, 2 + 5 * n_layers)
    ki = iter(keys)
    scale = 0.05
    bf16 = jnp.bfloat16
    params = {
        "tok_emb": jax.random.normal(next(ki), (vocab, D), jnp.float32),
        "final_nw": jnp.ones((1, D), jnp.float32),
        "out_wt": (jax.random.normal(next(ki), (D, vocab), jnp.float32)
                   * scale).astype(bf16),
    }
    cos, sin = precompute_rope_params(head_dim, context_length=context_length)
    params["cos"], params["sin"] = cos, sin
    blocks = []
    for _ in range(n_layers):
        qkv = jax.random.normal(next(ki), (D, 3 * D), jnp.float32) * scale
        # Fold the attention 1/sqrt(head_dim) into the Q columns (exact rewrite:
        # RoPE is linear, so rope(x*s) == rope(x)*s).
        qkv = qkv.at[:, :D].multiply(qscale)
        fc1 = jax.random.normal(next(ki), (D, H), jnp.float32) * scale
        fc2 = jax.random.normal(next(ki), (D, H), jnp.float32) * scale
        fc3 = jax.random.normal(next(ki), (H, D), jnp.float32) * scale
        proj = jax.random.normal(next(ki), (D, D), jnp.float32) * scale
        blocks.append({
            "n1w": jnp.ones((1, D), jnp.float32),
            "n2w": jnp.ones((1, D), jnp.float32),
            "qkv_wt": qkv.astype(bf16),
            "proj_wt": proj.astype(bf16),
            "fc12_wt": jnp.concatenate([fc1, fc2], axis=1).astype(bf16),
            "fc3_wt": fc3.astype(bf16),
        })
    params["blocks"] = blocks
    return params, head_dim


# ----------------------------------------------------------------------------
if __name__ == "__main__":
    # Small Llama2Settings-like config: emb_dim=256, n_heads=4 (head_dim=64),
    # hidden_dim=512, n_layers=2, context_length=32, vocab=512; batch=2, seq=16.
    B, S = 2, 16
    D, H = 256, 512
    n_heads, n_layers = 4, 2
    context_length = 32
    vocab = 512

    key = jax.random.PRNGKey(0)
    k_param, k_tok = jax.random.split(key)
    params, head_dim = init_params(k_param, vocab, D, H, n_layers, n_heads,
                                   context_length)
    tok_ids = jax.random.randint(k_tok, (B, S), 0, vocab, dtype=jnp.int32)

    logits = llama2_forward(tok_ids, params, n_heads, head_dim, vocab_tile=256)
    logits = jax.block_until_ready(logits)

    ref = jax.block_until_ready(
        llama2_reference(tok_ids, params, n_heads, head_dim))
    assert logits.shape == (B, S, vocab)
    assert jnp.allclose(logits, ref, atol=2e-2, rtol=2e-2), (
        float(jnp.max(jnp.abs(logits - ref))))
    print("KERNEL_OK")
</pallas_src>

<mosaic_0001>
module attributes {stable_mosaic.version = 11 : i64} {
  func.func @block_kernel(%arg0: i32, %arg1: memref<1x16x256xf32, #tpu.memory_space<vmem>>, %arg2: memref<1x256xf32, #tpu.memory_space<vmem>>, %arg3: memref<256x768xbf16, #tpu.memory_space<vmem>>, %arg4: memref<256x256xbf16, #tpu.memory_space<vmem>>, %arg5: memref<1x256xf32, #tpu.memory_space<vmem>>, %arg6: memref<256x1024xbf16, #tpu.memory_space<vmem>>, %arg7: memref<512x256xbf16, #tpu.memory_space<vmem>>, %arg8: memref<16x64xbf16, #tpu.memory_space<vmem>>, %arg9: memref<16x64xbf16, #tpu.memory_space<vmem>>, %arg10: memref<16x16xf32, #tpu.memory_space<vmem>>, %arg11: memref<1x16x256xf32, #tpu.memory_space<vmem>>) attributes {dimension_semantics = [#tpu.dimension_semantics<parallel>], iteration_bounds = array<i64: 2>, scalar_prefetch = 0 : i64, scratch_operands = 0 : i64, tpu.core_type = #tpu.core_type<tc>, window_params = [{transform_indices = @transform_0, window_bounds = array<i64: 1, 16, 256>}, {pipeline_mode = #tpu.pipeline_mode<synchronous>, transform_indices = @transform_1, window_bounds = array<i64: 1, 256>}, {pipeline_mode = #tpu.pipeline_mode<synchronous>, transform_indices = @transform_2, window_bounds = array<i64: 256, 768>}, {pipeline_mode = #tpu.pipeline_mode<synchronous>, transform_indices = @transform_3, window_bounds = array<i64: 256, 256>}, {pipeline_mode = #tpu.pipeline_mode<synchronous>, transform_indices = @transform_4, window_bounds = array<i64: 1, 256>}, {pipeline_mode = #tpu.pipeline_mode<synchronous>, transform_indices = @transform_5, window_bounds = array<i64: 256, 1024>}, {pipeline_mode = #tpu.pipeline_mode<synchronous>, transform_indices = @transform_6, window_bounds = array<i64: 512, 256>}, {pipeline_mode = #tpu.pipeline_mode<synchronous>, transform_indices = @transform_7, window_bounds = array<i64: 16, 64>}, {pipeline_mode = #tpu.pipeline_mode<synchronous>, transform_indices = @transform_8, window_bounds = array<i64: 16, 64>}, {pipeline_mode = #tpu.pipeline_mode<synchronous>, transform_indices = @transform_9, window_bounds = array<i64: 16, 16>}, {transform_indices = @transform_10, window_bounds = array<i64: 1, 16, 256>}]} {
    %c0 = arith.constant 0 : index
    %c0_0 = arith.constant 0 : index
    %c0_1 = arith.constant 0 : index
    %0 = vector.load %arg1[%c0, %c0_0, %c0_1] : memref<1x16x256xf32, #tpu.memory_space<vmem>>, vector<1x16x256xf32>
    %1 = vector.shape_cast %0 : vector<1x16x256xf32> to vector<16x256xf32>
    %c0_2 = arith.constant 0 : index
    %c0_3 = arith.constant 0 : index
    %2 = vector.load %arg2[%c0_2, %c0_3] : memref<1x256xf32, #tpu.memory_space<vmem>>, vector<1x256xf32>
    %3 = arith.mulf %1, %1 : vector<16x256xf32>
    %cst = arith.constant dense<0.000000e+00> : vector<16xf32>
    %4 = vector.multi_reduction <add>, %3, %cst [1] : vector<16x256xf32> to vector<16xf32>
    %5 = vector.shape_cast %4 : vector<16xf32> to vector<16x1xf32>
    %cst_4 = arith.constant 2.560000e+02 : f32
    %6 = vector.broadcast %cst_4 : f32 to vector<16x1xf32>
    %7 = arith.divf %5, %6 : vector<16x1xf32>
    %cst_5 = arith.constant 9.99999974E-6 : f32
    %8 = vector.broadcast %cst_5 : f32 to vector<16x1xf32>
    %9 = arith.addf %7, %8 : vector<16x1xf32>
    %10 = math.rsqrt %9 : vector<16x1xf32>
    %11 = vector.broadcast %10 : vector<16x1xf32> to vector<16x256xf32>
    %12 = arith.mulf %1, %11 : vector<16x256xf32>
    %13 = vector.broadcast %2 : vector<1x256xf32> to vector<16x256xf32>
    %14 = arith.mulf %12, %13 : vector<16x256xf32>
    %15 = arith.truncf %14 : vector<16x256xf32> to vector<16x256xbf16>
    %c0_6 = arith.constant 0 : index
    %c0_7 = arith.constant 0 : index
    %16 = vector.load %arg3[%c0_6, %c0_7] : memref<256x768xbf16, #tpu.memory_space<vmem>>, vector<256x768xbf16>
    %cst_8 = arith.constant dense<0.000000e+00> : vector<16x768xf32>
    %17 = tpu.matmul %15, %16, %cst_8 {dimension_numbers = #tpu.dot_dimension_numbers<[1], [0], [0], [1], [0, 0, 1, 1], [], []>} : vector<16x256xbf16>, vector<256x768xbf16>, vector<16x768xf32> -> vector<16x768xf32>
    %c0_9 = arith.constant 0 : index
    %c0_10 = arith.constant 0 : index
    %18 = vector.load %arg8[%c0_9, %c0_10] : memref<16x64xbf16, #tpu.memory_space<vmem>>, vector<16x64xbf16>
    %c0_11 = arith.constant 0 : index
    %c0_12 = arith.constant 0 : index
    %19 = vector.load %arg9[%c0_11, %c0_12] : memref<16x64xbf16, #tpu.memory_space<vmem>>, vector<16x64xbf16>
    %20 = vector.extract_strided_slice %17 {offsets = [0, 0], sizes = [16, 256], strides = [1, 1]} : vector<16x768xf32> to vector<16x256xf32>
    %21 = vector.shape_cast %20 : vector<16x256xf32> to vector<16x4x64xf32>
    %22 = tpu.transpose %21, [1, 0, 2] : vector<16x4x64xf32> -> vector<4x16x64xf32>
    %23 = vector.extract_strided_slice %22 {offsets = [0, 0, 0], sizes = [4, 16, 32], strides = [1, 1, 1]} : vector<4x16x64xf32> to vector<4x16x32xf32>
    %24 = vector.extract_strided_slice %22 {offsets = [0, 0, 32], sizes = [4, 16, 32], strides = [1, 1, 1]} : vector<4x16x64xf32> to vector<4x16x32xf32>
    %cst_13 = arith.constant 0.000000e+00 : f32
    %25 = vector.broadcast %cst_13 : f32 to vector<4x16x32xf32>
    %26 = arith.subf %25, %24 : vector<4x16x32xf32>
    %27 = tpu.concatenate %26, %23 in 2 : vector<4x16x32xf32>, vector<4x16x32xf32> -> vector<4x16x64xf32>
    %28 = arith.extf %18 : vector<16x64xbf16> to vector<16x64xf32>
    %29 = vector.shape_cast %28 : vector<16x64xf32> to vector<1x16x64xf32>
    %30 = vector.broadcast %29 : vector<1x16x64xf32> to vector<4x16x64xf32>
    %31 = arith.mulf %22, %30 : vector<4x16x64xf32>
    %32 = arith.extf %19 : vector<16x64xbf16> to vector<16x64xf32>
    %33 = vector.shape_cast %32 : vector<16x64xf32> to vector<1x16x64xf32>
    %34 = vector.broadcast %33 : vector<1x16x64xf32> to vector<4x16x64xf32>
    %35 = arith.mulf %27, %34 : vector<4x16x64xf32>
    %36 = arith.addf %31, %35 : vector<4x16x64xf32>
    %37 = arith.truncf %36 : vector<4x16x64xf32> to vector<4x16x64xbf16>
    %38 = vector.extract_strided_slice %17 {offsets = [0, 256], sizes = [16, 256], strides = [1, 1]} : vector<16x768xf32> to vector<16x256xf32>
    %39 = vector.shape_cast %38 : vector<16x256xf32> to vector<16x4x64xf32>
    %40 = tpu.transpose %39, [1, 0, 2] : vector<16x4x64xf32> -> vector<4x16x64xf32>
    %41 = vector.extract_strided_slice %40 {offsets = [0, 0, 0], sizes = [4, 16, 32], strides = [1, 1, 1]} : vector<4x16x64xf32> to vector<4x16x32xf32>
    %42 = vector.extract_strided_slice %40 {offsets = [0, 0, 32], sizes = [4, 16, 32], strides = [1, 1, 1]} : vector<4x16x64xf32> to vector<4x16x32xf32>
    %cst_14 = arith.constant 0.000000e+00 : f32
    %43 = vector.broadcast %cst_14 : f32 to vector<4x16x32xf32>
    %44 = arith.subf %43, %42 : vector<4x16x32xf32>
    %45 = tpu.concatenate %44, %41 in 2 : vector<4x16x32xf32>, vector<4x16x32xf32> -> vector<4x16x64xf32>
    %46 = arith.extf %18 : vector<16x64xbf16> to vector<16x64xf32>
    %47 = vector.shape_cast %46 : vector<16x64xf32> to vector<1x16x64xf32>
    %48 = vector.broadcast %47 : vector<1x16x64xf32> to vector<4x16x64xf32>
    %49 = arith.mulf %40, %48 : vector<4x16x64xf32>
    %50 = arith.extf %19 : vector<16x64xbf16> to vector<16x64xf32>
    %51 = vector.shape_cast %50 : vector<16x64xf32> to vector<1x16x64xf32>
    %52 = vector.broadcast %51 : vector<1x16x64xf32> to vector<4x16x64xf32>
    %53 = arith.mulf %45, %52 : vector<4x16x64xf32>
    %54 = arith.addf %49, %53 : vector<4x16x64xf32>
    %55 = arith.truncf %54 : vector<4x16x64xf32> to vector<4x16x64xbf16>
    %56 = vector.extract_strided_slice %17 {offsets = [0, 512], sizes = [16, 256], strides = [1, 1]} : vector<16x768xf32> to vector<16x256xf32>
    %57 = vector.shape_cast %56 : vector<16x256xf32> to vector<16x4x64xf32>
    %58 = tpu.transpose %57, [1, 0, 2] : vector<16x4x64xf32> -> vector<4x16x64xf32>
    %59 = arith.truncf %58 : vector<4x16x64xf32> to vector<4x16x64xbf16>
    "tpu.trace_start"() <{level = 10 : i32, message = "hqd,hkd->hqk"}> : () -> ()
    %cst_15 = arith.constant dense<0.000000e+00> : vector<4x16x16xf32>
    %60 = tpu.matmul %37, %55, %cst_15 {dimension_numbers = #tpu.dot_dimension_numbers<[2], [2], [1], [1], [0, 0, 0, 1, 1, 1], [0], [0]>} : vector<4x16x64xbf16>, vector<4x16x64xbf16>, vector<4x16x16xf32> -> vector<4x16x16xf32>
    "tpu.trace_stop"() : () -> ()
    %c0_16 = arith.constant 0 : index
    %c0_17 = arith.constant 0 : index
    %61 = vector.load %arg10[%c0_16, %c0_17] : memref<16x16xf32, #tpu.memory_space<vmem>>, vector<16x16xf32>
    %62 = vector.shape_cast %61 : vector<16x16xf32> to vector<1x16x16xf32>
    %63 = vector.broadcast %62 : vector<1x16x16xf32> to vector<4x16x16xf32>
    %64 = arith.addf %60, %63 : vector<4x16x16xf32>
    %cst_18 = arith.constant dense<0xFF800000> : vector<4x16xf32>
    %65 = vector.multi_reduction <maximumf>, %64, %cst_18 [2] : vector<4x16x16xf32> to vector<4x16xf32>
    %66 = vector.shape_cast %65 : vector<4x16xf32> to vector<4x16x1xf32>
    %67 = vector.broadcast %66 : vector<4x16x1xf32> to vector<4x16x16xf32>
    %68 = arith.subf %64, %67 : vector<4x16x16xf32>
    %69 = math.exp %68 : vector<4x16x16xf32>
    %cst_19 = arith.constant dense<0.000000e+00> : vector<4x16xf32>
    %70 = vector.multi_reduction <add>, %69, %cst_19 [2] : vector<4x16x16xf32> to vector<4x16xf32>
    %71 = vector.shape_cast %70 : vector<4x16xf32> to vector<4x16x1xf32>
    %72 = arith.truncf %69 : vector<4x16x16xf32> to vector<4x16x16xbf16>
    "tpu.trace_start"() <{level = 10 : i32, message = "hqk,hkd->hqd"}> : () -> ()
    %cst_20 = arith.constant dense<0.000000e+00> : vector<4x16x64xf32>
    %73 = tpu.matmul %72, %59, %cst_20 {dimension_numbers = #tpu.dot_dimension_numbers<[2], [1], [1], [2], [0, 0, 0, 1, 1, 2], [0], [0]>} : vector<4x16x16xbf16>, vector<4x16x64xbf16>, vector<4x16x64xf32> -> vector<4x16x64xf32>
    "tpu.trace_stop"() : () -> ()
    %cst_21 = arith.constant 1.000000e+00 : f32
    %74 = vector.broadcast %cst_21 : f32 to vector<4x16x1xf32>
    %75 = arith.divf %74, %71 : vector<4x16x1xf32>
    %76 = vector.broadcast %75 : vector<4x16x1xf32> to vector<4x16x64xf32>
    %77 = arith.mulf %73, %76 : vector<4x16x64xf32>
    %78 = tpu.transpose %77, [1, 0, 2] : vector<4x16x64xf32> -> vector<16x4x64xf32>
    %79 = vector.shape_cast %78 : vector<16x4x64xf32> to vector<16x256xf32>
    %80 = arith.truncf %79 : vector<16x256xf32> to vector<16x256xbf16>
    %c0_22 = arith.constant 0 : index
    %c0_23 = arith.constant 0 : index
    %81 = vector.load %arg4[%c0_22, %c0_23] : memref<256x256xbf16, #tpu.memory_space<vmem>>, vector<256x256xbf16>
    %cst_24 = arith.constant dense<0.000000e+00> : vector<16x256xf32>
    %82 = tpu.matmul %80, %81, %cst_24 {dimension_numbers = #tpu.dot_dimension_numbers<[1], [0], [0], [1], [0, 0, 1, 1], [], []>} : vector<16x256xbf16>, vector<256x256xbf16>, vector<16x256xf32> -> vector<16x256xf32>
    %83 = arith.addf %1, %82 : vector<16x256xf32>
    %c0_25 = arith.constant 0 : index
    %c0_26 = arith.constant 0 : index
    %84 = vector.load %arg5[%c0_25, %c0_26] : memref<1x256xf32, #tpu.memory_space<vmem>>, vector<1x256xf32>
    %85 = arith.mulf %83, %83 : vector<16x256xf32>
    %cst_27 = arith.constant dense<0.000000e+00> : vector<16xf32>
    %86 = vector.multi_reduction <add>, %85, %cst_27 [1] : vector<16x256xf32> to vector<16xf32>
    %87 = vector.shape_cast %86 : vector<16xf32> to vector<16x1xf32>
    %cst_28 = arith.constant 2.560000e+02 : f32
    %88 = vector.broadcast %cst_28 : f32 to vector<16x1xf32>
    %89 = arith.divf %87, %88 : vector<16x1xf32>
    %cst_29 = arith.constant 9.99999974E-6 : f32
    %90 = vector.broadcast %cst_29 : f32 to vector<16x1xf32>
    %91 = arith.addf %89, %90 : vector<16x1xf32>
    %92 = math.rsqrt %91 : vector<16x1xf32>
    %93 = vector.broadcast %92 : vector<16x1xf32> to vector<16x256xf32>
    %94 = arith.mulf %83, %93 : vector<16x256xf32>
    %95 = vector.broadcast %84 : vector<1x256xf32> to vector<16x256xf32>
    %96 = arith.mulf %94, %95 : vector<16x256xf32>
    %97 = arith.truncf %96 : vector<16x256xf32> to vector<16x256xbf16>
    %c0_30 = arith.constant 0 : index
    %c0_31 = arith.constant 0 : index
    %98 = vector.load %arg6[%c0_30, %c0_31] : memref<256x1024xbf16, #tpu.memory_space<vmem>>, vector<256x1024xbf16>
    %cst_32 = arith.constant dense<0.000000e+00> : vector<16x1024xf32>
    %99 = tpu.matmul %97, %98, %cst_32 {dimension_numbers = #tpu.dot_dimension_numbers<[1], [0], [0], [1], [0, 0, 1, 1], [], []>} : vector<16x256xbf16>, vector<256x1024xbf16>, vector<16x1024xf32> -> vector<16x1024xf32>
    %100 = vector.extract_strided_slice %99 {offsets = [0, 0], sizes = [16, 512], strides = [1, 1]} : vector<16x1024xf32> to vector<16x512xf32>
    %101 = vector.extract_strided_slice %99 {offsets = [0, 512], sizes = [16, 512], strides = [1, 1]} : vector<16x1024xf32> to vector<16x512xf32>
    %102 = arith.negf %100 : vector<16x512xf32>
    %103 = math.exp %102 : vector<16x512xf32>
    %cst_33 = arith.constant 1.000000e+00 : f32
    %104 = vector.broadcast %cst_33 : f32 to vector<16x512xf32>
    %105 = arith.addf %104, %103 : vector<16x512xf32>
    %106 = arith.divf %104, %105 : vector<16x512xf32>
    %107 = arith.mulf %100, %106 : vector<16x512xf32>
    %108 = arith.mulf %107, %101 : vector<16x512xf32>
    %109 = arith.truncf %108 : vector<16x512xf32> to vector<16x512xbf16>
    %c0_34 = arith.constant 0 : index
    %c0_35 = arith.constant 0 : index
    %110 = vector.load %arg7[%c0_34, %c0_35] : memref<512x256xbf16, #tpu.memory_space<vmem>>, vector<512x256xbf16>
    %cst_36 = arith.constant dense<0.000000e+00> : vector<16x256xf32>
    %111 = tpu.matmul %109, %110, %cst_36 {dimension_numbers = #tpu.dot_dimension_numbers<[1], [0], [0], [1], [0, 0, 1, 1], [], []>} : vector<16x512xbf16>, vector<512x256xbf16>, vector<16x256xf32> -> vector<16x256xf32>
    %112 = arith.addf %83, %111 : vector<16x256xf32>
    %c0_37 = arith.constant 0 : index
    %c0_38 = arith.constant 0 : index
    %c0_39 = arith.constant 0 : index
    %113 = vector.load %arg11[%c0_37, %c0_38, %c0_39] : memref<1x16x256xf32, #tpu.memory_space<vmem>>, vector<1x16x256xf32>
    %114 = vector.shape_cast %113 : vector<1x16x256xf32> to vector<16x256xf32>
    %115 = vector.shape_cast %112 : vector<16x256xf32> to vector<1x16x256xf32>
    tpu.vector_store %arg11[%c0_37, %c0_38, %c0_39], %115 {strides = array<i32>} : memref<1x16x256xf32, #tpu.memory_space<vmem>>, vector<1x16x256xf32>,
    return
  }
  func.func @transform_0(%arg0: i32) -> (i32, i32, i32) {
    %c0_i32 = arith.constant 0 : i32
    %c0_i32_0 = arith.constant 0 : i32
    %c0_i32_1 = arith.constant 0 : i32
    return %arg0, %c0_i32, %c0_i32_0 : i32, i32, i32
  }
  func.func @transform_1(%arg0: i32) -> (i32, i32) {
    %c0_i32 = arith.constant 0 : i32
    %c0_i32_0 = arith.constant 0 : i32
    %c0_i32_1 = arith.constant 0 : i32
    return %c0_i32, %c0_i32_0 : i32, i32
  }
  func.func @transform_2(%arg0: i32) -> (i32, i32) {
    %c0_i32 = arith.constant 0 : i32
    %c0_i32_0 = arith.constant 0 : i32
    %c0_i32_1 = arith.constant 0 : i32
    return %c0_i32, %c0_i32_0 : i32, i32
  }
  func.func @transform_3(%arg0: i32) -> (i32, i32) {
    %c0_i32 = arith.constant 0 : i32
    %c0_i32_0 = arith.constant 0 : i32
    %c0_i32_1 = arith.constant 0 : i32
    return %c0_i32, %c0_i32_0 : i32, i32
  }
  func.func @transform_4(%arg0: i32) -> (i32, i32) {
    %c0_i32 = arith.constant 0 : i32
    %c0_i32_0 = arith.constant 0 : i32
    %c0_i32_1 = arith.constant 0 : i32
    return %c0_i32, %c0_i32_0 : i32, i32
  }
  func.func @transform_5(%arg0: i32) -> (i32, i32) {
    %c0_i32 = arith.constant 0 : i32
    %c0_i32_0 = arith.constant 0 : i32
    %c0_i32_1 = arith.constant 0 : i32
    return %c0_i32, %c0_i32_0 : i32, i32
  }
  func.func @transform_6(%arg0: i32) -> (i32, i32) {
    %c0_i32 = arith.constant 0 : i32
    %c0_i32_0 = arith.constant 0 : i32
    %c0_i32_1 = arith.constant 0 : i32
    return %c0_i32, %c0_i32_0 : i32, i32
  }
  func.func @transform_7(%arg0: i32) -> (i32, i32) {
    %c0_i32 = arith.constant 0 : i32
    %c0_i32_0 = arith.constant 0 : i32
    %c0_i32_1 = arith.constant 0 : i32
    return %c0_i32, %c0_i32_0 : i32, i32
  }
  func.func @transform_8(%arg0: i32) -> (i32, i32) {
    %c0_i32 = arith.constant 0 : i32
    %c0_i32_0 = arith.constant 0 : i32
    %c0_i32_1 = arith.constant 0 : i32
    return %c0_i32, %c0_i32_0 : i32, i32
  }
  func.func @transform_9(%arg0: i32) -> (i32, i32) {
    %c0_i32 = arith.constant 0 : i32
    %c0_i32_0 = arith.constant 0 : i32
    %c0_i32_1 = arith.constant 0 : i32
    return %c0_i32, %c0_i32_0 : i32, i32
  }
  func.func @transform_10(%arg0: i32) -> (i32, i32, i32) {
    %c0_i32 = arith.constant 0 : i32
    %c0_i32_0 = arith.constant 0 : i32
    %c0_i32_1 = arith.constant 0 : i32
    return %arg0, %c0_i32, %c0_i32_0 : i32, i32, i32
  }
}

</mosaic_0001>

<bundles_post_ra>
// kernel: tpu_custom_call.1
= control target key start
LH: loop header
LB: loop body
LE: loop exit
PB: predicated region body
PF: predicated region fallthrough
CT: control target
= control target key end

     0   :  { %s8929_s0 = inlined_call_operand.hbm [shape: f32[2,16,256], index: 0, kind: input, shape index: {}]   ;;  %s8930_s1 = inlined_call_operand.hbm [shape: f32[1,256], index: 1, kind: input, shape index: {}]   ;;  %s8931_s2 = inlined_call_operand.hbm [shape: bf16[256,768], index: 2, kind: input, shape index: {}]   ;;  %s8932_s3 = inlined_call_operand.hbm [shape: bf16[256,256], index: 3, kind: input, shape index: {}]   ;;  %s8933_s4 = inlined_call_operand.vmem [shape: f32[1,256], index: 4, kind: input, shape index: {}]   ;;  %s8934_s5 = inlined_call_operand.hbm [shape: bf16[256,1024], index: 5, kind: input, shape index: {}]   ;;  %s8935_s6 = inlined_call_operand.hbm [shape: bf16[512,256], index: 6, kind: input, shape index: {}]   ;;  %s8936_s7 = inlined_call_operand.hbm [shape: bf16[16,64], index: 7, kind: input, shape index: {}]   ;;  %s8937_s8 = inlined_call_operand.hbm [shape: bf16[16,64], index: 8, kind: input, shape index: {}]   ;;  %s8938_s9 = inlined_call_operand.hbm [shape: f32[16,16], index: 9, kind: input, shape index: {}]   ;;  %s8939_s10 = inlined_call_operand.hbm [shape: f32[2,16,256], index: 10, kind: output, shape index: {}]  }
   0x1   :  { %8942 = sst [smem:[#allocation24_spill]] %s8930_s1 }
   0x2   :  { %8943 = sst [smem:[#allocation25_spill]] %s8931_s2 }
   0x3   :  { %8944 = sst [smem:[#allocation26_spill]] %s8932_s3 }
   0x4   :  { %8945 = sst [smem:[#allocation27_spill]] %s8934_s5 }
   0x5   :  { %8946 = sst [smem:[#allocation28_spill]] %s8935_s6 }
   0x6   :  { %15 = vsyncpa [#allocation3], 0 }
   0x7   :  { %17 = vsyncpa [#allocation3 + $0x1], 0 }
   0x8   :  { %18 = vsyncpa [#allocation6], 0 }
   0x9   :  { %19 = vsyncpa [#allocation9], 0 }
   0xa   :  { %20 = vsyncpa [#allocation12], 0 }
   0xb   :  { %21 = vsyncpa [#allocation15], 0 }
   0xc   :  { %22 = vsyncpa [#allocation4], 0 }
   0xd   :  { %24 = vsyncpa [#allocation4 + $0x1], 0  ;;  %s7421_s13 = smov 0   ;;  %s7423_s14 = smov 0  }
   0xe   :  { %s7425_s15 = smov 0   ;;  %s7427_s16 = smov 0  }
   0xf LB: > { %s8947_s1 = sld [smem:[#allocation24_spill]]  ;;  %s7445_s20 = sadd.s32 4294967295, %s7338_s16   ;;  %s7338_s16 = sphi %s7427_s16, %s9015_s16   ;;  %s7334_s15 = sphi %s7425_s15, %s9014_s15   ;;  %s7330_s14 = sphi %s7423_s14, %s9013_s14   ;;  %s7326_s13 = sphi %s7421_s13, %s9012_s13  }
  0x10   : > { %p5088_p0 = scmp.ge.s32.totalorder %s7338_s16, 1  ;;  %p51_p1 = scmp.eq.s32.totalorder %s7445_s20, 0 }
  0x11   : > { %p276_p2 = scmp.lt.s32.totalorder %s7338_s16, 3  ;;  %s7340_s22 = smov [#allocation5]  }
  0x12   : > { %s290_s23 = sshll.u32 %s7340_s22, 4  ;;  %s8949_s3 = sld [smem:[#allocation26_spill]]  ;;  %s291_s23 = int_to_ptr.vmem [resolvable:$true] %s290_s23 }
  0x13   : > { %p7450_p3 = pnand %p5088_p0, %p276_p2  ;;  %s7341_s28 = smov [#allocation8]  }
  0x14   : > { %s315_s29 = sshll.u32 %s7341_s28, 4  ;;  %s8940_s30 = smov 128   ;;  %s316_s29 = int_to_ptr.vmem [resolvable:$true] %s315_s29 }
  0x15   : > { %s288_s19 = sshll.u32 %s8947_s1, 4  ;;  %p6779_p5 = pneg %p7450_p3  ;;  %s289_s19 = int_to_ptr.hbm [resolvable:$true] %s288_s19 }
  0x16   : > { %s8941_s11 = smov 8   ;;  %s8951_s6 = sld [smem:[#allocation28_spill]] }
  0x17   : > { %p7462_p6 = pnand %p6779_p5, %p51_p1  ;;  %s7344_s22 = smov [#allocation11]  }
  0x18   : > { %s313_s26 = sshll.u32 %s8949_s3, 4  ;;  %s346_s24 = sshll.u32 %s7344_s22, 4  ;;  %s314_s26 = int_to_ptr.hbm [resolvable:$true] %s313_s26  ;;  %s347_s24 = int_to_ptr.vmem [resolvable:$true] %s346_s24 }
  0x19   : > { %6782 = dma.hbm_to_vmem [thread:$0]  (!%p7462_p6), %s289_s19, 32, %s291_s23, [#allocation6]  }
  0x1a   : > { %6788 = dma.hbm_to_vmem [thread:$0]  (!%p7462_p6), %s314_s26, 4096, %s316_s29, [#allocation9], %s8940_s30, %s8940_s30, %s8941_s11  }
  0x1b   : > { %s372_s25 = sshll.u32 %s8937_s8, 4  ;;  %s7345_s26 = smov [#allocation14]   ;;  %s373_s25 = int_to_ptr.hbm [resolvable:$true] %s372_s25 }
  0x1c   : > { %s344_s18 = sshll.u32 %s8951_s6, 4  ;;  %s374_s28 = sshll.u32 %s7345_s26, 4  ;;  %s345_s18 = int_to_ptr.hbm [resolvable:$true] %s344_s18  ;;  %s375_s28 = int_to_ptr.vmem [resolvable:$true] %s374_s28 }
  0x1d   : > { %6794 = dma.hbm_to_vmem [thread:$0]  (!%p7462_p6), %s345_s18, 8192, %s347_s24, [#allocation12], %s8940_s30, %s8940_s30, %s8941_s11  }
  0x1e   : > { %s8952_s2 = sld [smem:[#allocation25_spill]]  ;;  %s7346_s22 = smov 64  }
  0x1f   : > { %s7347_s1 = smov 4   ;;  %s7348_s18 = smov [#allocation7]  }
  0x20   : > { %6800 = dma.hbm_to_vmem [thread:$0]  (!%p7462_p6), %s373_s25, 128, %s375_s28, [#allocation15], %s7346_s22, %s7346_s22, %s7347_s1  }
  0x21   : > { %s301_s24 = sshll.u32 %s7348_s18, 4  ;;  %s8953_s5 = sld [smem:[#allocation27_spill]]  ;;  %s302_s24 = int_to_ptr.vmem [resolvable:$true] %s301_s24 }
  0x22   : > { %s7349_s11 = smov 384   ;;  %s7350_s26 = smov 24  }
  0x23   : > { %s7351_s29 = smov [#allocation10]   ;;  %s7353_s25 = smov 32  }
  0x24   : > { %s299_s17 = sshll.u32 %s8952_s2, 4  ;;  %s332_s12 = sshll.u32 %s7351_s29, 4  ;;  %s300_s17 = int_to_ptr.hbm [resolvable:$true] %s299_s17  ;;  %s333_s12 = int_to_ptr.vmem [resolvable:$true] %s332_s12 }
  0x25   : > { %6785 = dma.hbm_to_vmem [thread:$0]  (!%p7462_p6), %s300_s17, 12288, %s302_s24, [#allocation6], %s7349_s11, %s7349_s11, %s7350_s26  }
  0x26   : > { %s7352_s2 = smov 512   ;;  %s358_s19 = sshll.u32 %s8936_s7, 4  ;;  %s359_s19 = int_to_ptr.hbm [resolvable:$true] %s358_s19 }
  0x27   : > { %s330_s30 = sshll.u32 %s8953_s5, 4  ;;  %s7354_s11 = smov [#allocation13]   ;;  %s331_s30 = int_to_ptr.hbm [resolvable:$true] %s330_s30 }
  0x28   : > { %6791 = dma.hbm_to_vmem [thread:$0]  (!%p7462_p6), %s331_s30, 16384, %s333_s12, [#allocation9], %s7352_s2, %s7352_s2, %s7353_s25  }
  0x29   : > { %s360_s17 = sshll.u32 %s7354_s11, 4  ;;  %s386_s26 = sshll.u32 %s8938_s9, 4  ;;  %s361_s17 = int_to_ptr.vmem [resolvable:$true] %s360_s17  ;;  %s387_s26 = int_to_ptr.hbm [resolvable:$true] %s386_s26 }
  0x2a   : > { %6797 = dma.hbm_to_vmem [thread:$0]  (!%p7462_p6), %s359_s19, 128, %s361_s17, [#allocation12], %s7346_s22, %s7346_s22, %s7347_s1  }
  0x2b   : > { %s7355_s2 = smov [#allocation16]   ;;  %s8954_s29 = smov 8  }
  0x2c   : > { %s388_s30 = sshll.u32 %s7355_s2, 4  ;;  %s8955_s12 = smov 128   ;;  %s389_s30 = int_to_ptr.vmem [resolvable:$true] %s388_s30 }
  0x2d   : > { %6803 = dma.hbm_to_vmem [thread:$0]  (!%p7462_p6), %s387_s26, 256, %s389_s30, [#allocation15], %s8955_s12, %s8955_s12, %s8954_s29  }
  0x2e   : > { %s5087_s25 = sadd.s32 4294967294, %s7338_s16   ;;  %s7511_s28 = sadd.s32 1, %s7338_s16  }
  0x2f   : > { %s34_s18 = ssub.s32 %s7338_s16, %s7511_s28  ;;  %s37_s1 = sadd.s32 1, %s7334_s15 }
  0x30   : > { %p35_p7 = scmp.eq.s32.totalorder %s34_s18, 0  ;;  %p44_p8 = scmp.ne.s32.totalorder %s7334_s15, %s7330_s14 }
  0x31   : > { %p45_p9 = scmp.eq.s32.totalorder %s7338_s16, 0  ;;  %p50_p10 = scmp.ne.s32.totalorder %s7330_s14, %s7326_s13 }
  0x32   : > { %s7522_s22 = scalar_select %p35_p7, %s7334_s15, %s37_s1  }
  0x33   : > { %p7524_p11 = por %p45_p9, %p44_p8  ;;  %p7530_p12 = por %p51_p1, %p50_p10 }
  0x34   : > { %p263_p13 = scmp.eq.s32.totalorder %s7445_s20, 1  ;;  %p269_p0 = scmp.eq.s32.totalorder %s5087_s25, 1 }
  0x35   : > { %p6820_p2 = scmp.lt.s32.totalorder %s7338_s16, 2  ;;  %s402_s11 = sand.u32 1, %s7334_s15  }
  0x36   : > { %p7537_p5 = por %p263_p13, %p44_p8  ;;  %p7541_p6 = por %p269_p0, %p50_p10 }
  0x37   : > { %s5098_s23 = sshll.u32 %s402_s11, 5  ;;  %s6413_s26 = sshll.u32 %s7338_s16, 5 }
  0x38   : > { %s411_s29 = scalar_lea.hbm %s8929_s0, %s6413_s26  ;;  %s406_s12 = scalar_lea.vmem [#allocation2], %s5098_s23 }
  0x39   : > { %s414_s18 = sshll.u32 %s406_s12, 4  ;;  %s412_s1 = sshll.u32 %s411_s29, 4  ;;  %s415_s18 = int_to_ptr.vmem [resolvable:$true] %s414_s18  ;;  %s413_s1 = int_to_ptr.hbm [resolvable:$true] %s412_s1 }
  0x3a   : > { %p7551_p7 = pnand %p6820_p2, %p7524_p11  ;;  %s403_s3 = scalar_lea.sflag [#allocation3], %s402_s11 }
  0x3b   : > { %s7226_s5 = sshra.s32 %s413_s1, 4  ;;  %s7233_s2 = scalar_lea.hbm %s8929_s0, 64  ;;  %s7227_s5 = int_to_ptr.hbm [resolvable:$true] %s7226_s5 }
  0x3c   : > { %s7228_s6 = scalar_lea.hbm %s7227_s5, 32  ;;  %p7230_p9 = pneg %p7551_p7 }
  0x3d   : > { %p7229_p8 = scmp.ne.s32.totalorder %s7227_s5, %s7228_s6  ;;  %p7234_p11 = scmp.lt.s32.totalorder %s7227_s5, %s8929_s0 }
  0x3e   : > { %p7235_p0 = scmp.lt.s32.totalorder %s7233_s2, %s7228_s6 }
  0x3f   : > { %p7231_p10 = pnand %p7230_p9, %p7229_p8 }
  0x40   : > { %p7236_p2 = por %p7235_p0, %p7234_p11 }
  0x41   : > { %p7232_p13 = pneg %p7231_p10 }
  0x43   : > { %p7237_p4 = pnand %p7236_p2, %p7232_p13 }
  0x45   : > { %7240 = shalt.err (!%p7237_p4)
}
  0x46   : > { %s7356_s11 = smov 256   ;;  %s7357_s29 = smov 16  }
  0x47   : > { %6807 = dma.hbm_to_vmem [thread:$0]  (!%p7551_p7), %s413_s1, 512, %s415_s18, %s403_s3, %s7356_s11, %s7356_s11, %s7357_s29  }
  0x48   : > { %426 = sbr.rel (%p7450_p3) target bundleno = 1962 (0x7aa), region = 60  ;;  %s7568_s12 = sand.u32 (!%p7450_p3), 1, %s7330_s14  }
  0x49   : > { %s5102_s5 = sshll.u32 (!%p7450_p3), %s7568_s12, 5  ;;  %s429_s6 = scalar_lea.sflag (!%p7450_p3), [#allocation3], %s7568_s12 }
  0x4a   : > { %s7574_s23 = scalar_lea.vmem (!%p7450_p3), [#allocation2], %s5102_s5 }
  0x4d   : > { %7301 = dma.done.wait (%p7530_p12), %s429_s6, 512  }
  0x4e   : > { %7303 = vsyncadd (%p7530_p12), %s429_s6, 4294966784 }
  0x4f   : > { %7305 = dma.done.wait (%p51_p1), [#allocation6], 12320  }
  0x50   : > { %7307 = vsyncadd (%p51_p1), [#allocation6], 4294954976 }
  0x51   : > { %7309 = dma.done.wait (%p51_p1), [#allocation9], 20480  }
  0x52   : > { %7311 = vsyncadd (%p51_p1), [#allocation9], 4294946816 }
  0x53   : > { %7313 = dma.done.wait (%p51_p1), [#allocation12], 8320  }
  0x54   : > { %7315 = vsyncadd (%p51_p1), [#allocation12], 4294958976 }
  0x55   : > { %7317 = dma.done.wait (%p51_p1), [#allocation15], 384  }
  0x56   : > { %7319 = vsyncadd (%p51_p1), [#allocation15], 4294966912  ;;  %v7597_v0 = vld [vmem:[%s7574_s23] sm:$0xff]  ;;  %v7600_v1 = vld [vmem:[%s7574_s23 + $0x8] sm:$0xff]  ;;  %s7359_s3 = smov 64   ;;  %vm1337_vm7 = vcmask 1047556  }
  0x57   : > { %v7603_v2 = vld [vmem:[%s7574_s23 + $0x10] sm:$0xff]  ;;  %v516_v3 = vmul.f32 %v7597_v0, %v7597_v0  ;;  %v517_v4 = vmul.f32 %v7600_v1, %v7600_v1  ;;  %v7610_v5 = vld [vmem:[%s7574_s23 + $0x18] sm:$0xff]  ;;  %v6459_v7 = vld [vmem:[#allocation7 + $0x164] sm:$0xf0]  ;;  %s7362_s21 = smov 96   ;;  %s7363_s19 = smov 32  }
  0x58   : > { %v5282_v6 = vld [vmem:[#allocation7 + $0x150] sm:$0xf]  ;;  %v6507_v10 = vld [vmem:[#allocation7 + $0x2e4] sm:$0xf0]  ;;  %v6456_v11 = vld [vmem:[#allocation7 + $0x154] sm:$0xf]  ;;  %v518_v22 = vmul.f32 %v7603_v2, %v7603_v2  ;;  %v519_v23 = vmul.f32 %v7610_v5, %v7610_v5 }
  0x59   : > { %v5283_v8 = vor.u32 %v6459_v7, %v5282_v6  ;;  %v5474_v9 = vld [vmem:[#allocation7 + $0x2d0] sm:$0xf]  ;;  %v520_v12 = vadd.f32 %v517_v4, %v516_v3  ;;  %v5284_v14 = vld [vmem:[#allocation7 + $0x168] sm:$0xf0]  ;;  %v6504_v15 = vld [vmem:[#allocation7 + $0x2d4] sm:$0xf] }
  0x5a   : > { %v5475_v13 = vor.u32 %v6507_v10, %v5474_v9  ;;  %v5476_v16 = vld [vmem:[#allocation7 + $0x2e8] sm:$0xf0]  ;;  %v5287_v17 = vor.u32 %v6456_v11, %v5284_v14  ;;  %v5258_v19 = vld [vmem:[#allocation7 + $0x120] sm:$0xf]  ;;  %v6453_v20 = vld [vmem:[#allocation7 + $0x134] sm:$0xf0]  ;;  %v523_v41 = vadd.f32 %v519_v23, %v518_v22 }
  0x5b   : > { %1148 = vmatpush.bf16.msra.mxu0 %v5283_v8  ;;  %v5479_v18 = vor.u32 %v6504_v15, %v5476_v16  ;;  %v5450_v21 = vld [vmem:[#allocation7 + $0x2a0] sm:$0xf]  ;;  %521 = vadd.xlane.f32.xlu0 %v520_v12  ;;  %v5259_v24 = vor.u32 %v6453_v20, %v5258_v19  ;;  %v6501_v25 = vld [vmem:[#allocation7 + $0x2b4] sm:$0xf0]  ;;  %v6450_v26 = vld [vmem:[#allocation7 + $0x124] sm:$0xf] }
  0x5c   : > { %1162 = vmatpush.bf16.msra.mxu1 %v5475_v13  ;;  %v5260_v27 = vld [vmem:[#allocation7 + $0x138] sm:$0xf0]  ;;  %1176 = vmatpush.bf16.msra.mxu2 %v5287_v17  ;;  %v5451_v28 = vor.u32 %v6501_v25, %v5450_v21  ;;  %v6498_v30 = vld [vmem:[#allocation7 + $0x2a4] sm:$0xf]  ;;  %v5234_v32 = vld [vmem:[#allocation7 + $0xf0] sm:$0xf] }
  0x5d   : > { %1190 = vmatpush.bf16.msra.mxu3 %v5479_v18  ;;  %v5263_v29 = vor.u32 %v6450_v26, %v5260_v27  ;;  %v5452_v31 = vld [vmem:[#allocation7 + $0x2b8] sm:$0xf0]  ;;  %v6447_v34 = vld [vmem:[#allocation7 + $0x104] sm:$0xf0]  ;;  %v5426_v35 = vld [vmem:[#allocation7 + $0x270] sm:$0xf] }
  0x5e   : > { %v5455_v33 = vor.u32 %v6498_v30, %v5452_v31  ;;  %v6495_v36 = vld [vmem:[#allocation7 + $0x284] sm:$0xf0]  ;;  %v5235_v37 = vor.u32 %v6447_v34, %v5234_v32  ;;  %v6444_v38 = vld [vmem:[#allocation7 + $0xf4] sm:$0xf]  ;;  %v5236_v39 = vld [vmem:[#allocation7 + $0x108] sm:$0xf0] }
  0x5f   : > { %1149 = vmatpush.bf16.msra.mxu0 %v5259_v24  ;;  %v6492_v40 = vld [vmem:[#allocation7 + $0x274] sm:$0xf]  ;;  %v5427_v42 = vor.u32 %v6495_v36, %v5426_v35  ;;  %v5428_v43 = vld [vmem:[#allocation7 + $0x288] sm:$0xf0]  ;;  %v5210_v44 = vld [vmem:[#allocation7 + $0xc0] sm:$0xf]  ;;  %v5239_v46 = vor.u32 %v6444_v38, %v5236_v39 }
  0x60   : > { %1163 = vmatpush.bf16.msra.mxu1 %v5451_v28  ;;  %v6441_v45 = vld [vmem:[#allocation7 + $0xd4] sm:$0xf0]  ;;  %1177 = vmatpush.bf16.msra.mxu2 %v5263_v29  ;;  %v5431_v47 = vor.u32 %v6492_v40, %v5428_v43  ;;  %v5402_v48 = vld [vmem:[#allocation7 + $0x240] sm:$0xf]  ;;  %v6438_v50 = vld [vmem:[#allocation7 + $0xc4] sm:$0xf] }
  0x61   : > { %1191 = vmatpush.bf16.msra.mxu3 %v5455_v33  ;;  %v6489_v49 = vld [vmem:[#allocation7 + $0x254] sm:$0xf0]  ;;  %v5212_v51 = vld [vmem:[#allocation7 + $0xd8] sm:$0xf0]  ;;  %v6486_v52 = vld [vmem:[#allocation7 + $0x244] sm:$0xf]  ;;  %v5211_v54 = vor.u32 %v6441_v45, %v5210_v44 }
  0x62   : > { %v5404_v53 = vld [vmem:[#allocation7 + $0x258] sm:$0xf0]  ;;  %v5403_v55 = vor.u32 %v6489_v49, %v5402_v48  ;;  %v5186_v56 = vld [vmem:[#allocation7 + $0x90] sm:$0xf]  ;;  %v6435_v57 = vld [vmem:[#allocation7 + $0xa4] sm:$0xf0]  ;;  %v5215_v58 = vor.u32 %v6438_v50, %v5212_v51 }
  0x63   : > { %1150 = vmatpush.bf16.msra.mxu0 %v5235_v37  ;;  %524 = vadd.xlane.f32.xlu0 %v523_v41  ;;  %v5407_v59 = vor.u32 %v6486_v52, %v5404_v53  ;;  %v5378_v60 = vld [vmem:[#allocation7 + $0x210] sm:$0xf]  ;;  %v6483_v61 = vld [vmem:[#allocation7 + $0x224] sm:$0xf0]  ;;  %v6432_v62 = vld [vmem:[#allocation7 + $0x94] sm:$0xf]  ;;  %v5187_v6 = vor.u32 %v6435_v57, %v5186_v56 }
  0x64   : > { %1164 = vmatpush.bf16.msra.mxu1 %v5427_v42  ;;  %1178 = vmatpush.bf16.msra.mxu2 %v5239_v46  ;;  %v5188_v63 = vld [vmem:[#allocation7 + $0xa8] sm:$0xf0]  ;;  %v6480_v3 = vld [vmem:[#allocation7 + $0x214] sm:$0xf]  ;;  %v5379_v7 = vor.u32 %v6483_v61, %v5378_v60  ;;  %v5162_v8 = vld [vmem:[#allocation7 + $0x60] sm:$0xf] }
  0x65   : > { %1192 = vmatpush.bf16.msra.mxu3 %v5431_v47  ;;  %v5380_v4 = vld [vmem:[#allocation7 + $0x228] sm:$0xf0]  ;;  %v6429_v9 = vld [vmem:[#allocation7 + $0x74] sm:$0xf0]  ;;  %v5191_v10 = vor.u32 %v6432_v62, %v5188_v63  ;;  %v5354_v12 = vld [vmem:[#allocation7 + $0x1e0] sm:$0xf] }
  0x66   : > { %v5383_v11 = vor.u32 %v6480_v3, %v5380_v4  ;;  %v6477_v13 = vld [vmem:[#allocation7 + $0x1f4] sm:$0xf0]  ;;  %v6426_v14 = vld [vmem:[#allocation7 + $0x64] sm:$0xf]  ;;  %v5164_v15 = vld [vmem:[#allocation7 + $0x78] sm:$0xf0]  ;;  %v5163_v18 = vor.u32 %v6429_v9, %v5162_v8 }
  0x67   : > { %1151 = vmatpush.bf16.msra.mxu0 %v5211_v54  ;;  %v6474_v16 = vld [vmem:[#allocation7 + $0x1e4] sm:$0xf]  ;;  %v5356_v17 = vld [vmem:[#allocation7 + $0x1f8] sm:$0xf0]  ;;  %v5355_v19 = vor.u32 %v6477_v13, %v5354_v12  ;;  %v5167_v20 = vor.u32 %v6426_v14, %v5164_v15  ;;  %v5138_v22 = vld [vmem:[#allocation7 + $0x30] sm:$0xf] }
  0x68   : > { %1165 = vmatpush.bf16.msra.mxu1 %v5403_v55  ;;  %1179 = vmatpush.bf16.msra.mxu2 %v5215_v58  ;;  %v5359_v21 = vor.u32 %v6474_v16, %v5356_v17  ;;  %v6423_v23 = vld [vmem:[#allocation7 + $0x44] sm:$0xf0]  ;;  %v5330_v24 = vld [vmem:[#allocation7 + $0x1b0] sm:$0xf]  ;;  %v6420_v27 = vld [vmem:[#allocation7 + $0x34] sm:$0xf] }
  0x69   : > { %1193 = vmatpush.bf16.msra.mxu3 %v5407_v59  ;;  %v5139_v25 = vor.u32 %v6423_v23, %v5138_v22  ;;  %v6471_v26 = vld [vmem:[#allocation7 + $0x1c4] sm:$0xf0]  ;;  %v5140_v28 = vld [vmem:[#allocation7 + $0x48] sm:$0xf0]  ;;  %v6468_v31 = vld [vmem:[#allocation7 + $0x1b4] sm:$0xf] }
  0x6a   : > { %v5331_v29 = vor.u32 %v6471_v26, %v5330_v24  ;;  %v5143_v30 = vor.u32 %v6420_v27, %v5140_v28  ;;  %v5332_v32 = vld [vmem:[#allocation7 + $0x1c8] sm:$0xf0]  ;;  %v7358_v33 = vmov 256.0   ;;  %v5114_v35 = vld [vmem:[#allocation7] sm:$0xf]  ;;  %vm1629_vm8 = vcmask 261120  }
  0x6b   : > { %1152 = vmatpush.bf16.msra.mxu0 %v5187_v6  ;;  %6908 = vrcp.f32 %v7358_v33  ;;  %v5335_v34 = vor.u32 %v6468_v31, %v5332_v32  ;;  %v6417_v36 = vld [vmem:[#allocation7 + $0x14] sm:$0xf0]  ;;  %v5306_v37 = vld [vmem:[#allocation7 + $0x180] sm:$0xf]  ;;  %v6414_v40 = vld [vmem:[#allocation7 + $0x4] sm:$0xf] }
  0x6c   : > { %1166 = vmatpush.bf16.msra.mxu1 %v5379_v7  ;;  %1180 = vmatpush.bf16.msra.mxu2 %v5191_v10  ;;  %v5115_v38 = vor.u32 %v6417_v36, %v5114_v35  ;;  %v6465_v39 = vld [vmem:[#allocation7 + $0x194] sm:$0xf0]  ;;  %v5116_v41 = vld [vmem:[#allocation7 + $0x18] sm:$0xf0]  ;;  %v6462_v44 = vld [vmem:[#allocation7 + $0x184] sm:$0xf] }
  0x6d   : > { %1194 = vmatpush.bf16.msra.mxu3 %v5383_v11  ;;  %v5307_v42 = vor.u32 %v6465_v39, %v5306_v37  ;;  %v5119_v43 = vor.u32 %v6414_v40, %v5116_v41  ;;  %v5308_v45 = vld [vmem:[#allocation7 + $0x198] sm:$0xf0]  ;;  %v5290_v46 = vld [vmem:[#allocation7 + $0x158] sm:$0xf]  ;;  %v6460_v48 = vld [vmem:[#allocation7 + $0x16c] sm:$0xf0] }
  0x6e   : > { %v5311_v47 = vor.u32 %v6462_v44, %v5308_v45  ;;  %v5482_v49 = vld [vmem:[#allocation7 + $0x2d8] sm:$0xf]  ;;  %v6508_v50 = vld [vmem:[#allocation7 + $0x2ec] sm:$0xf0]  ;;  %v5291_v51 = vor.u32 %v6460_v48, %v5290_v46  ;;  %v6457_v53 = vld [vmem:[#allocation7 + $0x15c] sm:$0xf] }
  0x6f   : > { %1153 = vmatpush.bf16.msra.mxu0 %v5163_v18  ;;  %v5483_v52 = vor.u32 %v6508_v50, %v5482_v49  ;;  %v5292_v54 = vld [vmem:[#allocation7 + $0x170] sm:$0xf0]  ;;  %v6505_v55 = vld [vmem:[#allocation7 + $0x2dc] sm:$0xf]  ;;  %v5266_v59 = vld [vmem:[#allocation7 + $0x128] sm:$0xf] }
  0x70   : > { %1167 = vmatpush.bf16.msra.mxu1 %v5355_v19  ;;  %1181 = vmatpush.bf16.msra.mxu2 %v5167_v20  ;;  %v5295_v57 = vor.u32 %v6457_v53, %v5292_v54  ;;  %v5484_v58 = vld [vmem:[#allocation7 + $0x2f0] sm:$0xf0]  ;;  %v6454_v60 = vld [vmem:[#allocation7 + $0x13c] sm:$0xf0]  ;;  %v5458_v63 = vld [vmem:[#allocation7 + $0x2a8] sm:$0xf] }
  0x71   : > { %1195 = vmatpush.bf16.msra.mxu3 %v5359_v21  ;;  %v7616_v56 = vpop.eup %6908  ;;  %v5487_v61 = vor.u32 %v6505_v55, %v5484_v58  ;;  %v5267_v62 = vor.u32 %v6454_v60, %v5266_v59  ;;  %v6502_v3 = vld [vmem:[#allocation7 + $0x2bc] sm:$0xf0]  ;;  %v6451_v4 = vld [vmem:[#allocation7 + $0x12c] sm:$0xf]  ;;  %v5268_v7 = vld [vmem:[#allocation7 + $0x140] sm:$0xf0] }
  0x72   : > { %v5459_v6 = vor.u32 %v6502_v3, %v5458_v63  ;;  %v6499_v8 = vld [vmem:[#allocation7 + $0x2ac] sm:$0xf]  ;;  %v5460_v9 = vld [vmem:[#allocation7 + $0x2c0] sm:$0xf0]  ;;  %v527_v10 = vmul.f32 256.0, %v7616_v56  ;;  %v5271_v11 = vor.u32 %v6451_v4, %v5268_v7  ;;  %vm531_vm0 = vweird.f32 %v7616_v56  ;;  %s8886_s25 = scalar_lea.vmem [#allocation17], %s5102_s5 }
  0x73   : > { %1154 = vmatpush.bf16.msra.mxu0 %v5139_v25  ;;  %v5463_v12 = vor.u32 %v6499_v8, %v5460_v9  ;;  %v5242_v13 = vld [vmem:[#allocation7 + $0xf8] sm:$0xf]  ;;  %v6448_v14 = vld [vmem:[#allocation7 + $0x10c] sm:$0xf0]  ;;  %v6445_v18 = vld [vmem:[#allocation7 + $0xfc] sm:$0xf] }
  0x74   : > { %1168 = vmatpush.bf16.msra.mxu1 %v5331_v29  ;;  %1182 = vmatpush.bf16.msra.mxu2 %v5143_v30  ;;  %v5434_v15 = vld [vmem:[#allocation7 + $0x278] sm:$0xf]  ;;  %v5243_v16 = vor.u32 %v6448_v14, %v5242_v13  ;;  %v6496_v17 = vld [vmem:[#allocation7 + $0x28c] sm:$0xf0]  ;;  %v5244_v19 = vld [vmem:[#allocation7 + $0x110] sm:$0xf0] }
  0x75   : > { %1196 = vmatpush.bf16.msra.mxu3 %v5335_v34  ;;  %v5435_v20 = vor.u32 %v6496_v17, %v5434_v15  ;;  %v5247_v21 = vor.u32 %v6445_v18, %v5244_v19  ;;  %v6493_v22 = vld [vmem:[#allocation7 + $0x27c] sm:$0xf]  ;;  %v5436_v23 = vld [vmem:[#allocation7 + $0x290] sm:$0xf0]  ;;  %v528_v24 = vsub.f32 1.0, %v527_v10  ;;  %vm2278_vm9 = vcmask 523264  }
  0x76   : > { %v5439_v25 = vor.u32 %v6493_v22, %v5436_v23  ;;  %v5218_v26 = vld [vmem:[#allocation7 + $0xc8] sm:$0xf]  ;;  %v6442_v27 = vld [vmem:[#allocation7 + $0xdc] sm:$0xf0]  ;;  %v6439_v31 = vld [vmem:[#allocation7 + $0xcc] sm:$0xf] }
  0x77   : > { %1155 = vmatpush.bf16.msra.mxu0 %v5115_v38  ;;  %v5410_v28 = vld [vmem:[#allocation7 + $0x248] sm:$0xf]  ;;  %v5219_v29 = vor.u32 %v6442_v27, %v5218_v26  ;;  %v6490_v30 = vld [vmem:[#allocation7 + $0x25c] sm:$0xf0]  ;;  %v5220_v32 = vld [vmem:[#allocation7 + $0xe0] sm:$0xf0]  ;;  %v529_v38 = vmul.f32 %v7616_v56, %v528_v24 }
  0x78   : > { %1169 = vmatpush.bf16.msra.mxu1 %v5307_v42  ;;  %1183 = vmatpush.bf16.msra.mxu2 %v5119_v43  ;;  %v5411_v33 = vor.u32 %v6490_v30, %v5410_v28  ;;  %v5223_v34 = vor.u32 %v6439_v31, %v5220_v32  ;;  %v6487_v35 = vld [vmem:[#allocation7 + $0x24c] sm:$0xf]  ;;  %v5412_v36 = vld [vmem:[#allocation7 + $0x260] sm:$0xf0]  ;;  %v5194_v39 = vld [vmem:[#allocation7 + $0x98] sm:$0xf] }
  0x79   : > { %1197 = vmatpush.bf16.msra.mxu3 %v5311_v47  ;;  %v5415_v37 = vor.u32 %v6487_v35, %v5412_v36  ;;  %v6436_v40 = vld [vmem:[#allocation7 + $0xac] sm:$0xf0]  ;;  %v5386_v41 = vld [vmem:[#allocation7 + $0x218] sm:$0xf]  ;;  %v6433_v44 = vld [vmem:[#allocation7 + $0x9c] sm:$0xf] }
  0x7a   : > { %v5195_v42 = vor.u32 %v6436_v40, %v5194_v39  ;;  %v6484_v43 = vld [vmem:[#allocation7 + $0x22c] sm:$0xf0]  ;;  %v5196_v45 = vld [vmem:[#allocation7 + $0xb0] sm:$0xf0]  ;;  %v6481_v48 = vld [vmem:[#allocation7 + $0x21c] sm:$0xf] }
  0x7b   : > { %1204 = vmatpush.bf16.msrb.mxu0 %v5291_v51  ;;  %v5387_v46 = vor.u32 %v6484_v43, %v5386_v41  ;;  %v5199_v47 = vor.u32 %v6433_v44, %v5196_v45  ;;  %v5388_v49 = vld [vmem:[#allocation7 + $0x230] sm:$0xf0]  ;;  %v530_v51 = vadd.f32 %v7616_v56, %v529_v38  ;;  %v6430_v53 = vld [vmem:[#allocation7 + $0x7c] sm:$0xf0]  ;;  %v5362_v54 = vld [vmem:[#allocation7 + $0x1e8] sm:$0xf] }
  0x7c   : > { %1218 = vmatpush.bf16.msrb.mxu1 %v5483_v52  ;;  %1232 = vmatpush.bf16.msrb.mxu2 %v5295_v57  ;;  %v5391_v50 = vor.u32 %v6481_v48, %v5388_v49  ;;  %v5170_v52 = vld [vmem:[#allocation7 + $0x68] sm:$0xf]  ;;  %v6478_v57 = vld [vmem:[#allocation7 + $0x1fc] sm:$0xf0]  ;;  %v6427_v58 = vld [vmem:[#allocation7 + $0x6c] sm:$0xf] }
  0x7d   : > { %1246 = vmatpush.bf16.msrb.mxu3 %v5487_v61  ;;  %v5171_v55 = vor.u32 %v6430_v53, %v5170_v52  ;;  %v5172_v59 = vld [vmem:[#allocation7 + $0x80] sm:$0xf0]  ;;  %v5363_v60 = vor.u32 %v6478_v57, %v5362_v54  ;;  %v7623_v4 = vsel %vm531_vm0, %v7616_v56, %v530_v51  ;;  %v6424_v7 = vld [vmem:[#allocation7 + $0x4c] sm:$0xf0]  ;;  %v5338_v8 = vld [vmem:[#allocation7 + $0x1b8] sm:$0xf] }
  0x7e   : > { %v5175_v61 = vor.u32 %v6427_v58, %v5172_v59  ;;  %v5364_v63 = vld [vmem:[#allocation7 + $0x200] sm:$0xf0]  ;;  %v6472_v10 = vld [vmem:[#allocation7 + $0x1cc] sm:$0xf0]  ;;  %v5340_v17 = vld [vmem:[#allocation7 + $0x1d0] sm:$0xf0] }
  0x7f   : > { %1205 = vmatpush.bf16.msrb.mxu0 %v5267_v62  ;;  %v6475_v62 = vld [vmem:[#allocation7 + $0x1ec] sm:$0xf]  ;;  %v5339_v14 = vor.u32 %v6472_v10, %v5338_v8  ;;  %v5314_v23 = vld [vmem:[#allocation7 + $0x188] sm:$0xf]  ;;  %v6466_v24 = vld [vmem:[#allocation7 + $0x19c] sm:$0xf0] }
  0x80   : > { %1219 = vmatpush.bf16.msrb.mxu1 %v5459_v6  ;;  %1233 = vmatpush.bf16.msrb.mxu2 %v5271_v11  ;;  %v5367_v3 = vor.u32 %v6475_v62, %v5364_v63  ;;  %v5146_v6 = vld [vmem:[#allocation7 + $0x38] sm:$0xf]  ;;  %v6421_v11 = vld [vmem:[#allocation7 + $0x3c] sm:$0xf]  ;;  %v5315_v26 = vor.u32 %v6466_v24, %v5314_v23  ;;  %v5124_v27 = vld [vmem:[#allocation7 + $0x20] sm:$0xf0] }
  0x81   : > { %1247 = vmatpush.bf16.msrb.mxu3 %v5463_v12  ;;  %v5147_v9 = vor.u32 %v6424_v7, %v5146_v6  ;;  %v5148_v12 = vld [vmem:[#allocation7 + $0x50] sm:$0xf0]  ;;  %v6463_v28 = vld [vmem:[#allocation7 + $0x18c] sm:$0xf]  ;;  %v515_v45 = vld [vmem:[#allocation5] sm:$0x3] }
  0x82   : > { %v5151_v15 = vor.u32 %v6421_v11, %v5148_v12  ;;  %v562_v49 = vperm.slane %v515_v45, 0  ;;  %v5298_v57 = vld [vmem:[#allocation7 + $0x160] sm:$0xf]  ;;  %v6461_v58 = vld [vmem:[#allocation7 + $0x174] sm:$0xf0]  ;;  %vm2389_vm10 = vcmask 130048  }
  0x83   : > { %1206 = vmatpush.bf16.msrb.mxu0 %v5243_v16  ;;  %v6469_v16 = vld [vmem:[#allocation7 + $0x1bc] sm:$0xf]  ;;  %v5490_v59 = vld [vmem:[#allocation7 + $0x2e0] sm:$0xf]  ;;  %v6506_v8 = vld [vmem:[#allocation7 + $0x2e4] sm:$0xf]  ;;  %v5299_v10 = vor.u32 %v6461_v58, %v5298_v57 }
  0x84   : > { %1220 = vmatpush.bf16.msrb.mxu1 %v5435_v20  ;;  %1234 = vmatpush.bf16.msrb.mxu2 %v5247_v21  ;;  %v5343_v56 = vor.u32 %v6469_v16, %v5340_v17  ;;  %v5122_v20 = vld [vmem:[#allocation7 + $0x8] sm:$0xf]  ;;  %v6418_v21 = vld [vmem:[#allocation7 + $0x1c] sm:$0xf0]  ;;  %v5300_v7 = vld [vmem:[#allocation7 + $0x178] sm:$0xf0] }
  0x85   : > { %1248 = vmatpush.bf16.msrb.mxu3 %v5439_v25  ;;  %v5123_v22 = vor.u32 %v6418_v21, %v5122_v20  ;;  %v6415_v25 = vld [vmem:[#allocation7 + $0xc] sm:$0xf]  ;;  %v5274_v11 = vld [vmem:[#allocation7 + $0x130] sm:$0xf]  ;;  %v6452_v16 = vld [vmem:[#allocation7 + $0x134] sm:$0xf] }
  0x86   : > { %v5127_v30 = vor.u32 %v6415_v25, %v5124_v27  ;;  %v5276_v17 = vld [vmem:[#allocation7 + $0x148] sm:$0xf0]  ;;  %v5250_v21 = vld [vmem:[#allocation7 + $0x100] sm:$0xf]  ;;  %v6446_v27 = vld [vmem:[#allocation7 + $0x104] sm:$0xf] }
  0x87   : > { %1207 = vmatpush.bf16.msrb.mxu0 %v5219_v29  ;;  %v5316_v29 = vld [vmem:[#allocation7 + $0x1a0] sm:$0xf0]  ;;  %v5279_v23 = vor.u32 %v6452_v16, %v5276_v17  ;;  %v5442_v25 = vld [vmem:[#allocation7 + $0x280] sm:$0xf]  ;;  %v5178_v58 = vld [vmem:[#allocation7 + $0x70] sm:$0xf] }
  0x88   : > { %1221 = vmatpush.bf16.msrb.mxu1 %v5411_v33  ;;  %1235 = vmatpush.bf16.msrb.mxu2 %v5223_v34  ;;  %v5319_v31 = vor.u32 %v6463_v28, %v5316_v29  ;;  %v5252_v28 = vld [vmem:[#allocation7 + $0x118] sm:$0xf0]  ;;  %v6494_v29 = vld [vmem:[#allocation7 + $0x284] sm:$0xf]  ;;  %s6734_s26 = sshll.u32 %s7445_s20, 5  ;;  %s4935_s11 = sshll.u32 %s8886_s25, 4  ;;  %s4936_s11 = int_to_ptr.vmem [resolvable:$true] %s4935_s11 }
  0x89   : > { %1249 = vmatpush.bf16.msrb.mxu3 %v5415_v37  ;;  %v5156_v16 = vld [vmem:[#allocation7 + $0x58] sm:$0xf0]  ;;  %v6470_v17 = vld [vmem:[#allocation7 + $0x1c4] sm:$0xf]  ;;  %s4934_s27 = scalar_lea.hbm %s8939_s10, %s6734_s26  ;;  %s4923_s20 = scalar_lea.sflag [#allocation4], %s7568_s12 }
  0x8a   : > { %s4937_s29 = sshll.u32 %s4934_s27, 4  ;;  %s4938_s29 = int_to_ptr.hbm [resolvable:$true] %s4937_s29 }
  0x8b   : > { %1208 = vmatpush.bf16.msrb.mxu0 %v5195_v42  ;;  %s7270_s5 = sshra.s32 %s4938_s29, 4  ;;  %s7271_s5 = int_to_ptr.hbm [resolvable:$true] %s7270_s5 }
  0x8c   : > { %1222 = vmatpush.bf16.msrb.mxu1 %v5387_v46  ;;  %1236 = vmatpush.bf16.msrb.mxu2 %v5199_v47  ;;  %s7272_s6 = scalar_lea.hbm %s7271_s5, 32  ;;  %p7277_p12 = scmp.lt.s32.totalorder %s7271_s5, %s8939_s10 }
  0x8d   : > { %1250 = vmatpush.bf16.msrb.mxu3 %v5391_v50  ;;  %v563_v50 = vperm.slane %v515_v45, 1  ;;  %v5202_v45 = vld [vmem:[#allocation7 + $0xa0] sm:$0xf]  ;;  %p7273_p1 = scmp.ne.s32.totalorder %s7271_s5, %s7272_s6 }
  0x8f   : > { %1209 = vmatpush.bf16.msrb.mxu0 %v5171_v55  ;;  %p7274_p3 = pnand %p7273_p1, %p7537_p5 }
  0x90   : > { %1223 = vmatpush.bf16.msrb.mxu1 %v5363_v60  ;;  %1237 = vmatpush.bf16.msrb.mxu2 %v5175_v61  ;;  %v6509_v60 = vld [vmem:[#allocation7 + $0x2f4] sm:$0xf0]  ;;  %v6458_v61 = vld [vmem:[#allocation7 + $0x164] sm:$0xf] }
  0x91   : > { %1251 = vmatpush.bf16.msrb.mxu3 %v5367_v3  ;;  %v5303_v12 = vor.u32 %v6458_v61, %v5300_v7  ;;  %v6476_v7 = vld [vmem:[#allocation7 + $0x1f4] sm:$0xf]  ;;  %p7275_p4 = pneg %p7274_p3 }
  0x93   : > { %1210 = vmatpush.bf16.msrb.mxu0 %v5147_v9 }
  0x94   : > { %1224 = vmatpush.bf16.msrb.mxu1 %v5339_v14  ;;  %1238 = vmatpush.bf16.msrb.mxu2 %v5151_v15  ;;  %v5466_v14 = vld [vmem:[#allocation7 + $0x2b0] sm:$0xf]  ;;  %v6503_v15 = vld [vmem:[#allocation7 + $0x2c4] sm:$0xf0] }
  0x95   : > { %1252 = vmatpush.bf16.msrb.mxu3 %v5343_v56  ;;  %v5468_v56 = vld [vmem:[#allocation7 + $0x2c8] sm:$0xf0]  ;;  %v5467_v20 = vor.u32 %v6503_v15, %v5466_v14  ;;  %v6473_v14 = vld [vmem:[#allocation7 + $0x1d4] sm:$0xf0]  ;;  %v6422_v15 = vld [vmem:[#allocation7 + $0x44] sm:$0xf] }
  0x97   : > { %1211 = vmatpush.bf16.msrb.mxu0 %v5123_v22  ;;  %v6449_v22 = vld [vmem:[#allocation7 + $0x114] sm:$0xf0] }
  0x98   : > { %1225 = vmatpush.bf16.msrb.mxu1 %v5315_v26  ;;  %1239 = vmatpush.bf16.msrb.mxu2 %v5127_v30  ;;  %v6497_v26 = vld [vmem:[#allocation7 + $0x294] sm:$0xf0]  ;;  %v5444_v30 = vld [vmem:[#allocation7 + $0x298] sm:$0xf0] }
  0x99   : > { %1253 = vmatpush.bf16.msrb.mxu3 %v5319_v31  ;;  %v5251_v31 = vor.u32 %v6449_v22, %v5250_v21  ;;  %v6419_v21 = vld [vmem:[#allocation7 + $0x24] sm:$0xf0]  ;;  %v5159_v22 = vor.u32 %v6422_v15, %v5156_v16 }
  0xce   : > { %v522_v13 = vpop.xlane.xlu0 %521 }
  0xcf   : > { %v533_v18 = vmul.f32 %v7623_v4, %v522_v13 }
  0xd1   : > { %v535_v19 = vadd.f32 1e-05, %v533_v18  ;;  %v6500_v18 = vld [vmem:[#allocation7 + $0x2b4] sm:$0xf] }
  0xd2   : > { %v5471_v24 = vor.u32 %v6500_v18, %v5468_v56  ;;  %v5348_v18 = vld [vmem:[#allocation7 + $0x1d8] sm:$0xf0] }
  0xd3   : > { %6910 = vrsqrt.f32 %v535_v19  ;;  %vm543_vm2 = vweird.f32 %v535_v19 }
  0xd6   : > { %v525_v32 = vpop.xlane.xlu0 %524 }
  0xd7   : > { %v534_v33 = vmul.f32 %v7623_v4, %v525_v32  ;;  %v5443_v32 = vor.u32 %v6497_v26, %v5442_v25  ;;  %v6467_v25 = vld [vmem:[#allocation7 + $0x1a4] sm:$0xf0]  ;;  %v6416_v26 = vld [vmem:[#allocation7 + $0x14] sm:$0xf] }
  0xd9   : > { %v6911_v34 = vpop.eup %6910  ;;  %v536_v35 = vadd.f32 1e-05, %v534_v33  ;;  %v5226_v33 = vld [vmem:[#allocation7 + $0xd0] sm:$0xf] }
  0xda   : > { %v538_v36 = vmul.f32 %v6911_v34, %v535_v19  ;;  %vm544_vm1 = vweird.f32 %v6911_v34 }
  0xdb   : > { %6912 = vrsqrt.f32 %v536_v35  ;;  %vm545_vm3 = vmor %vm543_vm2, %vm544_vm1  ;;  %vm553_vm5 = vweird.f32 %v536_v35 }
  0xdc   : > { %v539_v37 = vmul.f32 %v6911_v34, %v538_v36  ;;  %v5447_v36 = vor.u32 %v6494_v29, %v5444_v30  ;;  %v5324_v29 = vld [vmem:[#allocation7 + $0x1a8] sm:$0xf0] }
  0xde   : > { %v540_v38 = vmul.f32 0.5, %v539_v37  ;;  %v5418_v37 = vld [vmem:[#allocation7 + $0x250] sm:$0xf] }
  0xe0   : > { %v541_v39 = vsub.f32 1.5, %v540_v38  ;;  %v6491_v38 = vld [vmem:[#allocation7 + $0x264] sm:$0xf0] }
  0xe1   : > { %v6913_v40 = vpop.eup %6912 }
  0xe2   : > { %v548_v41 = vmul.f32 %v6913_v40, %v536_v35  ;;  %v542_v42 = vmul.f32 %v6911_v34, %v541_v39  ;;  %vm554_vm4 = vweird.f32 %v6913_v40  ;;  %v5255_v35 = vor.u32 %v6446_v27, %v5252_v28  ;;  %v6440_v39 = vld [vmem:[#allocation7 + $0xd4] sm:$0xf]  ;;  %v5132_v27 = vld [vmem:[#allocation7 + $0x28] sm:$0xf0] }
  0xe3   : > { %vm555_vm6 = vmor %vm553_vm5, %vm554_vm4  ;;  %v6464_v28 = vld [vmem:[#allocation7 + $0x194] sm:$0xf] }
  0xe4   : > { %v549_v43 = vmul.f32 %v6913_v40, %v548_v41  ;;  %v546_v46 = vsel %vm545_vm3, %v6911_v34, %v542_v42  ;;  %v6443_v34 = vld [vmem:[#allocation7 + $0xe4] sm:$0xf0]  ;;  %v6488_v41 = vld [vmem:[#allocation7 + $0x254] sm:$0xf]  ;;  %v5420_v42 = vld [vmem:[#allocation7 + $0x268] sm:$0xf0] }
  0xe5   : > { %v557_v51 = vmul.f32 %v546_v46, %v7597_v0  ;;  %v558_v52 = vmul.f32 %v546_v46, %v7600_v1  ;;  %v5492_v0 = vld [vmem:[#allocation7 + $0x2f8] sm:$0xf0]  ;;  %v6437_v46 = vld [vmem:[#allocation7 + $0xb4] sm:$0xf0] }
  0xe6   : > { %v550_v44 = vmul.f32 0.5, %v549_v43  ;;  %v5495_v13 = vor.u32 %v6506_v8, %v5492_v0  ;;  %v5227_v43 = vor.u32 %v6443_v34, %v5226_v33  ;;  %v5372_v8 = vld [vmem:[#allocation7 + $0x208] sm:$0xf0]  ;;  %v5327_v33 = vor.u32 %v6464_v28, %v5324_v29 }
  0xe7   : > { %v566_v62 = vmul.f32 %v562_v49, %v557_v51  ;;  %v567_v63 = vmul.f32 %v563_v50, %v558_v52  ;;  %v6434_v51 = vld [vmem:[#allocation7 + $0xa4] sm:$0xf]  ;;  %v5204_v52 = vld [vmem:[#allocation7 + $0xb8] sm:$0xf0] }
  0xe8   : > { %v551_v47 = vsub.f32 1.5, %v550_v44  ;;  %v5419_v44 = vor.u32 %v6491_v38, %v5418_v37 }
  0xea   : > { %v552_v48 = vmul.f32 %v6913_v40, %v551_v47 }
  0xec   : > { %v556_v53 = vsel %vm555_vm6, %v6913_v40, %v552_v48  ;;  %v5228_v40 = vld [vmem:[#allocation7 + $0xe8] sm:$0xf0]  ;;  %v5423_v48 = vor.u32 %v6488_v41, %v5420_v42 }
  0xed   : > { %v559_v54 = vmul.f32 %v556_v53, %v7603_v2  ;;  %v560_v55 = vmul.f32 %v556_v53, %v7610_v5  ;;  %v5491_v2 = vor.u32 %v6509_v60, %v5490_v59  ;;  %v6455_v5 = vld [vmem:[#allocation7 + $0x144] sm:$0xf0]  ;;  %v5231_v47 = vor.u32 %v6440_v39, %v5228_v40  ;;  %v6482_v53 = vld [vmem:[#allocation7 + $0x224] sm:$0xf] }
  0xee   : > { %v5275_v19 = vor.u32 %v6455_v5, %v5274_v11  ;;  %v6431_v59 = vld [vmem:[#allocation7 + $0x84] sm:$0xf0]  ;;  %v5207_v60 = vor.u32 %v6434_v51, %v5204_v52  ;;  %v6425_v11 = vld [vmem:[#allocation7 + $0x54] sm:$0xf0] }
  0xef   : > { %v568_v3 = vmul.f32 %v562_v49, %v559_v54  ;;  %v569_v6 = vmul.f32 %v563_v50, %v560_v55  ;;  %v5394_v49 = vld [vmem:[#allocation7 + $0x220] sm:$0xf]  ;;  %v6485_v50 = vld [vmem:[#allocation7 + $0x234] sm:$0xf0]  ;;  %v5396_v54 = vld [vmem:[#allocation7 + $0x238] sm:$0xf0]  ;;  %v5203_v55 = vor.u32 %v6437_v46, %v5202_v45  ;;  %v5179_v0 = vor.u32 %v6431_v59, %v5178_v58 }
  0xf0   : > { %v5395_v57 = vor.u32 %v6485_v50, %v5394_v49  ;;  %v5399_v61 = vor.u32 %v6482_v53, %v5396_v54 }
  0xf1   : > { %v7631_v9 = vpack.c.bf16 %v568_v3, %v566_v62  ;;  %v7633_v1 = vpack.c.bf16 %v569_v6, %v567_v63  ;;  %v5370_v62 = vld [vmem:[#allocation7 + $0x1f0] sm:$0xf]  ;;  %v6479_v63 = vld [vmem:[#allocation7 + $0x204] sm:$0xf0]  ;;  %v6428_v3 = vld [vmem:[#allocation7 + $0x74] sm:$0xf] }
  0xf2   : > { %v5180_v6 = vld [vmem:[#allocation7 + $0x88] sm:$0xf0] }
  0xf3   : > { %1156 = vmatmul.bf16.vlgmr.msra.gmra.mxu0 %v7631_v9  ;;  %1170 = vmatmul.bf16.vlgmr.msra.gmra.mxu1 %v7633_v1  ;;  %v5183_v5 = vor.u32 %v6428_v3, %v5180_v6 }
  0xf4   : > { %1184 = vmatmul.bf16.vlgmr.msra.gmra.mxu2 %v7631_v9  ;;  %1198 = vmatmul.bf16.vlgmr.msra.gmra.mxu3 %v7633_v1 }
  0xf5   : > { %1260 = vmatpush.bf16.msra.mxu0 %v5299_v10  ;;  %1274 = vmatpush.bf16.msra.mxu1 %v5491_v2  ;;  %v5371_v10 = vor.u32 %v6479_v63, %v5370_v62  ;;  %v5154_v2 = vld [vmem:[#allocation7 + $0x40] sm:$0xf] }
  0xf6   : > { %1288 = vmatpush.bf16.msra.mxu2 %v5303_v12  ;;  %1302 = vmatpush.bf16.msra.mxu3 %v5495_v13  ;;  %v5375_v12 = vor.u32 %v6476_v7, %v5372_v8  ;;  %v5346_v13 = vld [vmem:[#allocation7 + $0x1c0] sm:$0xf]  ;;  %v5155_v56 = vor.u32 %v6425_v11, %v5154_v2 }
  0xf9   : > { %1261 = vmatpush.bf16.msra.mxu0 %v5275_v19  ;;  %1275 = vmatpush.bf16.msra.mxu1 %v5467_v20  ;;  %v5347_v19 = vor.u32 %v6473_v14, %v5346_v13  ;;  %v5130_v20 = vld [vmem:[#allocation7 + $0x10] sm:$0xf] }
  0xfa   : > { %1289 = vmatpush.bf16.msra.mxu2 %v5279_v23  ;;  %1303 = vmatpush.bf16.msra.mxu3 %v5471_v24  ;;  %v5351_v23 = vor.u32 %v6470_v17, %v5348_v18  ;;  %v5322_v24 = vld [vmem:[#allocation7 + $0x190] sm:$0xf]  ;;  %v5131_v30 = vor.u32 %v6419_v21, %v5130_v20 }
  0xfd   : > { %1262 = vmatpush.bf16.msra.mxu0 %v5251_v31  ;;  %1276 = vmatpush.bf16.msra.mxu1 %v5443_v32  ;;  %v5323_v31 = vor.u32 %v6467_v25, %v5322_v24  ;;  %v5135_v32 = vor.u32 %v6416_v26, %v5132_v27 }
  0xfe   : > { %1290 = vmatpush.bf16.msra.mxu2 %v5255_v35  ;;  %1304 = vmatpush.bf16.msra.mxu3 %v5447_v36 }
 0x101   : > { %1263 = vmatpush.bf16.msra.mxu0 %v5227_v43  ;;  %1277 = vmatpush.bf16.msra.mxu1 %v5419_v44 }
 0x102   : > { %1291 = vmatpush.bf16.msra.mxu2 %v5231_v47  ;;  %1305 = vmatpush.bf16.msra.mxu3 %v5423_v48 }
 0x103   : > { %1212 = vmatmul.bf16.vlgmr.msrb.gmra.mxu0 %v7631_v9  ;;  %1226 = vmatmul.bf16.vlgmr.msrb.gmra.mxu1 %v7633_v1 }
 0x104   : > { %1240 = vmatmul.bf16.vlgmr.msrb.gmra.mxu2 %v7631_v9  ;;  %1254 = vmatmul.bf16.vlgmr.msrb.gmra.mxu3 %v7633_v1 }
 0x105   : > { %1264 = vmatpush.bf16.msra.mxu0 %v5203_v55  ;;  %1278 = vmatpush.bf16.msra.mxu1 %v5395_v57 }
 0x106   : > { %1292 = vmatpush.bf16.msra.mxu2 %v5207_v60  ;;  %1306 = vmatpush.bf16.msra.mxu3 %v5399_v61 }
 0x109   : > { %1265 = vmatpush.bf16.msra.mxu0 %v5179_v0  ;;  %1279 = vmatpush.bf16.msra.mxu1 %v5371_v10 }
 0x10a   : > { %1293 = vmatpush.bf16.msra.mxu2 %v5183_v5  ;;  %1307 = vmatpush.bf16.msra.mxu3 %v5375_v12 }
 0x10d   : > { %1266 = vmatpush.bf16.msra.mxu0 %v5155_v56  ;;  %1280 = vmatpush.bf16.msra.mxu1 %v5347_v19 }
 0x10e   : > { %1294 = vmatpush.bf16.msra.mxu2 %v5159_v22  ;;  %1308 = vmatpush.bf16.msra.mxu3 %v5351_v23 }
 0x111   : > { %1267 = vmatpush.bf16.msra.mxu0 %v5131_v30  ;;  %1281 = vmatpush.bf16.msra.mxu1 %v5323_v31  ;;  %v7360_v31 = vmov 1983009808  }
 0x112   : > { %1295 = vmatpush.bf16.msra.mxu2 %v5135_v32  ;;  %1309 = vmatpush.bf16.msra.mxu3 %v5327_v33  ;;  %v1342_v32 = vunpack.c.l.s4 %v7360_v31 }
 0x114   : > { %1268 = vmatmul.bf16.vlgmr.msra.gmra.mxu0 %v7631_v9  ;;  %1282 = vmatmul.bf16.vlgmr.msra.gmra.mxu1 %v7633_v1  ;;  %v7703_v33 = vunpack.c.0.s8 %v1342_v32 }
 0x115   : > { %1296 = vmatmul.bf16.vlgmr.msra.gmra.mxu2 %v7631_v9  ;;  %1310 = vmatmul.bf16.vlgmr.msra.gmra.mxu3 %v7633_v1 }
 0x170   : > { %v1157_v34 = vpop.f32.mrf.mxu0  ;;  %v1171_v35 = vpop.f32.mrf.mxu1 }
 0x171   : > { %v1172_v36 = vadd.f32 %v1171_v35, %v1157_v34  ;;  %v7361_v35 = vmov 1934713408  }
 0x173   : > { %1322 = vrot.lane.b32.xlu0 %v1172_v36, %s7359_s3  ;;  %v1339_v39 = vrot.slane %v1172_v36, 4 }
 0x177   : > { %v1185_v37 = vpop.f32.mrf.mxu2  ;;  %v1199_v38 = vpop.f32.mrf.mxu3 }
 0x178   : > { %v1200_v40 = vadd.f32 %v1199_v38, %v1185_v37  ;;  %v1159_v41 = vpop.f32.mrf.mxu0  ;;  %v1173_v42 = vpop.f32.mrf.mxu1 }
 0x179   : > { %v1174_v43 = vadd.f32 %v1173_v42, %v1159_v41 }
 0x17a   : > { %v1336_v44 = vrot.slane %v1200_v40, 4  ;;  %v7649_v45 = vsel %vm1337_vm7, %v1200_v40, %v1339_v39  ;;  %1330 = vrot.lane.b32.xlu2 %v1200_v40, %s7359_s3 }
 0x17b   : > { %1324 = vrot.lane.b32.xlu1 %v1174_v43, %s7359_s3  ;;  %v1395_v47 = vrot.slane %v1174_v43, 4  ;;  %v1348_v39 = vperm.slane %v7649_v45, %v7703_v33 }
 0x17c   : > { %v1338_v9 = vsel %vm1337_vm7, %v1336_v44, %v1172_v36  ;;  %v1366_v36 = vunpack.c.l.s4 %v7361_v35 }
 0x17d   : > { %v1344_v37 = vperm.slane %v1338_v9, %v7703_v33 }
 0x17e   : > { %v7708_v41 = vunpack.c.0.s8 %v1366_v36 }
 0x17f   : > { %v1187_v1 = vpop.f32.mrf.mxu2  ;;  %v1201_v46 = vpop.f32.mrf.mxu3 }
 0x180   : > { %v1202_v48 = vadd.f32 %v1201_v46, %v1187_v1  ;;  %v1213_v49 = vpop.f32.mrf.mxu0  ;;  %v1227_v50 = vpop.f32.mrf.mxu1  ;;  %v1363_v1 = vrot.slane %v1344_v37, 4 }
 0x181   : > { %v1228_v54 = vadd.f32 %v1227_v50, %v1213_v49 }
 0x182   : > { %v1393_v51 = vrot.slane %v1202_v48, 4  ;;  %v7655_v52 = vsel %vm1337_vm7, %v1202_v48, %v1395_v47  ;;  %v1375_v47 = vrot.slane %v1348_v39, 4 }
 0x183   : > { %1332 = vrot.lane.b32.xlu1 %v1202_v48, %s7359_s3  ;;  %v1692_v58 = vrot.slane %v1228_v54, 4 }
 0x184   : > { %v7659_v53 = vsel %vm1337_vm7, %v1393_v51, %v1174_v43 }
 0x187   : > { %v1241_v55 = vpop.f32.mrf.mxu2  ;;  %v1255_v57 = vpop.f32.mrf.mxu3 }
 0x188   : > { %v1256_v59 = vadd.f32 %v1255_v57, %v1241_v55  ;;  %v1215_v60 = vpop.f32.mrf.mxu0  ;;  %v1229_v61 = vpop.f32.mrf.mxu1 }
 0x189   : > { %v1230_v6 = vadd.f32 %v1229_v61, %v1215_v60  ;;  %v7724_v60 = vperm.slane %v7659_v53, %v7703_v33  ;;  %v1404_v61 = vperm.slane %v7655_v52, %v7703_v33 }
 0x18a   : > { %v1690_v62 = vrot.slane %v1256_v59, 4  ;;  %v7662_v63 = vsel %vm1337_vm7, %v1256_v59, %v1692_v58  ;;  %1684 = vrot.lane.b32.xlu2 %v1256_v59, %s7359_s3 }
 0x18b   : > { %1676 = vrot.lane.b32.xlu1 %v1228_v54, %s7359_s3  ;;  %v1748_v0 = vrot.slane %v1230_v6, 4  ;;  %v1431_v31 = vrot.slane %v1404_v61, 4 }
 0x18c   : > { %v7667_v3 = vsel %vm1337_vm7, %v1690_v62, %v1228_v54  ;;  %v7730_v62 = vperm.slane %v7662_v63, %v7703_v33 }
 0x18d   : > { %v7737_v53 = vperm.slane %v7667_v3, %v7703_v33 }
 0x18f   : > { %v1243_v7 = vpop.f32.mrf.mxu2  ;;  %v1257_v8 = vpop.f32.mrf.mxu3 }
 0x190   : > { %v1258_v10 = vadd.f32 %v1257_v8, %v1243_v7 }
 0x191   : > { %v1269_v2 = vpop.f32.mrf.mxu0  ;;  %v1283_v11 = vpop.f32.mrf.mxu1 }
 0x192   : > { %v1746_v5 = vrot.slane %v1258_v10, 4  ;;  %v1749_v12 = vsel %vm1337_vm7, %v1258_v10, %v1748_v0  ;;  %1686 = vrot.lane.b32.xlu2 %v1258_v10, %s7359_s3  ;;  %v7675_v14 = vadd.f32 %v1283_v11, %v1269_v2 }
 0x193   : > { %1678 = vrot.lane.b32.xlu1 %v1230_v6, %s7359_s3  ;;  %v7740_v11 = vperm.slane %v1749_v12, %v7703_v33 }
 0x194   : > { %v7673_v13 = vsel %vm1337_vm7, %v1746_v5, %v1230_v6  ;;  %v2040_v17 = vrot.slane %v7675_v14, 4 }
 0x198   : > { %v1297_v15 = vpop.f32.mrf.mxu2  ;;  %v1311_v16 = vpop.f32.mrf.mxu3 }
 0x199   : > { %v7678_v18 = vadd.f32 %v1311_v16, %v1297_v15  ;;  %v1271_v56 = vpop.f32.mrf.mxu0  ;;  %v1285_v19 = vpop.f32.mrf.mxu1 }
 0x19a   : > { %v7689_v23 = vadd.f32 %v1285_v19, %v1271_v56  ;;  %v7748_v56 = vperm.slane %v7673_v13, %v7703_v33 }
 0x19b   : > { %v2038_v20 = vrot.slane %v7678_v18, 4  ;;  %v7683_v21 = vsel %vm1337_vm7, %v7678_v18, %v2040_v17 }
 0x19c   : > { %v2096_v26 = vrot.slane %v7689_v23, 4 }
 0x19d   : > { %v7687_v22 = vsel %vm1337_vm7, %v2038_v20, %v7675_v14 }
 0x1a0   : > { %v1299_v24 = vpop.f32.mrf.mxu2  ;;  %v1313_v25 = vpop.f32.mrf.mxu3 }
 0x1a1   : > { %v7692_v27 = vadd.f32 %v1313_v25, %v1299_v24 }
 0x1a3   : > { %v2094_v28 = vrot.slane %v7692_v27, 4  ;;  %v7697_v29 = vsel %vm1337_vm7, %v7692_v27, %v2096_v26 }
 0x1a5   : > { %v7701_v30 = vsel %vm1337_vm7, %v2094_v28, %v7689_v23  ;;  %v1419_v28 = vrot.slane %v7724_v60, 4 }
 0x1d4   : > { %v1331_v34 = vpop.permute.xlu2 %1330 }
 0x1d5   : > { %v1349_v38 = vrot.slane %v1331_v34, 4 }
 0x1e4   : > { %v7716_v45 = vpop.permute.xlu2 %1684 }
 0x1e5   : > { %v1323_v40 = vpop.permute.xlu0 %1322 }
 0x1e6   : > { %v1350_v42 = vsel %vm1337_vm7, %v1349_v38, %v1323_v40  ;;  %v1351_v43 = vrot.slane %v1323_v40, 4  ;;  %v1728_v38 = vrot.slane %v7730_v62, 4 }
 0x1e7   : > { %v1356_v44 = vperm.slane %v1350_v42, %v7703_v33 }
 0x1e8   : > { %v1352_v46 = vsel %vm1337_vm7, %v1331_v34, %v1351_v43 }
 0x1e9   : > { %v1360_v48 = vperm.slane %v1352_v46, %v7703_v33  ;;  %v1361_v49 = vrot.slane %v1356_v44, 4  ;;  %v1364_v9 = vsel %vm1337_vm7, %v1356_v44, %v1363_v1  ;;  %v1716_v44 = vrot.slane %v7737_v53, 4 }
 0x1ea   : > { %v1372_v50 = vperm.slane %v1364_v9, %v7708_v41 }
 0x1eb   : > { %v1362_v51 = vsel %vm1337_vm7, %v1361_v49, %v1344_v37  ;;  %v1373_v54 = vrot.slane %v1360_v48, 4  ;;  %v1376_v55 = vsel %vm1337_vm7, %v1360_v48, %v1375_v47  ;;  %v1772_v48 = vrot.slane %v7748_v56, 4 }
 0x1ec   : > { %v1368_v57 = vperm.slane %v1362_v51, %v7708_v41  ;;  %v1384_v58 = vperm.slane %v1376_v55, %v7708_v41  ;;  %v1387_v59 = vrot.slane %v1372_v50, 4  ;;  %v7761_v40 = vpop.permute.xlu2 %1686  ;;  %v1702_v49 = vrot.slane %v7716_v45, 4 }
 0x1ed   : > { %v1374_v6 = vsel %vm1337_vm7, %v1373_v54, %v1348_v39  ;;  %v1325_v7 = vpop.permute.xlu1 %1324  ;;  %v1784_v39 = vrot.slane %v7740_v11, 4  ;;  %v1758_v54 = vrot.slane %v7761_v40, 4 }
 0x1ee   : > { %v1380_v8 = vperm.slane %v1374_v6, %v7708_v41  ;;  %v1385_v0 = vrot.slane %v1368_v57, 4  ;;  %v1388_v10 = vsel %vm1337_vm7, 0.0, %v1387_v59  ;;  %v1391_v2 = vrot.slane %v1384_v58, 4 }
 0x1ef   : > { %v1449_v52 = vsel %vm1337_vm7, %v1387_v59, %v1368_v57  ;;  %v1454_v63 = vrot.slane %v1388_v10, 4  ;;  %v1407_v32 = vrot.slane %v1325_v7, 4 }
 0x1f0   : > { %v1386_v5 = vsel %vm1337_vm7, 0.0, %v1385_v0  ;;  %v1389_v15 = vrot.slane %v1380_v8, 4  ;;  %v1392_v16 = vsel %vm1337_vm7, 0.0, %v1391_v2  ;;  %v1453_v17 = vperm.slane %v1449_v52, %v7703_v33 }
 0x1f1   : > { %v1455_v3 = vsel %vm1337_vm7, %v1454_v63, %v1386_v5  ;;  %v1460_v19 = vsel %vm1337_vm7, %v1391_v2, %v1380_v8  ;;  %v1465_v12 = vrot.slane %v1392_v16, 4 }
 0x1f2   : > { %v1390_v20 = vsel %vm1337_vm7, 0.0, %v1389_v15  ;;  %v1459_v24 = vperm.slane %v1455_v3, %v7703_v33  ;;  %v1473_v25 = vrot.slane %v1453_v17, 4  ;;  %v1464_v26 = vperm.slane %v1460_v19, %v7703_v33 }
 0x1f3   : > { %v1466_v34 = vsel %vm1337_vm7, %v1465_v12, %v1390_v20 }
 0x1f4   : > { %v1470_v13 = vperm.slane %v1466_v34, %v7703_v33  ;;  %v1474_v35 = vsel %vm1337_vm7, %v1459_v24, %v1473_v25  ;;  %v1485_v36 = vrot.slane %v1464_v26, 4  ;;  %v1471_v37 = vrot.slane %v1459_v24, 4 }
 0x1f5   : > { %v1333_v42 = vpop.permute.xlu1 %1332  ;;  %v1482_v43 = vperm.slane %v1474_v35, %v7708_v41 }
 0x1f6   : > { %v1405_v1 = vrot.slane %v1333_v42, 4  ;;  %v1408_v46 = vsel %vm1337_vm7, %v1333_v42, %v1407_v32  ;;  %v1486_v47 = vsel %vm1337_vm7, %v1470_v13, %v1485_v36  ;;  %v1472_v57 = vsel %vm1337_vm7, %v1471_v37, %v1453_v17 }
 0x1f7   : > { %v1416_v9 = vperm.slane %v1408_v46, %v7703_v33  ;;  %v1494_v50 = vperm.slane %v1486_v47, %v7708_v41  ;;  %v1501_v51 = vrot.slane %v1482_v43, 4  ;;  %v1483_v58 = vrot.slane %v1470_v13, 4 }
 0x1f8   : > { %v1406_v55 = vsel %vm1337_vm7, %v1405_v1, %v1325_v7  ;;  %v7799_v25 = vperm.slane %v1472_v57, %v7708_v41 }
 0x1f9   : > { %v1412_v59 = vperm.slane %v1406_v55, %v7703_v33  ;;  %v1429_v6 = vrot.slane %v1416_v9, 4  ;;  %v1432_v8 = vsel %vm1337_vm7, %v1416_v9, %v1431_v31  ;;  %v7777_v0 = vsel %vm1337_vm7, %v1494_v50, %v1501_v51 }
 0x1fa   : > { %v1440_v10 = vperm.slane %v1432_v8, %v7708_v41  ;;  %v1563_v2 = vsub.f32 0.0, %v7777_v0  ;;  %v1499_v52 = vrot.slane %v1494_v50, 4  ;;  %v1484_v63 = vsel %vm1337_vm7, %v1483_v58, %v1464_v26 }
 0x1fb   : > { %v1417_v5 = vrot.slane %v1412_v59, 4  ;;  %v1420_v7 = vsel %vm1337_vm7, %v1412_v59, %v1419_v28  ;;  %v1430_v15 = vsel %vm1337_vm7, %v1429_v6, %v1404_v61  ;;  %v7785_v16 = vperm.slane %v1484_v63, %v7708_v41 }
 0x1fc   : > { %v1428_v17 = vperm.slane %v1420_v7, %v7708_v41  ;;  %v1436_v3 = vperm.slane %v1430_v15, %v7708_v41  ;;  %v1447_v19 = vrot.slane %v1440_v10, 4  ;;  %1585 = vrot.lane.b32.xlu0 %v1563_v2, %s7362_s21  ;;  %v7791_v12 = vsel %vm1337_vm7, %v1499_v52, %v1482_v43 }
 0x1fd   : > { %v1418_v20 = vsel %vm1337_vm7, %v1417_v5, %v7724_v60  ;;  %1613 = vrot.lane.b32.xlu1 %v7791_v12, %s7363_s19  ;;  %v1677_v61 = vpop.permute.xlu1 %1676  ;;  %v1561_v24 = vsub.f32 0.0, %v7791_v12  ;;  %v1495_v26 = vrot.slane %v7785_v16, 4 }
 0x1fe   : > { %v1424_v28 = vperm.slane %v1418_v20, %v7708_v41  ;;  %v1443_v31 = vrot.slane %v1428_v17, 4  ;;  %v1445_v32 = vrot.slane %v1436_v3, 4  ;;  %v1448_v34 = vsel %vm1337_vm7, 0.0, %v1447_v19 }
 0x1ff   : > { %v1514_v60 = vsel %vm1337_vm7, %v1447_v19, %v1436_v3  ;;  %v1519_v13 = vrot.slane %v1448_v34, 4  ;;  %v1703_v35 = vsel %vm1337_vm7, %v1702_v49, %v1677_v61  ;;  %v1704_v36 = vrot.slane %v1677_v61, 4  ;;  %1581 = vrot.lane.b32.xlu2 %v1561_v24, %s7362_s21 }
 0x200   : > { %v1441_v37 = vrot.slane %v1424_v28, 4  ;;  %v1444_v42 = vsel %vm1337_vm7, 0.0, %v1443_v31  ;;  %v1446_v43 = vsel %vm1337_vm7, 0.0, %v1445_v32  ;;  %v1503_v1 = vsel %vm1337_vm7, %v1443_v31, %v1424_v28 }
 0x201   : > { %v1508_v46 = vrot.slane %v1444_v42, 4  ;;  %v7811_v47 = vperm.slane %v1514_v60, %v7703_v33  ;;  %v1520_v9 = vsel %vm1337_vm7, %v1519_v13, %v1446_v43  ;;  %v1705_v50 = vsel %vm1337_vm7, %v7716_v45, %v1704_v36 }
 0x202   : > { %v1442_v49 = vsel %vm1337_vm7, 0.0, %v1441_v37  ;;  %v7818_v51 = vperm.slane %v1520_v9, %v7703_v33  ;;  %v1709_v55 = vperm.slane %v1703_v35, %v7703_v33  ;;  %v1713_v57 = vperm.slane %v1705_v50, %v7703_v33 }
 0x203   : > { %v1539_v58 = vrot.slane %v7811_v47, 4  ;;  %v7825_v59 = vsel %vm1337_vm7, %v1495_v26, %v7799_v25  ;;  %v1507_v6 = vperm.slane %v1503_v1, %v7703_v33  ;;  %v1509_v8 = vsel %vm1337_vm7, %v1508_v46, %v1442_v49 }
 0x204   : > { %v1714_v45 = vrot.slane %v1709_v55, 4  ;;  %v1717_v10 = vsel %vm1337_vm7, %v1709_v55, %v1716_v44  ;;  %v1726_v2 = vrot.slane %v1713_v57, 4  ;;  %v1729_v52 = vsel %vm1337_vm7, %v1713_v57, %v1728_v38 }
 0x205   : > { %v1725_v63 = vperm.slane %v1717_v10, %v7708_v41  ;;  %v1737_v5 = vperm.slane %v1729_v52, %v7708_v41  ;;  %v1557_v7 = vsub.f32 0.0, %v7825_v59  ;;  %v1679_v15 = vpop.permute.xlu1 %1678  ;;  %v1513_v17 = vperm.slane %v1509_v8, %v7703_v33 }
 0x206   : > { %v1715_v3 = vsel %vm1337_vm7, %v1714_v45, %v7737_v53  ;;  %v1727_v44 = vsel %vm1337_vm7, %v1726_v2, %v7730_v62  ;;  %v1759_v19 = vsel %vm1337_vm7, %v1758_v54, %v1679_v15  ;;  %v1760_v38 = vrot.slane %v1679_v15, 4 }
 0x207   : > { %v1721_v20 = vperm.slane %v1715_v3, %v7708_v41  ;;  %v1733_v61 = vperm.slane %v1727_v44, %v7708_v41  ;;  %v1740_v24 = vrot.slane %v1725_v63, 4  ;;  %v1744_v26 = vrot.slane %v1737_v5, 4  ;;  %1573 = vrot.lane.b32.xlu0 %v1557_v7, %s7362_s21  ;;  %1617 = vrot.lane.b32.xlu2 %v7777_v0, %s7363_s19 }
 0x208   : > { %v1761_v53 = vsel %vm1337_vm7, %v7761_v40, %v1760_v38  ;;  %v1765_v62 = vperm.slane %v1759_v19, %v7703_v33  ;;  %v1527_v28 = vrot.slane %v1507_v6, 4  ;;  %v1540_v54 = vsel %vm1337_vm7, %v7818_v51, %v1539_v58 }
 0x209   : > { %v1738_v31 = vrot.slane %v1721_v20, 4  ;;  %v1741_v32 = vsel %vm1337_vm7, 0.0, %v1740_v24  ;;  %v1742_v34 = vrot.slane %v1733_v61, 4  ;;  %v1745_v60 = vsel %vm1337_vm7, 0.0, %v1744_v26 }
 0x20a   : > { %v1802_v13 = vsel %vm1337_vm7, %v1740_v24, %v1721_v20  ;;  %v1807_v35 = vrot.slane %v1741_v32, 4  ;;  %v1818_v36 = vrot.slane %v1745_v60, 4  ;;  %v1769_v37 = vperm.slane %v1761_v53, %v7703_v33 }
 0x20b   : > { %v1739_v40 = vsel %vm1337_vm7, 0.0, %v1738_v31  ;;  %v1806_v42 = vperm.slane %v1802_v13, %v7703_v33  ;;  %v1770_v43 = vrot.slane %v1765_v62, 4  ;;  %v1773_v1 = vsel %vm1337_vm7, %v1765_v62, %v1772_v48 }
 0x20c   : > { %v1781_v46 = vperm.slane %v1773_v1, %v7708_v41  ;;  %v1782_v9 = vrot.slane %v1769_v37, 4  ;;  %v1785_v50 = vsel %vm1337_vm7, %v1769_v37, %v1784_v39  ;;  %v1528_v49 = vsel %vm1337_vm7, %v1513_v17, %v1527_v28 }
 0x20d   : > { %v1771_v55 = vsel %vm1337_vm7, %v1770_v43, %v7748_v56  ;;  %v1793_v57 = vperm.slane %v1785_v50, %v7708_v41  ;;  %v1536_v58 = vperm.slane %v1528_v49, %v7708_v41  ;;  %v1548_v8 = vperm.slane %v1540_v54, %v7708_v41 }
 0x20e   : > { %v1777_v48 = vperm.slane %v1771_v55, %v7708_v41  ;;  %v1783_v45 = vsel %vm1337_vm7, %v1782_v9, %v7740_v11  ;;  %v1796_v10 = vrot.slane %v1781_v46, 4  ;;  %v1525_v2 = vrot.slane %v1513_v17, 4 }
 0x20f   : > { %v1789_v39 = vperm.slane %v1783_v45, %v7708_v41  ;;  %v1800_v52 = vrot.slane %v1793_v57, 4  ;;  %v1553_v63 = vrot.slane %v1548_v8, 4  ;;  %1605 = vrot.lane.b32.xlu2 %v7825_v59, %s7363_s19  ;;  %v1555_v56 = vrot.slane %v1536_v58, 4 }
 0x210   : > { %v1794_v5 = vrot.slane %v1777_v48, 4  ;;  %v1797_v7 = vsel %vm1337_vm7, 0.0, %v1796_v10  ;;  %v1856_v15 = vsel %vm1337_vm7, %v1796_v10, %v1777_v48  ;;  %v1526_v3 = vsel %vm1337_vm7, %v1525_v2, %v1507_v6 }
 0x211   : > { %v1798_v44 = vrot.slane %v1789_v39, 4  ;;  %v1801_v11 = vsel %vm1337_vm7, 0.0, %v1800_v52  ;;  %v1861_v19 = vrot.slane %v1797_v7, 4  ;;  %v7886_v17 = vsel %vm1337_vm7, %v1553_v63, %v1536_v58 }
 0x212   : > { %v1795_v38 = vsel %vm1337_vm7, 0.0, %v1794_v5  ;;  %v1872_v20 = vrot.slane %v1801_v11, 4  ;;  %v1562_v24 = vsub.f32 0.0, %v7886_v17  ;;  %v7891_v53 = vsel %vm1337_vm7, %v1548_v8, %v1555_v56 }
 0x213   : > { %v1564_v62 = vsub.f32 0.0, %v7891_v53  ;;  %v7895_v28 = vperm.slane %v1526_v3, %v7708_v41  ;;  %v1537_v6 = vrot.slane %v7818_v51, 4  ;;  %v1743_v54 = vsel %vm1337_vm7, 0.0, %v1742_v34 }
 0x214   : > { %1583 = vrot.lane.b32.xlu0 %v1562_v24, %s7362_s21  ;;  %v1808_v31 = vsel %vm1337_vm7, %v1807_v35, %v1739_v40  ;;  %v1813_v32 = vsel %vm1337_vm7, %v1744_v26, %v1733_v61  ;;  %v1819_v60 = vsel %vm1337_vm7, %v1818_v36, %v1743_v54  ;;  %v1826_v13 = vrot.slane %v1806_v42, 4 }
 0x215   : > { %1587 = vrot.lane.b32.xlu1 %v1564_v62, %s7362_s21  ;;  %v1538_v37 = vsel %vm1337_vm7, %v1537_v6, %v7811_v47  ;;  %v1812_v43 = vperm.slane %v1808_v31, %v7703_v33  ;;  %v1817_v51 = vperm.slane %v1813_v32, %v7703_v33  ;;  %v1823_v34 = vperm.slane %v1819_v60, %v7703_v33 }
 0x216   : > { %v1544_v1 = vperm.slane %v1538_v37, %v7708_v41  ;;  %v1799_v35 = vsel %vm1337_vm7, 0.0, %v1798_v44  ;;  %v1860_v61 = vperm.slane %v1856_v15, %v7703_v33  ;;  %v1862_v26 = vsel %vm1337_vm7, %v1861_v19, %v1795_v38 }
 0x217   : > { %1615 = vrot.lane.b32.xlu2 %v7886_v17, %s7363_s19  ;;  %v1827_v36 = vsel %vm1337_vm7, %v1812_v43, %v1826_v13  ;;  %v1838_v47 = vrot.slane %v1817_v51, 4  ;;  %v1824_v40 = vrot.slane %v1812_v43, 4  ;;  %v1836_v46 = vrot.slane %v1823_v34, 4 }
 0x218   : > { %v1549_v9 = vrot.slane %v1544_v1, 4  ;;  %v1835_v50 = vperm.slane %v1827_v36, %v7708_v41  ;;  %v1866_v49 = vperm.slane %v1862_v26, %v7703_v33  ;;  %v1867_v55 = vsel %vm1337_vm7, %v1800_v52, %v1789_v39 }
 0x219   : > { %v1839_v57 = vsel %vm1337_vm7, %v1823_v34, %v1838_v47  ;;  %v1825_v58 = vsel %vm1337_vm7, %v1824_v40, %v1806_v42  ;;  %v1837_v8 = vsel %vm1337_vm7, %v1836_v46, %v1817_v51  ;;  %v1871_v48 = vperm.slane %v1867_v55, %v7703_v33 }
 0x21a   : > { %v7925_v45 = vsel %vm1337_vm7, %v1549_v9, %v7895_v28  ;;  %v1847_v10 = vperm.slane %v1839_v57, %v7708_v41  ;;  %v1854_v2 = vrot.slane %v1835_v50, 4  ;;  %v1831_v63 = vperm.slane %v1825_v58, %v7708_v41 }
 0x21b   : > { %v1558_v56 = vsub.f32 0.0, %v7925_v45  ;;  %v1843_v39 = vperm.slane %v1837_v8, %v7708_v41  ;;  %v1873_v52 = vsel %vm1337_vm7, %v1872_v20, %v1799_v35  ;;  %v1878_v44 = vrot.slane %v1866_v49, 4 }
 0x21c   : > { %1619 = vrot.lane.b32.xlu0 %v7891_v53, %s7363_s19  ;;  %v7935_v42 = vsel %vm1337_vm7, %v1847_v10, %v1854_v2  ;;  %v1852_v5 = vrot.slane %v1847_v10, 4  ;;  %v1850_v7 = vrot.slane %v1831_v63, 4  ;;  %v1877_v15 = vperm.slane %v1873_v52, %v7703_v33  ;;  %v6736_v52 = vld [vmem:[#allocation13] sm:$0xff]  }
 0x21d   : > { %1575 = vrot.lane.b32.xlu1 %v1558_v56, %s7362_s21  ;;  %v1848_v3 = vrot.slane %v1843_v39, 4  ;;  %v1880_v11 = vrot.slane %v1860_v61, 4  ;;  %v1892_v20 = vrot.slane %v1871_v48, 4  ;;  %v1879_v60 = vsel %vm1337_vm7, %v1878_v44, %v1860_v61 }
 0x21e   : > { %v7940_v19 = vsel %vm1337_vm7, %v1852_v5, %v1835_v50  ;;  %v1890_v38 = vrot.slane %v1877_v15, 4  ;;  %v7943_v24 = vsel %vm1337_vm7, %v1843_v39, %v1850_v7  ;;  %v1885_v43 = vperm.slane %v1879_v60, %v7708_v41  ;;  %v6740_v7 = vld [vmem:[#allocation14] sm:$0xff]  }
 0x21f   : > { %1966 = vrot.lane.b32.xlu2 %v7940_v19, %s7363_s19  ;;  %v7948_v62 = vsel %vm1337_vm7, %v1848_v3, %v1831_v63  ;;  %v1881_v6 = vsel %vm1337_vm7, %v1866_v49, %v1880_v11  ;;  %v1893_v31 = vsel %vm1337_vm7, %v1877_v15, %v1892_v20  ;;  %v1497_v34 = vrot.slane %v7799_v25, 4 }
 0x220   : > { %v1889_v54 = vperm.slane %v1881_v6, %v7708_v41  ;;  %v1901_v32 = vperm.slane %v1893_v31, %v7708_v41  ;;  %v1891_v13 = vsel %vm1337_vm7, %v1890_v38, %v1871_v48  ;;  %v1916_v35 = vsub.f32 0.0, %v7935_v42 }
 0x221   : > { %v1897_v51 = vperm.slane %v1891_v13, %v7708_v41  ;;  %v1551_v36 = vrot.slane %v7895_v28, 4  ;;  %v1904_v61 = vrot.slane %v1885_v43, 4  ;;  %v7968_v46 = vsel %vm1337_vm7, %v7785_v16, %v1497_v34 }
 0x222   : > { %v1908_v37 = vrot.slane %v1889_v54, 4  ;;  %v1906_v26 = vrot.slane %v1901_v32, 4  ;;  %v1914_v25 = vsub.f32 0.0, %v7940_v19  ;;  %v1910_v16 = vsub.f32 0.0, %v7948_v62 }
 0x223   : > { %v1902_v40 = vrot.slane %v1897_v51, 4  ;;  %v7976_v28 = vsel %vm1337_vm7, %v1544_v1, %v1551_v36  ;;  %v7979_v50 = vsel %vm1337_vm7, %v1897_v51, %v1904_v61  ;;  %v1912_v55 = vsub.f32 0.0, %v7943_v24 }
 0x224   : > { %1970 = vrot.lane.b32.xlu0 %v7935_v42, %s7363_s19  ;;  %v7964_v47 = vsel %vm1337_vm7, %v1901_v32, %v1908_v37  ;;  %v7973_v9 = vsel %vm1337_vm7, %v1906_v26, %v1889_v54  ;;  %v1913_v8 = vsub.f32 0.0, %v7979_v50  ;;  %v1560_v48 = vsub.f32 0.0, %v7976_v28 }
 0x225   : > { %1938 = vrot.lane.b32.xlu1 %v1916_v35, %s7362_s21  ;;  %v7982_v49 = vsel %vm1337_vm7, %v1902_v40, %v1885_v43  ;;  %v1917_v1 = vsub.f32 0.0, %v7964_v47  ;;  %v1915_v57 = vsub.f32 0.0, %v7973_v9  ;;  %v6893_v10 = vpack.i.bf16 %v7692_v27, %v7678_v18 }
 0x226   : > { %v1911_v58 = vsub.f32 0.0, %v7982_v49  ;;  %v1559_v2 = vsub.f32 0.0, %v7968_v46  ;;  %v6888_v63 = vpack.i.bf16 %v7689_v23, %v7675_v14  ;;  %v8025_v18 = vunpack.c.l.bf16 %v6736_v52 }
 0x227   : > { %1934 = vrot.lane.b32.xlu2 %v1914_v25, %s7362_s21  ;;  %v8027_v27 = vunpack.c.l.bf16 %v6740_v7  ;;  %v8041_v34 = vunpack.c.h.bf16 %v6736_v52  ;;  %v8043_v35 = vunpack.c.h.bf16 %v6740_v7 }
 0x228   : > { %v1646_v14 = vmul.f32 %v8025_v18, %v7777_v0  ;;  %v1644_v38 = vmul.f32 %v8025_v18, %v7791_v12  ;;  %v1640_v37 = vmul.f32 %v8025_v18, %v7825_v59 }
 0x229   : > { %v1645_v61 = vmul.f32 %v8041_v34, %v7886_v17  ;;  %v1647_v17 = vmul.f32 %v8041_v34, %v7891_v53 }
 0x22c   : > { %1958 = vrot.lane.b32.xlu0 %v7948_v62, %s7363_s19 }
 0x22d   : > { %1926 = vrot.lane.b32.xlu1 %v1910_v16, %s7362_s21 }
 0x22f   : > { %1930 = vrot.lane.b32.xlu2 %v1912_v55, %s7362_s21 }
 0x234   : > { %1968 = vrot.lane.b32.xlu0 %v7973_v9, %s7363_s19 }
 0x235   : > { %1962 = vrot.lane.b32.xlu1 %v7943_v24, %s7363_s19 }
 0x237   : > { %1940 = vrot.lane.b32.xlu2 %v1917_v1, %s7362_s21 }
 0x23c   : > { %1607 = vrot.lane.b32.xlu0 %v7925_v45, %s7363_s19 }
 0x23d   : > { %1936 = vrot.lane.b32.xlu1 %v1915_v57, %s7362_s21 }
 0x23f   : > { %1928 = vrot.lane.b32.xlu2 %v1911_v58, %s7362_s21 }
 0x244   : > { %1932 = vrot.lane.b32.xlu0 %v1913_v8, %s7362_s21 }
 0x245   : > { %1972 = vrot.lane.b32.xlu1 %v7964_v47, %s7363_s19 }
 0x247   : > { %1964 = vrot.lane.b32.xlu2 %v7979_v50, %s7363_s19 }
 0x24c   : > { %1609 = vrot.lane.b32.xlu0 %v7968_v46, %s7363_s19 }
 0x24d   : > { %1960 = vrot.lane.b32.xlu1 %v7982_v49, %s7363_s19 }
 0x24f   : > { %1579 = vrot.lane.b32.xlu2 %v1560_v48, %s7362_s21 }
 0x254   : > { %6894 = vrot.lane.b32.xlu0 %v6893_v10, %s7359_s3 }
 0x255   : > { %1577 = vrot.lane.b32.xlu1 %v1559_v2, %s7362_s21  ;;  %s7276_s21 = scalar_lea.hbm %s8939_s10, 64 }
 0x256   : > { %p7278_p7 = scmp.lt.s32.totalorder %s7276_s21, %s7272_s6 }
 0x257   : > { %6889 = vrot.lane.b32.xlu2 %v6888_v63, %s7359_s3 }
 0x258   : > { %p7279_p8 = por %p7278_p7, %p7277_p12 }
 0x259   : > { %v1582_v56 = vpop.permute.xlu2 %1581 }
 0x25a   : > { %p7280_p9 = pnand %p7279_p8, %p7275_p4 }
 0x25d   : > { %1611 = vrot.lane.b32.xlu1 %v7976_v28, %s7363_s19 }
 0x261   : > { %v1618_v39 = vpop.permute.xlu2 %1617 }
 0x269   : > { %v1606_v5 = vpop.permute.xlu2 %1605 }
 0x26e   : > { %v1586_v15 = vpop.permute.xlu0 %1585 }
 0x26f   : > { %v1636_v3 = vsel %vm1629_vm8, %v1586_v15, %v1618_v39  ;;  %v1614_v44 = vpop.permute.xlu1 %1613 }
 0x270   : > { %v1656_v23 = vmul.f32 %v8027_v27, %v1636_v3  ;;  %v1634_v11 = vsel %vm1629_vm8, %v1582_v56, %v1614_v44 }
 0x271   : > { %v1654_v20 = vmul.f32 %v8027_v27, %v1634_v11  ;;  %v1616_v6 = vpop.permute.xlu2 %1615 }
 0x272   : > { %v1664_v54 = vadd.f32 %v1656_v23, %v1646_v14 }
 0x273   : > { %v1662_v31 = vadd.f32 %v1654_v20, %v1644_v38 }
 0x274   : > { %v1672_v63 = vpack.c.bf16 %v1664_v54, %v1664_v54 }
 0x275   : > { %v1670_v25 = vpack.c.bf16 %v1662_v31, %v1662_v31  ;;  %v1994_v31 = vmul.f32 %v8025_v18, %v7940_v19 }
 0x276   : > { %v8059_v52 = vunpack.c.l.b16 %v1672_v63 }
 0x277   : > { %v8049_v1 = vunpack.c.l.b16 %v1670_v25 }
 0x279   : > { %v1574_v32 = vpop.permute.xlu0 %1573  ;;  %v1967_v60 = vpop.permute.xlu2 %1966 }
 0x27a   : > { %v1630_v13 = vsel %vm1629_vm8, %v1574_v32, %v1606_v5 }
 0x27b   : > { %v1650_v0 = vmul.f32 %v8027_v27, %v1630_v13 }
 0x27d   : > { %v1658_v43 = vadd.f32 %v1650_v0, %v1640_v37 }
 0x281   : > { %v1935_v51 = vpop.permute.xlu2 %1934 }
 0x282   : > { %v1986_v20 = vsel %vm1629_vm8, %v1935_v51, %v1967_v60 }
 0x286   : > { %v1584_v12 = vpop.permute.xlu0 %1583 }
 0x287   : > { %v1635_v26 = vsel %vm1629_vm8, %v1584_v12, %v1616_v6  ;;  %v1588_v36 = vpop.permute.xlu1 %1587  ;;  %v2002_v6 = vmul.f32 %v8027_v27, %v1986_v20 }
 0x288   : > { %v1655_v40 = vmul.f32 %v8043_v35, %v1635_v26 }
 0x289   : > { %v1931_v55 = vpop.permute.xlu2 %1930  ;;  %v2010_v13 = vadd.f32 %v2002_v6, %v1994_v31 }
 0x28a   : > { %v1663_v16 = vadd.f32 %v1655_v40, %v1645_v61  ;;  %v1995_v61 = vmul.f32 %v8041_v34, %v7973_v9  ;;  %v1666_v40 = vpack.c.bf16 %v1658_v43, %v1658_v43 }
 0x28c   : > { %v1671_v59 = vpack.c.bf16 %v1663_v16, %v1663_v16 }
 0x28e   : > { %v8051_v57 = vunpack.c.l.b16 %v1671_v59  ;;  %v1620_v58 = vpop.permute.xlu0 %1619  ;;  %v2018_v59 = vpack.c.bf16 %v2010_v13, %v2010_v13 }
 0x28f   : > { %v1637_v8 = vsel %vm1629_vm8, %v1588_v36, %v1620_v58  ;;  %v1576_v48 = vpop.permute.xlu1 %1575  ;;  %v1641_v36 = vmul.f32 %v8041_v34, %v7925_v45  ;;  %v1992_v45 = vmul.f32 %v8025_v18, %v7943_v24 }
 0x290   : > { %v2333_v10 = vpack.c.b16 %v8051_v57, %v8049_v1  ;;  %v1657_v2 = vmul.f32 %v8043_v35, %v1637_v8 }
 0x291   : > { %v1941_v15 = vpop.permute.xlu2 %1940 }
 0x292   : > { %v1665_v56 = vadd.f32 %v1657_v2, %v1647_v17  ;;  %v8089_v2 = vunpack.c.l.b16 %v1666_v40 }
 0x294   : > { %v1673_v39 = vpack.c.bf16 %v1665_v56, %v1665_v56  ;;  %v1993_v56 = vmul.f32 %v8041_v34, %v7979_v50  ;;  %v1997_v50 = vmul.f32 %v8041_v34, %v7964_v47 }
 0x296   : > { %v8061_v5 = vunpack.c.l.b16 %v1673_v39  ;;  %v1971_v7 = vpop.permute.xlu0 %1970 }
 0x297   : > { %v1939_v3 = vpop.permute.xlu1 %1938 }
 0x298   : > { %v2363_v44 = vpack.c.b16 %v8061_v5, %v8059_v52  ;;  %v1988_v26 = vsel %vm1629_vm8, %v1939_v3, %v1971_v7  ;;  %v2336_v7 = vunpack.c.l.b16 %v2018_v59 }
 0x299   : > { %v8065_v11 = vpop.permute.xlu2 %1928 }
 0x29e   : > { %v1959_v14 = vpop.permute.xlu0 %1958 }
 0x29f   : > { %v1927_v23 = vpop.permute.xlu1 %1926 }
 0x2a0   : > { %v1982_v31 = vsel %vm1629_vm8, %v1927_v23, %v1959_v14  ;;  %v1990_v14 = vmul.f32 %v8025_v18, %v7948_v62  ;;  %v2045_v62 = vperm.slane %v7687_v22, %v7703_v33  ;;  %v2105_v22 = vperm.slane %v7697_v29, %v7703_v33 }
 0x2a1   : > { %v1965_v54 = vpop.permute.xlu2 %1964 }
 0x2a6   : > { %v1969_v53 = vpop.permute.xlu0 %1968 }
 0x2a7   : > { %v1963_v38 = vpop.permute.xlu1 %1962 }
 0x2a8   : > { %v1984_v37 = vsel %vm1629_vm8, %v1931_v55, %v1963_v38  ;;  %v2004_v55 = vmul.f32 %v8027_v27, %v1988_v26 }
 0x2a9   : > { %v2000_v25 = vmul.f32 %v8027_v27, %v1984_v37  ;;  %v8087_v17 = vpop.permute.xlu2 %1579 }
 0x2ab   : > { %v2008_v43 = vadd.f32 %v2000_v25, %v1992_v45 }
 0x2ad   : > { %v2016_v37 = vpack.c.bf16 %v2008_v43, %v2008_v43 }
 0x2ae   : > { %v1608_v32 = vpop.permute.xlu0 %1607 }
 0x2af   : > { %v1631_v0 = vsel %vm1629_vm8, %v1576_v48, %v1608_v32  ;;  %v1937_v12 = vpop.permute.xlu1 %1936  ;;  %v1996_v48 = vmul.f32 %v8025_v18, %v7935_v42  ;;  %v2306_v23 = vunpack.c.l.b16 %v2016_v37 }
 0x2b0   : > { %v1651_v60 = vmul.f32 %v8043_v35, %v1631_v0  ;;  %v1987_v51 = vsel %vm1629_vm8, %v1937_v12, %v1969_v53 }
 0x2b1   : > { %v2003_v19 = vmul.f32 %v8043_v35, %v1987_v51  ;;  %v2012_v3 = vadd.f32 %v2004_v55, %v1996_v48  ;;  %v2049_v48 = vperm.slane %v7683_v21, %v7703_v33 }
 0x2b2   : > { %v1659_v16 = vadd.f32 %v1651_v60, %v1641_v36  ;;  %v1998_v36 = vmul.f32 %v8027_v27, %v1982_v31 }
 0x2b3   : > { %v2011_v58 = vadd.f32 %v2003_v19, %v1995_v61  ;;  %v6890_v19 = vpop.permute.xlu2 %6889 }
 0x2b4   : > { %v1667_v8 = vpack.c.bf16 %v1659_v16, %v1659_v16  ;;  %v2006_v16 = vadd.f32 %v1998_v36, %v1990_v14 }
 0x2b5   : > { %v2019_v9 = vpack.c.bf16 %v2011_v58, %v2011_v58  ;;  %v1991_v58 = vmul.f32 %v8041_v34, %v7982_v49 }
 0x2b6   : > { %v8091_v63 = vunpack.c.l.b16 %v1667_v8  ;;  %v1933_v39 = vpop.permute.xlu0 %1932  ;;  %v2014_v21 = vpack.c.bf16 %v2006_v16, %v2006_v16 }
 0x2b7   : > { %v2337_v53 = vunpack.c.l.b16 %v2019_v9  ;;  %v1985_v24 = vsel %vm1629_vm8, %v1933_v39, %v1965_v54  ;;  %v1973_v38 = vpop.permute.xlu1 %1972  ;;  %v2020_v54 = vpack.c.bf16 %v2012_v3, %v2012_v3  ;;  %v6892_v9 = vunpack.i.h.bf16 %v6890_v19 }
 0x2b8   : > { %v2272_v42 = vpack.c.b16 %v8091_v63, %v8089_v2  ;;  %v2001_v20 = vmul.f32 %v8043_v35, %v1985_v24  ;;  %v1989_v6 = vsel %vm1629_vm8, %v1941_v15, %v1973_v38  ;;  %v2064_v3 = vrot.slane %v2045_v62, 4 }
 0x2b9   : > { %v2005_v32 = vmul.f32 %v8043_v35, %v1989_v6  ;;  %v2338_v13 = vpack.c.b16 %v2337_v53, %v2336_v7  ;;  %v2366_v61 = vunpack.c.l.b16 %v2020_v54  ;;  %v2076_v53 = vrot.slane %v2049_v48, 4 }
 0x2ba   : > { %v2009_v0 = vadd.f32 %v2001_v20, %v1993_v56  ;;  %v6891_v56 = vunpack.i.l.bf16 %v6890_v19  ;;  %v2108_v24 = vrot.slane %v6892_v9, 4 }
 0x2bb   : > { %v2013_v12 = vadd.f32 %v2005_v32, %v1997_v50  ;;  %v2343_v26 = vsel %vm2278_vm9, %v2338_v13, 0  ;;  %v2132_v50 = vrot.slane %v2105_v22, 4  ;;  %v8129_v32 = vunpack.c.l.b16 %v2014_v21 }
 0x2bc   : > { %v2017_v60 = vpack.c.bf16 %v2009_v0, %v2009_v0  ;;  %2352 = vmatpush.bf16.xpose.msrb.mxu2 %v2343_v26  ;;  %v2052_v20 = vrot.slane %v6891_v56, 4 }
 0x2bd   : > { %v2021_v15 = vpack.c.bf16 %v2013_v12, %v2013_v12 }
 0x2be   : > { %v2307_v51 = vunpack.c.l.b16 %v2017_v60  ;;  %v1610_v47 = vpop.permute.xlu0 %1609  ;;  %v1642_v60 = vmul.f32 %v8025_v18, %v7968_v46 }
 0x2bf   : > { %v2367_v40 = vunpack.c.l.b16 %v2021_v15  ;;  %v1961_v25 = vpop.permute.xlu1 %1960 }
 0x2c0   : > { %v1983_v59 = vsel %vm1629_vm8, %v8065_v11, %v1961_v25  ;;  %v2308_v55 = vpack.c.b16 %v2307_v51, %v2306_v23  ;;  %v2101_v11 = vperm.slane %v7701_v30, %v7703_v33  ;;  %v8149_v23 = vmul.f32 %v8041_v34, %v7976_v28 }
 0x2c1   : > { %v1999_v45 = vmul.f32 %v8043_v35, %v1983_v59  ;;  %v2368_v8 = vpack.c.b16 %v2367_v40, %v2366_v61 }
 0x2c2   : > { %v2313_v43 = vsel %vm2278_vm9, %v2308_v55, 0  ;;  %v2120_v31 = vrot.slane %v2101_v11, 4 }
 0x2c3   : > { %v2007_v39 = vadd.f32 %v1999_v45, %v1991_v58  ;;  %2322 = vmatpush.bf16.xpose.msrb.mxu1 %v2313_v43  ;;  %5498 = vmatmul.msk.bf16.vlgmr.msrb.gmra.mxu2 %vm2278_vm9, %v2333_v10  ;;  %v2373_v49 = vsel %vm2278_vm9, %v2368_v8, 0 }
 0x2c4   : > { %2382 = vmatpush.bf16.xpose.msrb.mxu3 %v2373_v49 }
 0x2c5   : > { %v2015_v7 = vpack.c.bf16 %v2007_v39, %v2007_v39 }
 0x2c6   : > { %v6895_v38 = vpop.permute.xlu0 %6894 }
 0x2c7   : > { %v8127_v6 = vunpack.c.l.b16 %v2015_v7  ;;  %v6897_v1 = vunpack.i.h.bf16 %v6895_v38  ;;  %v6896_v57 = vunpack.i.l.bf16 %v6895_v38  ;;  %v1578_v10 = vpop.permute.xlu1 %1577 }
 0x2c8   : > { %v1632_v30 = vsel %vm1629_vm8, %v1578_v10, %v1610_v47 }
 0x2c9   : > { %v2106_v29 = vrot.slane %v6897_v1, 4  ;;  %v2109_v13 = vsel %vm1337_vm7, %v6897_v1, %v2108_v24  ;;  %v2050_v37 = vrot.slane %v6896_v57, 4  ;;  %v2053_v0 = vsel %vm1337_vm7, %v6896_v57, %v2052_v20 }
 0x2ca   : > { %v2117_v54 = vperm.slane %v2109_v13, %v7703_v33  ;;  %v2061_v12 = vperm.slane %v2053_v0, %v7703_v33  ;;  %v1652_v26 = vmul.f32 %v8027_v27, %v1632_v30  ;;  %v2277_v36 = vpack.c.b16 %v8127_v6, %v8129_v32 }
 0x2cb   : > { %v2107_v15 = vsel %vm1337_vm7, %v2106_v29, %v6892_v9  ;;  %v2051_v14 = vsel %vm1337_vm7, %v2050_v37, %v6891_v56  ;;  %5499 = vmatmul.msk.bf16.vlgmr.msrb.gmra.mxu3 %vm2278_vm9, %v2363_v44 }
 0x2cc   : > { %v2113_v27 = vperm.slane %v2107_v15, %v7703_v33  ;;  %v2130_v51 = vrot.slane %v2117_v54, 4  ;;  %v2133_v47 = vsel %vm1337_vm7, %v2117_v54, %v2132_v50  ;;  %v2057_v46 = vperm.slane %v2051_v14, %v7703_v33 }
 0x2cd   : > { %v2141_v18 = vperm.slane %v2133_v47, %v7708_v41  ;;  %v2074_v61 = vrot.slane %v2061_v12, 4  ;;  %v2077_v19 = vsel %vm1337_vm7, %v2061_v12, %v2076_v53  ;;  %v1660_v40 = vadd.f32 %v1652_v26, %v1642_v60 }
 0x2ce   : > { %v2118_v52 = vrot.slane %v2113_v27, 4  ;;  %v2121_v5 = vsel %vm1337_vm7, %v2113_v27, %v2120_v31  ;;  %v2131_v44 = vsel %vm1337_vm7, %v2130_v51, %v2105_v22  ;;  %v2062_v28 = vrot.slane %v2057_v46, 4 }
 0x2cf   : > { %v2129_v34 = vperm.slane %v2121_v5, %v7708_v41  ;;  %v2137_v25 = vperm.slane %v2131_v44, %v7708_v41  ;;  %v2148_v16 = vrot.slane %v2141_v18, 4  ;;  %v2065_v59 = vsel %vm1337_vm7, %v2057_v46, %v2064_v3  ;;  %v1612_v6 = vpop.permute.xlu1 %1611 }
 0x2d0   : > { %v2119_v55 = vsel %vm1337_vm7, %v2118_v52, %v2101_v11  ;;  %v2063_v58 = vsel %vm1337_vm7, %v2062_v28, %v2045_v62  ;;  %v2073_v45 = vperm.slane %v2065_v59, %v7708_v41  ;;  %v2075_v8 = vsel %vm1337_vm7, %v2074_v61, %v2049_v48 }
 0x2d1   : > { %v2125_v9 = vperm.slane %v2119_v55, %v7708_v41  ;;  %v2144_v43 = vrot.slane %v2129_v34, 4  ;;  %v2146_v56 = vrot.slane %v2137_v25, 4  ;;  %v2149_v39 = vsel %vm1337_vm7, 0.0, %v2148_v16 }
 0x2d2   : > { %v2215_v49 = vsel %vm1337_vm7, %v2148_v16, %v2137_v25  ;;  %v2220_v22 = vrot.slane %v2149_v39, 4  ;;  %v2069_v21 = vperm.slane %v2063_v58, %v7708_v41  ;;  %v2081_v7 = vperm.slane %v2075_v8, %v7708_v41 }
 0x2d3   : > { %v2142_v11 = vrot.slane %v2125_v9, 4  ;;  %v2145_v62 = vsel %vm1337_vm7, 0.0, %v2144_v43  ;;  %v2147_v3 = vsel %vm1337_vm7, 0.0, %v2146_v56  ;;  %v2204_v48 = vsel %vm1337_vm7, %v2144_v43, %v2125_v9 }
 0x2d4   : > { %v2208_v53 = vperm.slane %v2204_v48, %v7703_v33  ;;  %v2209_v24 = vrot.slane %v2145_v62, 4  ;;  %v8175_v38 = vperm.slane %v2215_v49, %v7703_v33  ;;  %v2221_v20 = vsel %vm1337_vm7, %v2220_v22, %v2147_v3 }
 0x2d5   : > { %v2143_v1 = vsel %vm1337_vm7, 0.0, %v2142_v11  ;;  %v2225_v57 = vperm.slane %v2221_v20, %v7703_v33  ;;  %v2085_v10 = vperm.slane %v2077_v19, %v7708_v41  ;;  %v2086_v31 = vrot.slane %v2069_v21, 4 }
 0x2d6   : > { %v2240_v50 = vrot.slane %v8175_v38, 4  ;;  %v2088_v32 = vrot.slane %v2073_v45, 4  ;;  %v2090_v30 = vrot.slane %v2081_v7, 4  ;;  %v1668_v29 = vpack.c.bf16 %v1660_v40, %v1660_v40 }
 0x2d7   : > { %v2087_v13 = vsel %vm1337_vm7, 0.0, %v2086_v31  ;;  %v2092_v37 = vrot.slane %v2085_v10, 4  ;;  %v2283_v0 = vsel %vm2278_vm9, %v2277_v36, 0  ;;  %v1633_v54 = vsel %vm1629_vm8, %v8087_v17, %v1612_v6 }
 0x2d8   : > { %v2089_v12 = vsel %vm1337_vm7, 0.0, %v2088_v32  ;;  %v2091_v26 = vsel %vm1337_vm7, 0.0, %v2090_v30  ;;  %v2150_v60 = vsel %vm1337_vm7, %v2088_v32, %v2069_v21  ;;  %v2301_v15 = vunpack.c.l.b16 %v1668_v29  ;;  %2292 = vmatpush.bf16.xpose.msrb.mxu0 %v2283_v0 }
 0x2d9   : > { %v2093_v14 = vsel %vm1337_vm7, 0.0, %v2092_v37  ;;  %v2154_v27 = vperm.slane %v2150_v60, %v7703_v33  ;;  %v2155_v51 = vrot.slane %v2089_v12, 4  ;;  %v2161_v47 = vsel %vm1337_vm7, %v2092_v37, %v2081_v7 }
 0x2da   : > { %v2165_v36 = vperm.slane %v2161_v47, %v7703_v33  ;;  %v2166_v46 = vrot.slane %v2093_v14, 4  ;;  %v1653_v17 = vmul.f32 %v8043_v35, %v1633_v54  ;;  %v2210_v18 = vsel %vm1337_vm7, %v2209_v24, %v2143_v1 }
 0x2db   : > { %v2156_v61 = vsel %vm1337_vm7, %v2155_v51, %v2087_v13  ;;  %v2174_v19 = vrot.slane %v2154_v27, 4  ;;  %v2214_v40 = vperm.slane %v2210_v18, %v7703_v33  ;;  %v2228_v52 = vrot.slane %v2208_v53, 4 }
 0x2dc   : > { %v2167_v5 = vsel %vm1337_vm7, %v2166_v46, %v2091_v26  ;;  %v2186_v44 = vrot.slane %v2165_v36, 4  ;;  %v1661_v28 = vadd.f32 %v1653_v17, %v8149_v23  ;;  %v2160_v34 = vperm.slane %v2156_v61, %v7703_v33 }
 0x2dd   : > { %v2171_v25 = vperm.slane %v2167_v5, %v7703_v33  ;;  %v2229_v16 = vsel %vm1337_vm7, %v2214_v40, %v2228_v52  ;;  %v2241_v35 = vsel %vm1337_vm7, %v2225_v57, %v2240_v50  ;;  %v2226_v59 = vrot.slane %v2214_v40, 4 }
 0x2de   : > { %v1669_v55 = vpack.c.bf16 %v1661_v28, %v1661_v28  ;;  %v2175_v58 = vsel %vm1337_vm7, %v2160_v34, %v2174_v19  ;;  %v2237_v45 = vperm.slane %v2229_v16, %v7708_v41  ;;  %v2249_v8 = vperm.slane %v2241_v35, %v7708_v41 }
 0x2df   : > { %5496 = vmatmul.msk.bf16.vlgmr.msrb.gmra.mxu0 %vm2278_vm9, %v2272_v42  ;;  %v2183_v23 = vperm.slane %v2175_v58, %v7708_v41  ;;  %v2187_v9 = vsel %vm1337_vm7, %v2171_v25, %v2186_v44  ;;  %v2172_v43 = vrot.slane %v2160_v34, 4  ;;  %v2184_v56 = vrot.slane %v2171_v25, 4  ;;  %v2266_v34 = vld [vmem:[#allocation16] sm:$0xff] }
 0x2e0   : > { %v2302_v39 = vunpack.c.l.b16 %v1669_v55  ;;  %v2195_v49 = vperm.slane %v2187_v9, %v7708_v41  ;;  %v2254_v22 = vrot.slane %v2249_v8, 4  ;;  %v2227_v21 = vsel %vm1337_vm7, %v2226_v59, %v2208_v53  ;;  %v2267_v59 = vld [vmem:[#allocation16 + $0x8] sm:$0xff] }
 0x2e1   : > { %v2173_v7 = vsel %vm1337_vm7, %v2172_v43, %v2154_v27  ;;  %v2185_v11 = vsel %vm1337_vm7, %v2184_v56, %v2165_v36  ;;  %v2233_v2 = vperm.slane %v2227_v21, %v7708_v41  ;;  %v2238_v63 = vrot.slane %v2225_v57, 4 }
 0x2e2   : > { %v2303_v42 = vpack.c.b16 %v2302_v39, %v2301_v15  ;;  %v2200_v62 = vrot.slane %v2195_v49, 4  ;;  %v2255_v3 = vsel %vm1337_vm7, %v2254_v22, %v2237_v45  ;;  %v2179_v48 = vperm.slane %v2173_v7, %v7708_v41 }
 0x2e3   : > { %v2263_v24 = vpack.c.bf16 %v2255_v3, %v2255_v3  ;;  %v2191_v20 = vperm.slane %v2185_v11, %v7708_v41  ;;  %v2239_v6 = vsel %vm1337_vm7, %v2238_v63, %v8175_v38  ;;  %v2202_v53 = vrot.slane %v2183_v23, 4 }
 0x2e4   : > { %5497 = vmatmul.msk.bf16.vlgmr.msrb.gmra.mxu1 %vm2278_vm9, %v2303_v42  ;;  %v2201_v1 = vsel %vm1337_vm7, %v2200_v62, %v2183_v23  ;;  %v2245_v10 = vperm.slane %v2239_v6, %v7708_v41  ;;  %v2256_v57 = vrot.slane %v2237_v45, 4  ;;  %v2198_v31 = vrot.slane %v2179_v48, 4 }
 0x2e5   : > { %v2262_v50 = vpack.c.bf16 %v2201_v1, %v2201_v1  ;;  %v2534_v32 = vunpack.c.l.b16 %v2263_v24  ;;  %v2196_v30 = vrot.slane %v2191_v20, 4  ;;  %v2203_v29 = vsel %vm1337_vm7, %v2195_v49, %v2202_v53 }
 0x2e6   : > { %v2250_v13 = vrot.slane %v2245_v10, 4  ;;  %v2257_v37 = vsel %vm1337_vm7, %v2249_v8, %v2256_v57  ;;  %v2264_v0 = vpack.c.bf16 %v2203_v29, %v2203_v29  ;;  %v2199_v38 = vsel %vm1337_vm7, %v2191_v20, %v2198_v31 }
 0x2e7   : > { %v2533_v54 = vunpack.c.l.b16 %v2262_v50  ;;  %v2197_v12 = vsel %vm1337_vm7, %v2196_v30, %v2179_v48  ;;  %v2265_v26 = vpack.c.bf16 %v2257_v37, %v2257_v37  ;;  %v2252_v60 = vrot.slane %v2233_v2, 4 }
 0x2e8   : > { %v2251_v15 = vsel %vm1337_vm7, %v2250_v13, %v2233_v2  ;;  %v2258_v14 = vpack.c.bf16 %v2197_v12, %v2197_v12  ;;  %v2561_v27 = vunpack.c.l.b16 %v2264_v0  ;;  %v2260_v51 = vpack.c.bf16 %v2199_v38, %v2199_v38 }
 0x2e9   : > { %v2535_v47 = vpack.c.b16 %v2534_v32, %v2533_v54  ;;  %v2259_v36 = vpack.c.bf16 %v2251_v15, %v2251_v15  ;;  %v2562_v46 = vunpack.c.l.b16 %v2265_v26  ;;  %v2253_v17 = vsel %vm1337_vm7, %v2245_v10, %v2252_v60 }
 0x2ea   : > { %v2477_v18 = vunpack.c.l.b16 %v2258_v14  ;;  %v2261_v61 = vpack.c.bf16 %v2253_v17, %v2253_v17  ;;  %v2505_v19 = vunpack.c.l.b16 %v2260_v51 }
 0x2eb   : > { %2547 = vmatpush.bf16.msra.mxu2 %v2535_v47  ;;  %v2478_v40 = vunpack.c.l.b16 %v2259_v36  ;;  %v2563_v52 = vpack.c.b16 %v2562_v46, %v2561_v27 }
 0x2ec   : > { %v2506_v5 = vunpack.c.l.b16 %v2261_v61 }
 0x2ed   : > { %v2479_v44 = vpack.c.b16 %v2478_v40, %v2477_v18  ;;  %2575 = vmatpush.bf16.msra.mxu3 %v2563_v52 }
 0x2ee   : > { %v2507_v28 = vpack.c.b16 %v2506_v5, %v2505_v19 }
 0x2ef   : > { %2491 = vmatpush.bf16.msra.mxu0 %v2479_v44 }
 0x2f0   : > { %2519 = vmatpush.bf16.msra.mxu1 %v2507_v28 }
 0x346   : > { %v2354_v25 = vpop.f32.mrf.mxu2 }
 0x347   : > { %v2355_v16 = vadd.f32 %v2354_v25, %v2266_v34 }
 0x349   : > { %v2402_v35 = vsel %vm2389_vm10, %v2355_v16, -inf }
 0x34a   : > { %2403 = vmax.xlane.f32.xlu1 %v2402_v35 }
 0x34e   : > { %v2356_v55 = vpop.f32.mrf.mxu2  ;;  %v2384_v58 = vpop.f32.mrf.mxu3 }
 0x34f   : > { %v2357_v45 = vadd.f32 %v2356_v55, %v2267_v59  ;;  %v2385_v8 = vadd.f32 %v2384_v58, %v2266_v34 }
 0x351   : > { %v2405_v23 = vsel %vm2389_vm10, %v2357_v45, -inf  ;;  %v2408_v9 = vsel %vm2389_vm10, %v2385_v8, -inf }
 0x352   : > { %2406 = vmax.xlane.f32.xlu2 %v2405_v23  ;;  %2409 = vmax.xlane.f32.xlu0 %v2408_v9 }
 0x356   : > { %v2386_v43 = vpop.f32.mrf.mxu3 }
 0x357   : > { %v2387_v56 = vadd.f32 %v2386_v43, %v2267_v59 }
 0x359   : > { %v2411_v39 = vsel %vm2389_vm10, %v2387_v56, -inf }
 0x35a   : > { %2412 = vmax.xlane.f32.xlu2 %v2411_v39 }
 0x35c   : > { %v2294_v49 = vpop.f32.mrf.mxu0 }
 0x35d   : > { %v2295_v22 = vadd.f32 %v2294_v49, %v2266_v34 }
 0x35f   : > { %v2390_v21 = vsel %vm2389_vm10, %v2295_v22, -inf }
 0x360   : > { %2391 = vmax.xlane.f32.xlu1 %v2390_v21 }
 0x361   : > { %v2324_v7 = vpop.f32.mrf.mxu1 }
 0x362   : > { %v2325_v11 = vadd.f32 %v2324_v7, %v2266_v34 }
 0x364   : > { %v2296_v2 = vpop.f32.mrf.mxu0  ;;  %v2396_v63 = vsel %vm2389_vm10, %v2325_v11, -inf }
 0x365   : > { %v2297_v42 = vadd.f32 %v2296_v2, %v2267_v59  ;;  %2397 = vmax.xlane.f32.xlu2 %v2396_v63 }
 0x367   : > { %v2393_v62 = vsel %vm2389_vm10, %v2297_v42, -inf }
 0x368   : > { %2394 = vmax.xlane.f32.xlu0 %v2393_v62 }
 0x369   : > { %v2326_v3 = vpop.f32.mrf.mxu1 }
 0x36a   : > { %v2327_v48 = vadd.f32 %v2326_v3, %v2267_v59 }
 0x36c   : > { %v2399_v24 = vsel %vm2389_vm10, %v2327_v48, -inf }
 0x36d   : > { %2400 = vmax.xlane.f32.xlu1 %v2399_v24 }
 0x3bd   : > { %v2404_v20 = vpop.xlane.xlu1 %2403 }
 0x3be   : > { %v2418_v6 = vsub.f32 %v2355_v16, %v2404_v20 }
 0x3c0   : > { %v2430_v53 = vmul.f32 1.442695, %v2418_v6 }
 0x3c2   : > { %6914 = vpow2.f32 %v2430_v53 }
 0x3c5   : > { %v2407_v1 = vpop.xlane.xlu2 %2406  ;;  %v2410_v10 = vpop.xlane.xlu0 %2409 }
 0x3c6   : > { %v2419_v57 = vsub.f32 %v2357_v45, %v2407_v1  ;;  %v2420_v31 = vsub.f32 %v2385_v8, %v2410_v10 }
 0x3c8   : > { %v6915_v50 = vpop.eup %6914  ;;  %v2432_v32 = vmul.f32 1.442695, %v2419_v57  ;;  %v2434_v30 = vmul.f32 1.442695, %v2420_v31 }
 0x3c9   : > { %v2450_v29 = vsel %vm2389_vm10, %v6915_v50, 0.0  ;;  %v2466_v0 = vpack.c.bf16 %v6915_v50, %v6915_v50 }
 0x3ca   : > { %6916 = vpow2.f32 %v2432_v32  ;;  %2451 = vadd.xlane.f32.xlu0 %v2450_v29 }
 0x3cb   : > { %6918 = vpow2.f32 %v2434_v30  ;;  %v2528_v15 = vunpack.c.l.b16 %v2466_v0 }
 0x3cd   : > { %v2413_v13 = vpop.xlane.xlu2 %2412 }
 0x3ce   : > { %v2421_v37 = vsub.f32 %v2387_v56, %v2413_v13 }
 0x3d0   : > { %v6917_v38 = vpop.eup %6916  ;;  %v2436_v54 = vmul.f32 1.442695, %v2421_v37 }
 0x3d1   : > { %v6919_v12 = vpop.eup %6918  ;;  %v2467_v26 = vpack.c.bf16 %v6917_v38, %v6917_v38  ;;  %v2453_v40 = vsel %vm2389_vm10, %v6917_v38, 0.0 }
 0x3d2   : > { %6920 = vpow2.f32 %v2436_v54  ;;  %v2456_v60 = vsel %vm2389_vm10, %v6919_v12, 0.0  ;;  %v2468_v46 = vpack.c.bf16 %v6919_v12, %v6919_v12 }
 0x3d3   : > { %v2529_v14 = vunpack.c.l.b16 %v2467_v26  ;;  %v2392_v27 = vpop.xlane.xlu1 %2391  ;;  %2457 = vadd.xlane.f32.xlu2 %v2456_v60 }
 0x3d4   : > { %v2414_v51 = vsub.f32 %v2295_v22, %v2392_v27  ;;  %v2556_v52 = vunpack.c.l.b16 %v2468_v46 }
 0x3d5   : > { %v2530_v47 = vpack.c.b16 %v2529_v14, %v2528_v15 }
 0x3d6   : > { %v2422_v36 = vmul.f32 1.442695, %v2414_v51 }
 0x3d7   : > { %5502 = vmatmul.msk.bf16.vlgmr.msra.gmra.mxu2 %vm2389_vm10, %v2530_v47 }
 0x3d8   : > { %v6921_v17 = vpop.eup %6920  ;;  %6922 = vpow2.f32 %v2422_v36  ;;  %v2398_v18 = vpop.xlane.xlu2 %2397 }
 0x3d9   : > { %v2469_v61 = vpack.c.bf16 %v6921_v17, %v6921_v17  ;;  %v2416_v19 = vsub.f32 %v2325_v11, %v2398_v18  ;;  %v2459_v39 = vsel %vm2389_vm10, %v6921_v17, 0.0 }
 0x3db   : > { %v2557_v5 = vunpack.c.l.b16 %v2469_v61  ;;  %v2395_v44 = vpop.xlane.xlu0 %2394  ;;  %2454 = vadd.xlane.f32.xlu2 %v2453_v40  ;;  %v2426_v25 = vmul.f32 1.442695, %v2416_v19 }
 0x3dc   : > { %v2415_v28 = vsub.f32 %v2297_v42, %v2395_v44 }
 0x3dd   : > { %v2558_v34 = vpack.c.b16 %v2557_v5, %v2556_v52 }
 0x3de   : > { %v6923_v16 = vpop.eup %6922  ;;  %v2424_v35 = vmul.f32 1.442695, %v2415_v28 }
 0x3df   : > { %v2438_v59 = vsel %vm2389_vm10, %v6923_v16, 0.0  ;;  %5503 = vmatmul.msk.bf16.vlgmr.msra.gmra.mxu3 %vm2389_vm10, %v2558_v34  ;;  %v2462_v8 = vpack.c.bf16 %v6923_v16, %v6923_v16 }
 0x3e0   : > { %6924 = vpow2.f32 %v2424_v35  ;;  %2439 = vadd.xlane.f32.xlu1 %v2438_v59  ;;  %v2401_v55 = vpop.xlane.xlu1 %2400 }
 0x3e1   : > { %6926 = vpow2.f32 %v2426_v25  ;;  %v2417_v58 = vsub.f32 %v2327_v48, %v2401_v55  ;;  %v2472_v49 = vunpack.c.l.b16 %v2462_v8 }
 0x3e3   : > { %v2428_v45 = vmul.f32 1.442695, %v2417_v58 }
 0x3e5   : > { %6928 = vpow2.f32 %v2428_v45 }
 0x3e6   : > { %v6925_v23 = vpop.eup %6924 }
 0x3e7   : > { %v6927_v9 = vpop.eup %6926  ;;  %v2463_v43 = vpack.c.bf16 %v6925_v23, %v6925_v23  ;;  %v2441_v56 = vsel %vm2389_vm10, %v6925_v23, 0.0 }
 0x3e8   : > { %2442 = vadd.xlane.f32.xlu0 %v2441_v56  ;;  %2460 = vadd.xlane.f32.xlu1 %v2459_v39  ;;  %v2464_v21 = vpack.c.bf16 %v6927_v9, %v6927_v9  ;;  %v2444_v3 = vsel %vm2389_vm10, %v6927_v9, 0.0 }
 0x3e9   : > { %v2473_v22 = vunpack.c.l.b16 %v2463_v43 }
 0x3ea   : > { %v2500_v42 = vunpack.c.l.b16 %v2464_v21 }
 0x3eb   : > { %v6929_v7 = vpop.eup %6928  ;;  %v2474_v11 = vpack.c.b16 %v2473_v22, %v2472_v49 }
 0x3ec   : > { %v2465_v2 = vpack.c.bf16 %v6929_v7, %v6929_v7  ;;  %v2447_v63 = vsel %vm2389_vm10, %v6929_v7, 0.0 }
 0x3ed   : > { %5500 = vmatmul.msk.bf16.vlgmr.msra.gmra.mxu0 %vm2389_vm10, %v2474_v11  ;;  %2448 = vadd.xlane.f32.xlu2 %v2447_v63 }
 0x3ee   : > { %v2501_v62 = vunpack.c.l.b16 %v2465_v2 }
 0x3f0   : > { %v2502_v48 = vpack.c.b16 %v2501_v62, %v2500_v42  ;;  %2445 = vadd.xlane.f32.xlu0 %v2444_v3 }
 0x3f2   : > { %5501 = vmatmul.msk.bf16.vlgmr.msra.gmra.mxu1 %vm2389_vm10, %v2502_v48 }
 0x43d   : > { %v2452_v24 = vpop.xlane.xlu0 %2451 }
 0x43e   : > { %6930 = vrcp.f32 %v2452_v24  ;;  %v2651_v37 = vand.u32 2147483647, %v2452_v24  ;;  %v2653_v12 = vand.u32 2147483648, %v2452_v24  ;;  %vm2647_vm12 = vweird.f32 %v2452_v24 }
 0x440   : > { %vm2652_vm14 = vcmp.eq.f32.partialorder %v2651_v37, 8.507059e+37  ;;  %v2654_v17 = vor.u32 1.1754944e-38, %v2653_v12 }
 0x444   : > { %v6931_v6 = vpop.eup %6930 }
 0x445   : > { %v2643_v53 = vmul.f32 %v6931_v6, %v2452_v24  ;;  %vm2648_vm11 = vweird.f32 %v6931_v6 }
 0x446   : > { %v2458_v20 = vpop.xlane.xlu2 %2457  ;;  %vm8275_vm13 = vmor %vm2647_vm12, %vm2648_vm11 }
 0x447   : > { %6932 = vrcp.f32 %v2458_v20  ;;  %v2644_v57 = vsub.f32 1.0, %v2643_v53  ;;  %v2681_v27 = vand.u32 2147483647, %v2458_v20  ;;  %v2683_v51 = vand.u32 2147483648, %v2458_v20 }
 0x448   : > { %vm2677_vm15 = vweird.f32 %v2458_v20 }
 0x449   : > { %v2645_v29 = vmul.f32 %v6931_v6, %v2644_v57  ;;  %vm8289_vm1 = vcmp.eq.f32.partialorder %v2681_v27, 8.507059e+37  ;;  %v2684_v28 = vor.u32 1.1754944e-38, %v2683_v51 }
 0x44b   : > { %v2646_v54 = vadd.f32 %v6931_v6, %v2645_v29  ;;  %v6541_v29 = vld [vmem:[#allocation8 + $0xf4] sm:$0xf0] }
 0x44d   : > { %v8254_v10 = vpop.eup %6932  ;;  %v2650_v46 = vsel %vm8275_vm13, %v6931_v6, %v2646_v54 }
 0x44e   : > { %v8251_v1 = vpop.xlane.xlu2 %2454  ;;  %v2673_v31 = vmul.f32 %v8254_v10, %v2458_v20  ;;  %vm2678_vm0 = vweird.f32 %v8254_v10  ;;  %v2655_v25 = vsel %vm2652_vm14, %v2654_v17, %v2650_v46 }
 0x44f   : > { %6934 = vrcp.f32 %v8251_v1  ;;  %v2666_v52 = vand.u32 2147483647, %v8251_v1  ;;  %v2668_v5 = vand.u32 2147483648, %v8251_v1  ;;  %vm2662_vm2 = vweird.f32 %v8251_v1  ;;  %vm8305_vm5 = vmor %vm2677_vm15, %vm2678_vm0 }
 0x450   : > { %v2674_v13 = vsub.f32 1.0, %v2673_v31 }
 0x451   : > { %vm8323_vm8 = vcmp.eq.f32.partialorder %v2666_v52, 8.507059e+37  ;;  %v2669_v49 = vor.u32 1.1754944e-38, %v2668_v5 }
 0x452   : > { %v2675_v14 = vmul.f32 %v8254_v10, %v2674_v13 }
 0x453   : > { %v8257_v50 = vpop.xlane.xlu1 %2439 }
 0x454   : > { %6936 = vrcp.f32 %v8257_v50  ;;  %v2676_v19 = vadd.f32 %v8254_v10, %v2675_v14  ;;  %v2591_v16 = vand.u32 2147483647, %v8257_v50  ;;  %vm2587_vm3 = vweird.f32 %v8257_v50 }
 0x455   : > { %v8260_v32 = vpop.eup %6934  ;;  %v2593_v59 = vand.u32 2147483648, %v8257_v50 }
 0x456   : > { %v2658_v30 = vmul.f32 %v8260_v32, %v8251_v1  ;;  %vm2663_vm4 = vweird.f32 %v8260_v32  ;;  %v2680_v43 = vsel %vm8305_vm5, %v8254_v10, %v2676_v19  ;;  %vm8327_vm10 = vcmp.eq.f32.partialorder %v2591_v16, 8.507059e+37 }
 0x457   : > { %vm8335_vm11 = vmor %vm2662_vm2, %vm2663_vm4  ;;  %v2594_v3 = vor.u32 1.1754944e-38, %v2593_v59  ;;  %v2685_v24 = vsel %vm8289_vm1, %v2684_v28, %v2680_v43 }
 0x458   : > { %v2659_v38 = vsub.f32 1.0, %v2658_v30 }
 0x45a   : > { %v8264_v0 = vpop.eup %6936  ;;  %v2660_v18 = vmul.f32 %v8260_v32, %v2659_v38  ;;  %v2549_v34 = vpop.f32.mrf.mxu2 }
 0x45b   : > { %v2583_v26 = vmul.f32 %v8264_v0, %v8257_v50  ;;  %v8268_v60 = vpop.xlane.xlu0 %2442  ;;  %v8270_v15 = vpop.xlane.xlu1 %2460  ;;  %vm2588_vm6 = vweird.f32 %v8264_v0  ;;  %v2706_v21 = vmul.f32 %v2655_v25, %v2549_v34 }
 0x45c   : > { %6938 = vrcp.f32 %v8268_v60  ;;  %v2661_v55 = vadd.f32 %v8260_v32, %v2660_v18  ;;  %v2606_v63 = vand.u32 2147483647, %v8268_v60  ;;  %vm8342_vm12 = vmor %vm2587_vm3, %vm2588_vm6  ;;  %vm2602_vm13 = vweird.f32 %v8268_v60 }
 0x45d   : > { %v2584_v47 = vsub.f32 1.0, %v2583_v26  ;;  %6940 = vrcp.f32 %v8270_v15  ;;  %v2608_v1 = vand.u32 2147483648, %v8268_v60  ;;  %v2696_v31 = vand.u32 2147483647, %v8270_v15 }
 0x45e   : > { %v2665_v48 = vsel %vm8335_vm11, %v8260_v32, %v2661_v55  ;;  %v2698_v50 = vand.u32 2147483648, %v8270_v15  ;;  %v2710_v32 = vrot.slane %v2706_v21, 4  ;;  %vm8366_vm14 = vcmp.eq.f32.partialorder %v2606_v63, 8.507059e+37 }
 0x45f   : > { %v2585_v61 = vmul.f32 %v8264_v0, %v2584_v47  ;;  %v2670_v30 = vsel %vm8323_vm8, %v2669_v49, %v2665_v48  ;;  %vm2692_vm15 = vweird.f32 %v8270_v15  ;;  %v2609_v51 = vor.u32 1.1754944e-38, %v2608_v1  ;;  %v6525_v47 = vld [vmem:[#allocation8 + $0x74] sm:$0xf0] }
 0x460   : > { %v8285_v40 = vpop.xlane.xlu2 %2448  ;;  %vm8378_vm2 = vcmp.eq.f32.partialorder %v2696_v31, 8.507059e+37  ;;  %v2699_v36 = vor.u32 1.1754944e-38, %v2698_v50 }
 0x461   : > { %6942 = vrcp.f32 %v8285_v40  ;;  %v2586_v9 = vadd.f32 %v8264_v0, %v2585_v61  ;;  %vm2632_vm4 = vweird.f32 %v8285_v40  ;;  %v2636_v19 = vand.u32 2147483647, %v8285_v40 }
 0x462   : > { %v8296_v35 = vpop.eup %6938  ;;  %v2577_v2 = vpop.f32.mrf.mxu3 }
 0x463   : > { %v8309_v45 = vpop.eup %6940  ;;  %v2598_v8 = vmul.f32 %v8296_v35, %v8268_v60  ;;  %v8313_v23 = vpop.xlane.xlu0 %2445  ;;  %v2590_v6 = vsel %vm8342_vm12, %v8264_v0, %v2586_v9  ;;  %vm2603_vm1 = vweird.f32 %v8296_v35  ;;  %v2708_v55 = vmul.f32 %v2685_v24, %v2577_v2 }
 0x464   : > { %v2688_v56 = vmul.f32 %v8309_v45, %v8270_v15  ;;  %6944 = vrcp.f32 %v8313_v23  ;;  %v2595_v38 = vsel %vm8327_vm10, %v2594_v3, %v2590_v6  ;;  %vm2693_vm0 = vweird.f32 %v8309_v45  ;;  %v2551_v14 = vpop.f32.mrf.mxu2  ;;  %vm8393_vm5 = vmor %vm2602_vm13, %vm2603_vm1 }
 0x465   : > { %v2599_v22 = vsub.f32 1.0, %v2598_v8  ;;  %vm8385_vm3 = vmor %vm2692_vm15, %vm2693_vm0  ;;  %v2707_v52 = vmul.f32 %v2670_v30, %v2551_v14  ;;  %v2621_v44 = vand.u32 2147483647, %v8313_v23  ;;  %v2623_v28 = vand.u32 2147483648, %v8313_v23  ;;  %v5626_v30 = vld [vmem:[#allocation8 + $0xf0] sm:$0xf] }
 0x466   : > { %v2689_v42 = vsub.f32 1.0, %v2688_v56  ;;  %v2638_v8 = vand.u32 2147483648, %v8285_v40  ;;  %vm2617_vm10 = vweird.f32 %v8313_v23  ;;  %v2722_v63 = vrot.slane %v2708_v55, 4 }
 0x467   : > { %v8351_v20 = vpop.eup %6942  ;;  %v2600_v53 = vmul.f32 %v8296_v35, %v2599_v22  ;;  %v2624_v49 = vor.u32 1.1754944e-38, %v2623_v28  ;;  %v2766_v7 = vrot.slane %v2707_v52, 4  ;;  %vm2622_vm12 = vcmp.eq.f32.partialorder %v2621_v44, 8.507059e+37 }
 0x468   : > { %v2628_v10 = vmul.f32 %v8351_v20, %v8285_v40  ;;  %v2690_v57 = vmul.f32 %v8309_v45, %v2689_v42  ;;  %vm2633_vm8 = vweird.f32 %v8351_v20  ;;  %v2639_v6 = vor.u32 1.1754944e-38, %v2638_v8 }
 0x469   : > { %v2601_v27 = vadd.f32 %v8296_v35, %v2600_v53  ;;  %vm8420_vm13 = vmor %vm2632_vm4, %vm2633_vm8  ;;  %v5627_v14 = vor.u32 %v6541_v29, %v5626_v30 }
 0x46a   : > { %v6945_v13 = vpop.eup %6944  ;;  %v2629_v37 = vsub.f32 1.0, %v2628_v10  ;;  %v2493_v0 = vpop.f32.mrf.mxu0  ;;  %v2691_v54 = vadd.f32 %v8309_v45, %v2690_v57 }
 0x46b   : > { %v2613_v12 = vmul.f32 %v6945_v13, %v8313_v23  ;;  %v2702_v26 = vmul.f32 %v2595_v38, %v2493_v0  ;;  %v2605_v25 = vsel %vm8393_vm5, %v8296_v35, %v2601_v27  ;;  %vm2618_vm6 = vweird.f32 %v6945_v13  ;;  %v2579_v59 = vpop.f32.mrf.mxu3  ;;  %v6540_v38 = vld [vmem:[#allocation8 + $0xf4] sm:$0xf]  ;;  %3158 = vmatpush.bf16.msrb.mxu1 %v5627_v14 }
 0x46c   : > { %v2630_v46 = vmul.f32 %v8351_v20, %v2629_v37  ;;  %v2695_v15 = vsel %vm8385_vm3, %v8309_v45, %v2691_v54  ;;  %v2610_v39 = vsel %vm8366_vm14, %v2609_v51, %v2605_v25  ;;  %vm2619_vm11 = vmor %vm2617_vm10, %vm2618_vm6  ;;  %vm2637_vm14 = vcmp.eq.f32.partialorder %v2636_v19, 8.507059e+37  ;;  %v5628_v54 = vld [vmem:[#allocation8 + $0xf8] sm:$0xf0]  ;;  %v5562_v51 = vld [vmem:[#allocation8 + $0x70] sm:$0xf] }
 0x46d   : > { %v2614_v17 = vsub.f32 1.0, %v2613_v12  ;;  %v2712_v18 = vrot.slane %v2702_v26, 4  ;;  %v2711_v34 = vsel %vm1337_vm7, %v2710_v32, %v2702_v26  ;;  %v2700_v43 = vsel %vm8378_vm2, %v2699_v36, %v2695_v15 }
 0x46e   : > { %v2631_v58 = vadd.f32 %v8351_v20, %v2630_v46  ;;  %v2717_v35 = vperm.slane %v2711_v34, %v7703_v33  ;;  %v2709_v22 = vmul.f32 %v2700_v43, %v2579_v59  ;;  %v5631_v27 = vor.u32 %v6540_v38, %v5628_v54 }
 0x46f   : > { %v2521_v16 = vpop.f32.mrf.mxu1  ;;  %v2615_v60 = vmul.f32 %v6945_v13, %v2614_v17  ;;  %v2713_v9 = vsel %vm1337_vm7, %v2706_v21, %v2712_v18  ;;  %v5563_v5 = vor.u32 %v6525_v47, %v5562_v51 }
 0x470   : > { %v2721_v21 = vperm.slane %v2713_v9, %v7703_v33  ;;  %v2635_v62 = vsel %vm8420_vm13, %v8351_v20, %v2631_v58  ;;  %v2736_v53 = vrot.slane %v2717_v35, 4  ;;  %v2778_v1 = vrot.slane %v2709_v22, 4  ;;  %3186 = vmatpush.bf16.msrb.mxu3 %v5631_v27 }
 0x471   : > { %v2616_v45 = vadd.f32 %v6945_v13, %v2615_v60  ;;  %v2640_v32 = vsel %vm2637_vm14, %v2639_v6, %v2635_v62  ;;  %3144 = vmatpush.bf16.msrb.mxu0 %v5563_v5 }
 0x472   : > { %v2495_v56 = vpop.f32.mrf.mxu0  ;;  %v2748_v20 = vrot.slane %v2721_v21, 4 }
 0x473   : > { %v2703_v11 = vmul.f32 %v2610_v39, %v2495_v56  ;;  %v2620_v2 = vsel %vm2619_vm11, %v6945_v13, %v2616_v45 }
 0x474   : > { %v2625_v42 = vsel %vm2622_vm12, %v2624_v49, %v2620_v2 }
 0x475   : > { %v2767_v3 = vsel %vm1337_vm7, %v2766_v7, %v2703_v11  ;;  %v2768_v48 = vrot.slane %v2703_v11, 4  ;;  %v2704_v24 = vmul.f32 %v2625_v42, %v2521_v16 }
 0x476   : > { %v2773_v40 = vperm.slane %v2767_v3, %v7703_v33 }
 0x477   : > { %v2769_v10 = vsel %vm1337_vm7, %v2707_v52, %v2768_v48  ;;  %v2723_v57 = vsel %vm1337_vm7, %v2722_v63, %v2704_v24  ;;  %v2724_v31 = vrot.slane %v2704_v24, 4  ;;  %v2523_v50 = vpop.f32.mrf.mxu1 }
 0x478   : > { %v2777_v13 = vperm.slane %v2769_v10, %v7703_v33  ;;  %v2729_v37 = vperm.slane %v2723_v57, %v7703_v33  ;;  %v2705_v0 = vmul.f32 %v2640_v32, %v2523_v50  ;;  %v2792_v12 = vrot.slane %v2773_v40, 4 }
 0x479   : > { %v2725_v26 = vsel %vm1337_vm7, %v2708_v55, %v2724_v31 }
 0x47a   : > { %v2804_v36 = vrot.slane %v2777_v13, 4  ;;  %v2733_v46 = vperm.slane %v2725_v26, %v7703_v33  ;;  %v2734_v17 = vrot.slane %v2729_v37, 4  ;;  %v2737_v18 = vsel %vm1337_vm7, %v2729_v37, %v2736_v53 }
 0x47b   : > { %v2745_v61 = vperm.slane %v2737_v18, %v7708_v41  ;;  %v2779_v19 = vsel %vm1337_vm7, %v2778_v1, %v2705_v0  ;;  %v2780_v52 = vrot.slane %v2705_v0, 4 }
 0x47c   : > { %v2735_v44 = vsel %vm1337_vm7, %v2734_v17, %v2717_v35  ;;  %v2746_v28 = vrot.slane %v2733_v46, 4  ;;  %v2749_v15 = vsel %vm1337_vm7, %v2733_v46, %v2748_v20  ;;  %v2785_v34 = vperm.slane %v2779_v19, %v7703_v33 }
 0x47d   : > { %v2741_v25 = vperm.slane %v2735_v44, %v7708_v41  ;;  %v2757_v16 = vperm.slane %v2749_v15, %v7708_v41  ;;  %v2760_v60 = vrot.slane %v2745_v61, 4  ;;  %v2781_v59 = vsel %vm1337_vm7, %v2709_v22, %v2780_v52 }
 0x47e   : > { %v2747_v55 = vsel %vm1337_vm7, %v2746_v28, %v2721_v21  ;;  %v2789_v58 = vperm.slane %v2781_v59, %v7703_v33  ;;  %v2790_v8 = vrot.slane %v2785_v34, 4  ;;  %v2793_v9 = vsel %vm1337_vm7, %v2785_v34, %v2792_v12 }
 0x47f   : > { %v2753_v45 = vperm.slane %v2747_v55, %v7708_v41  ;;  %v2758_v43 = vrot.slane %v2741_v25, 4  ;;  %v2761_v35 = vsel %vm1337_vm7, 0.0, %v2760_v60  ;;  %v2764_v56 = vrot.slane %v2757_v16, 4 }
 0x480   : > { %v2822_v39 = vsel %vm1337_vm7, %v2760_v60, %v2741_v25  ;;  %v2827_v49 = vrot.slane %v2761_v35, 4  ;;  %v2791_v7 = vsel %vm1337_vm7, %v2790_v8, %v2773_v40  ;;  %v2801_v22 = vperm.slane %v2793_v9, %v7708_v41  ;;  %v5564_v8 = vld [vmem:[#allocation8 + $0x78] sm:$0xf0]  ;;  %v5618_v35 = vld [vmem:[#allocation8 + $0xe0] sm:$0xf] }
 0x481   : > { %v2759_v11 = vsel %vm1337_vm7, 0.0, %v2758_v43  ;;  %v2762_v2 = vrot.slane %v2753_v45, 4  ;;  %v2765_v23 = vsel %vm1337_vm7, 0.0, %v2764_v56  ;;  %v2826_v21 = vperm.slane %v2822_v39, %v7703_v33 }
 0x482   : > { %v2838_v63 = vrot.slane %v2765_v23, 4  ;;  %v2797_v42 = vperm.slane %v2791_v7, %v7708_v41  ;;  %v2802_v62 = vrot.slane %v2789_v58, 4  ;;  %v2805_v3 = vsel %vm1337_vm7, %v2789_v58, %v2804_v36  ;;  %v6524_v58 = vld [vmem:[#allocation8 + $0x74] sm:$0xf]  ;;  %v5554_v23 = vld [vmem:[#allocation8 + $0x60] sm:$0xf] }
 0x483   : > { %v2813_v48 = vperm.slane %v2805_v3, %v7708_v41  ;;  %v2816_v24 = vrot.slane %v2801_v22, 4  ;;  %v2763_v6 = vsel %vm1337_vm7, 0.0, %v2762_v2  ;;  %v2828_v53 = vsel %vm1337_vm7, %v2827_v49, %v2759_v11  ;;  %v6538_v11 = vld [vmem:[#allocation8 + $0xe4] sm:$0xf]  ;;  %v5620_v2 = vld [vmem:[#allocation8 + $0xe8] sm:$0xf0] }
 0x484   : > { %v2803_v40 = vsel %vm1337_vm7, %v2802_v62, %v2777_v13  ;;  %v2814_v1 = vrot.slane %v2797_v42, 4  ;;  %v2832_v10 = vperm.slane %v2828_v53, %v7703_v33  ;;  %v2833_v57 = vsel %vm1337_vm7, %v2764_v56, %v2753_v45  ;;  %v6539_v56 = vld [vmem:[#allocation8 + $0xe4] sm:$0xf0] }
 0x485   : > { %v2809_v31 = vperm.slane %v2803_v40, %v7708_v41  ;;  %v2817_v50 = vsel %vm1337_vm7, 0.0, %v2816_v24  ;;  %v2820_v32 = vrot.slane %v2813_v48, 4  ;;  %v2876_v30 = vsel %vm1337_vm7, %v2816_v24, %v2797_v42  ;;  %v6523_v3 = vld [vmem:[#allocation8 + $0x64] sm:$0xf0]  ;;  %v6522_v48 = vld [vmem:[#allocation8 + $0x64] sm:$0xf] }
 0x486   : > { %v2815_v29 = vsel %vm1337_vm7, 0.0, %v2814_v1  ;;  %v2880_v20 = vperm.slane %v2876_v30, %v7703_v33  ;;  %v2881_v37 = vrot.slane %v2817_v50, 4  ;;  %v2837_v0 = vperm.slane %v2833_v57, %v7703_v33  ;;  %v5556_v40 = vld [vmem:[#allocation8 + $0x68] sm:$0xf0]  ;;  %v5610_v1 = vld [vmem:[#allocation8 + $0xd0] sm:$0xf] }
 0x487   : > { %v2818_v13 = vrot.slane %v2809_v31, 4  ;;  %v2821_v38 = vsel %vm1337_vm7, 0.0, %v2820_v32  ;;  %v2839_v54 = vsel %vm1337_vm7, %v2838_v63, %v2763_v6  ;;  %v2846_v12 = vrot.slane %v2826_v21, 4  ;;  %v5612_v30 = vld [vmem:[#allocation8 + $0xd8] sm:$0xf0] }
 0x488   : > { %v2892_v26 = vrot.slane %v2821_v38, 4  ;;  %v2843_v14 = vperm.slane %v2839_v54, %v7703_v33  ;;  %v2858_v27 = vrot.slane %v2837_v0, 4  ;;  %v2882_v51 = vsel %vm1337_vm7, %v2881_v37, %v2815_v29 }
 0x489   : > { %v2819_v47 = vsel %vm1337_vm7, 0.0, %v2818_v13  ;;  %v2847_v36 = vsel %vm1337_vm7, %v2832_v10, %v2846_v12  ;;  %v2886_v46 = vperm.slane %v2882_v51, %v7703_v33  ;;  %v2887_v17 = vsel %vm1337_vm7, %v2820_v32, %v2809_v31  ;;  %v6536_v32 = vld [vmem:[#allocation8 + $0xd4] sm:$0xf] }
 0x48a   : > { %v8479_v18 = vperm.slane %v2847_v36, %v7708_v41  ;;  %v2859_v61 = vsel %vm1337_vm7, %v2843_v14, %v2858_v27  ;;  %v2891_v19 = vperm.slane %v2887_v17, %v7703_v33  ;;  %v2893_v52 = vsel %vm1337_vm7, %v2892_v26, %v2819_v47  ;;  %v6520_v26 = vld [vmem:[#allocation8 + $0x54] sm:$0xf]  ;;  %v5602_v27 = vld [vmem:[#allocation8 + $0xc0] sm:$0xf]  ;;  %v6534_v17 = vld [vmem:[#allocation8 + $0xc4] sm:$0xf] }
 0x48b   : > { %v2897_v5 = vperm.slane %v2893_v52, %v7703_v33  ;;  %v2900_v44 = vrot.slane %v2880_v20, 4  ;;  %v2844_v28 = vrot.slane %v2832_v10, 4  ;;  %v2856_v34 = vrot.slane %v2843_v14, 4  ;;  %v6537_v10 = vld [vmem:[#allocation8 + $0xd4] sm:$0xf0] }
 0x48c   : > { %v2912_v15 = vrot.slane %v2891_v19, 4  ;;  %v2898_v25 = vrot.slane %v2886_v46, 4  ;;  %v8486_v16 = vperm.slane %v2859_v61, %v7708_v41  ;;  %v2874_v9 = vrot.slane %v8479_v18, 4  ;;  %v5548_v14 = vld [vmem:[#allocation8 + $0x58] sm:$0xf0] }
 0x48d   : > { %v2901_v60 = vsel %vm1337_vm7, %v2886_v46, %v2900_v44  ;;  %v2845_v59 = vsel %vm1337_vm7, %v2844_v28, %v2826_v21  ;;  %v2910_v55 = vrot.slane %v2897_v5, 4  ;;  %v2857_v49 = vsel %vm1337_vm7, %v2856_v34, %v2837_v0  ;;  %v6521_v0 = vld [vmem:[#allocation8 + $0x54] sm:$0xf0]  ;;  %v6535_v46 = vld [vmem:[#allocation8 + $0xc4] sm:$0xf0] }
 0x48e   : > { %v8492_v45 = vperm.slane %v2901_v60, %v7708_v41  ;;  %v2913_v33 = vsel %vm1337_vm7, %v2897_v5, %v2912_v15  ;;  %v8496_v43 = vperm.slane %v2845_v59, %v7708_v41  ;;  %v2899_v7 = vsel %vm1337_vm7, %v2898_v25, %v2880_v20  ;;  %v5604_v44 = vld [vmem:[#allocation8 + $0xc8] sm:$0xf0]  ;;  %v5538_v15 = vld [vmem:[#allocation8 + $0x40] sm:$0xf]  ;;  %v6519_v34 = vld [vmem:[#allocation8 + $0x44] sm:$0xf0] }
 0x48f   : > { %v8499_v39 = vperm.slane %v2913_v33, %v7708_v41  ;;  %v2911_v22 = vsel %vm1337_vm7, %v2910_v55, %v2891_v19  ;;  %v8506_v63 = vperm.slane %v2857_v49, %v7708_v41  ;;  %v2905_v62 = vperm.slane %v2899_v7, %v7708_v41  ;;  %v5540_v60 = vld [vmem:[#allocation8 + $0x48] sm:$0xf0]  ;;  %v5594_v55 = vld [vmem:[#allocation8 + $0xb0] sm:$0xf]  ;;  %v6532_v33 = vld [vmem:[#allocation8 + $0xb4] sm:$0xf] }
 0x490   : > { %v2928_v21 = vrot.slane %v8492_v45, 4  ;;  %v2870_v42 = vrot.slane %v8496_v43, 4  ;;  %v2917_v24 = vperm.slane %v2911_v22, %v7708_v41  ;;  %v5567_v6 = vor.u32 %v6524_v58, %v5564_v8  ;;  %v5546_v41 = vld [vmem:[#allocation8 + $0x50] sm:$0xf]  ;;  %v6533_v58 = vld [vmem:[#allocation8 + $0xb4] sm:$0xf0] }
 0x491   : > { %v5619_v53 = vor.u32 %v6539_v56, %v5618_v35  ;;  %v2875_v57 = vsel %vm1337_vm7, %v8486_v16, %v2874_v9  ;;  %v2924_v50 = vrot.slane %v2905_v62, 4  ;;  %v5623_v20 = vor.u32 %v6538_v11, %v5620_v2  ;;  %v5596_v35 = vld [vmem:[#allocation8 + $0xb8] sm:$0xf0]  ;;  %v5530_v22 = vld [vmem:[#allocation8 + $0x30] sm:$0xf] }
 0x492   : > { %v2929_v31 = vsel %vm1337_vm7, %v8499_v39, %v2928_v21  ;;  %3172 = vmatpush.bf16.msrb.mxu2 %v5567_v6  ;;  %v5555_v37 = vor.u32 %v6523_v3, %v5554_v23  ;;  %v2871_v13 = vsel %vm1337_vm7, %v8506_v63, %v2870_v42  ;;  %v5559_v54 = vor.u32 %v6522_v48, %v5556_v40  ;;  %v6516_v2 = vld [vmem:[#allocation8 + $0x34] sm:$0xf]  ;;  %v5532_v23 = vld [vmem:[#allocation8 + $0x38] sm:$0xf0]  ;;  %v6530_v3 = vld [vmem:[#allocation8 + $0xa4] sm:$0xf] }
 0x493   : > { %v6903_v29 = vpack.i.bf16 %v2929_v31, %v2875_v57  ;;  %3159 = vmatpush.bf16.msrb.mxu1 %v5619_v53  ;;  %v2925_v38 = vsel %vm1337_vm7, %v2917_v24, %v2924_v50  ;;  %v5611_v12 = vor.u32 %v6537_v10, %v5610_v1  ;;  %v2872_v51 = vrot.slane %v8486_v16, 4  ;;  %3187 = vmatpush.bf16.msrb.mxu3 %v5623_v20  ;;  %v6518_v16 = vld [vmem:[#allocation8 + $0x44] sm:$0xf]  ;;  %v5524_v40 = vld [vmem:[#allocation8 + $0x28] sm:$0xf0] }
 0x494   : > { %v6898_v47 = vpack.i.bf16 %v2925_v38, %v2871_v13  ;;  %v5615_v36 = vor.u32 %v6536_v32, %v5612_v30  ;;  %v2926_v61 = vrot.slane %v8499_v39, 4  ;;  %v2868_v19 = vrot.slane %v8506_v63, 4  ;;  %3145 = vmatpush.bf16.msrb.mxu0 %v5555_v37  ;;  %v5586_v63 = vld [vmem:[#allocation8 + $0xa0] sm:$0xf]  ;;  %v6514_v53 = vld [vmem:[#allocation8 + $0x24] sm:$0xf] }
 0x495   : > { %6904 = vrot.lane.b32.xlu0 %v6903_v29, %s7359_s3  ;;  %v2922_v52 = vrot.slane %v2917_v24, 4  ;;  %v5547_v5 = vor.u32 %v6521_v0, %v5546_v41  ;;  %v5551_v28 = vor.u32 %v6520_v26, %v5548_v14  ;;  %v5603_v25 = vor.u32 %v6535_v46, %v5602_v27  ;;  %v6515_v24 = vld [vmem:[#allocation8 + $0x24] sm:$0xf0]  ;;  %v5578_v10 = vld [vmem:[#allocation8 + $0x90] sm:$0xf] }
 0x496   : > { %6899 = vrot.lane.b32.xlu1 %v6898_v47, %s7359_s3  ;;  %3173 = vmatpush.bf16.msrb.mxu2 %v5559_v54  ;;  %v5607_v59 = vor.u32 %v6534_v17, %v5604_v44  ;;  %v8525_v8 = vsel %vm1337_vm7, %v2872_v51, %v8479_v18  ;;  %v5539_v9 = vor.u32 %v6519_v34, %v5538_v15  ;;  %v6517_v18 = vld [vmem:[#allocation8 + $0x34] sm:$0xf0]  ;;  %v6528_v50 = vld [vmem:[#allocation8 + $0x94] sm:$0xf]  ;;  %v5580_v32 = vld [vmem:[#allocation8 + $0x98] sm:$0xf0] }
 0x497   : > { %3160 = vmatpush.bf16.msrb.mxu1 %v5611_v12  ;;  %3188 = vmatpush.bf16.msrb.mxu3 %v5615_v36  ;;  %v8529_v56 = vsel %vm1337_vm7, %v2926_v61, %v8492_v45  ;;  %v8533_v39 = vsel %vm1337_vm7, %v2868_v19, %v8496_v43  ;;  %v8536_v49 = vsel %vm1337_vm7, %v2922_v52, %v2905_v62  ;;  %v6531_v45 = vld [vmem:[#allocation8 + $0xa4] sm:$0xf0]  ;;  %v5588_v43 = vld [vmem:[#allocation8 + $0xa8] sm:$0xf0]  ;;  %v5522_v62 = vld [vmem:[#allocation8 + $0x20] sm:$0xf] }
 0x498   : > { %3146 = vmatpush.bf16.msrb.mxu0 %v5547_v5  ;;  %v5543_v7 = vor.u32 %v6518_v16, %v5540_v60  ;;  %v5595_v11 = vor.u32 %v6533_v58, %v5594_v55  ;;  %v5599_v21 = vor.u32 %v6532_v33, %v5596_v35  ;;  %v5531_v42 = vor.u32 %v6517_v18, %v5530_v22  ;;  %v6529_v57 = vld [vmem:[#allocation8 + $0x94] sm:$0xf0]  ;;  %v5514_v37 = vld [vmem:[#allocation8 + $0x10] sm:$0xf]  ;;  %v6512_v0 = vld [vmem:[#allocation8 + $0x14] sm:$0xf] }
 0x499   : > { %v5535_v48 = vor.u32 %v6516_v2, %v5532_v23  ;;  %v5587_v6 = vor.u32 %v6531_v45, %v5586_v63  ;;  %v5591_v1 = vor.u32 %v6530_v3, %v5588_v43  ;;  %v5523_v31 = vor.u32 %v6515_v24, %v5522_v62  ;;  %v6513_v41 = vld [vmem:[#allocation8 + $0x14] sm:$0xf0]  ;;  %v5516_v38 = vld [vmem:[#allocation8 + $0x18] sm:$0xf0]  ;;  %v5570_v12 = vld [vmem:[#allocation8 + $0x80] sm:$0xf] }
 0x49a   : > { %3174 = vmatpush.bf16.msrb.mxu2 %v5551_v28  ;;  %v5527_v30 = vor.u32 %v6514_v53, %v5524_v40  ;;  %v5579_v29 = vor.u32 %v6529_v57, %v5578_v10  ;;  %v5583_v20 = vor.u32 %v6528_v50, %v5580_v32  ;;  %v5515_v13 = vor.u32 %v6513_v41, %v5514_v37  ;;  %v6527_v26 = vld [vmem:[#allocation8 + $0x84] sm:$0xf0]  ;;  %v6526_v14 = vld [vmem:[#allocation8 + $0x84] sm:$0xf]  ;;  %v5572_v51 = vld [vmem:[#allocation8 + $0x88] sm:$0xf0] }
 0x49b   : > { %3161 = vmatpush.bf16.msrb.mxu1 %v5603_v25  ;;  %3189 = vmatpush.bf16.msrb.mxu3 %v5607_v59  ;;  %v5519_v54 = vor.u32 %v6512_v0, %v5516_v38  ;;  %v5571_v27 = vor.u32 %v6527_v26, %v5570_v12  ;;  %v5506_v47 = vld [vmem:[#allocation8] sm:$0xf]  ;;  %v6511_v36 = vld [vmem:[#allocation8 + $0x4] sm:$0xf0]  ;;  %v5575_v46 = vor.u32 %v6526_v14, %v5572_v51  ;;  %v6510_v61 = vld [vmem:[#allocation8 + $0x4] sm:$0xf] }
 0x49c   : > { %3147 = vmatpush.bf16.msrb.mxu0 %v5539_v9  ;;  %v5507_v17 = vor.u32 %v6511_v36, %v5506_v47  ;;  %v5508_v19 = vld [vmem:[#allocation8 + $0x8] sm:$0xf0]  ;;  %v5858_v33 = vld [vmem:[#allocation10 + $0x1c0] sm:$0xf]  ;;  %v5860_v18 = vld [vmem:[#allocation10 + $0x1e0] sm:$0xf0] }
 0x49d   : > { %v5511_v52 = vor.u32 %v6510_v61, %v5508_v19  ;;  %v6602_v35 = vld [vmem:[#allocation10 + $0x1dc] sm:$0xf0]  ;;  %v6662_v23 = vld [vmem:[#allocation10 + $0x3c4] sm:$0xf] }
 0x49e   : > { %3175 = vmatpush.bf16.msrb.mxu2 %v5543_v7  ;;  %v5859_v7 = vor.u32 %v6602_v35, %v5858_v33  ;;  %v6666_v22 = vld [vmem:[#allocation10 + $0x3dc] sm:$0xf0]  ;;  %v5828_v62 = vld [vmem:[#allocation10 + $0x1a0] sm:$0xf0] }
 0x49f   : > { %3162 = vmatpush.bf16.msrb.mxu1 %v5595_v11  ;;  %3190 = vmatpush.bf16.msrb.mxu3 %v5599_v21  ;;  %v6116_v21 = vld [vmem:[#allocation10 + $0x3e0] sm:$0xf0]  ;;  %v6082_v45 = vld [vmem:[#allocation10 + $0x380] sm:$0xf] }
 0x4a0   : > { %3148 = vmatpush.bf16.msrb.mxu0 %v5531_v42  ;;  %v6119_v63 = vor.u32 %v6662_v23, %v6116_v21  ;;  %v6658_v42 = vld [vmem:[#allocation10 + $0x39c] sm:$0xf0]  ;;  %v6654_v24 = vld [vmem:[#allocation10 + $0x384] sm:$0xf] }
 0x4a1   : > { %v6083_v43 = vor.u32 %v6658_v42, %v6082_v45  ;;  %v6084_v53 = vld [vmem:[#allocation10 + $0x3a0] sm:$0xf0]  ;;  %v5794_v40 = vld [vmem:[#allocation10 + $0x140] sm:$0xf] }
 0x4a2   : > { %3176 = vmatpush.bf16.msrb.mxu2 %v5535_v48  ;;  %v6590_v48 = vld [vmem:[#allocation10 + $0x184] sm:$0xf]  ;;  %v6087_v10 = vor.u32 %v6654_v24, %v6084_v53  ;;  %v6050_v57 = vld [vmem:[#allocation10 + $0x340] sm:$0xf] }
 0x4a3   : > { %3163 = vmatpush.bf16.msrb.mxu1 %v5587_v6  ;;  %3191 = vmatpush.bf16.msrb.mxu3 %v5591_v1  ;;  %v5831_v6 = vor.u32 %v6590_v48, %v5828_v62  ;;  %v6586_v1 = vld [vmem:[#allocation10 + $0x15c] sm:$0xf0]  ;;  %v6582_v50 = vld [vmem:[#allocation10 + $0x144] sm:$0xf] }
 0x4a4   : > { %3149 = vmatpush.bf16.msrb.mxu0 %v5523_v31  ;;  %v6650_v31 = vld [vmem:[#allocation10 + $0x35c] sm:$0xf0]  ;;  %v5795_v32 = vor.u32 %v6586_v1, %v5794_v40  ;;  %v5764_v51 = vld [vmem:[#allocation10 + $0x120] sm:$0xf0] }
 0x4a5   : > { %v6051_v37 = vor.u32 %v6650_v31, %v6050_v57  ;;  %v5762_v0 = vld [vmem:[#allocation10 + $0x100] sm:$0xf]  ;;  %v6638_v47 = vld [vmem:[#allocation10 + $0x304] sm:$0xf]  ;;  %v6984_v31 = vld [vmem:[%s7574_s23 + $0x10] sm:$0xff] }
 0x4a6   : > { %3177 = vmatpush.bf16.msrb.mxu2 %v5527_v30  ;;  %v5796_v30 = vld [vmem:[#allocation10 + $0x160] sm:$0xf0]  ;;  %v6018_v38 = vld [vmem:[#allocation10 + $0x300] sm:$0xf] }
 0x4a7   : > { %3164 = vmatpush.bf16.msrb.mxu1 %v5579_v29  ;;  %3192 = vmatpush.bf16.msrb.mxu3 %v5583_v20  ;;  %v6646_v29 = vld [vmem:[#allocation10 + $0x344] sm:$0xf]  ;;  %v5799_v41 = vor.u32 %v6582_v50, %v5796_v30  ;;  %v6642_v14 = vld [vmem:[#allocation10 + $0x31c] sm:$0xf0]  ;;  %v6985_v30 = vld [vmem:[%s7574_s23 + $0x18] sm:$0xff] }
 0x4a8   : > { %3150 = vmatpush.bf16.msrb.mxu0 %v5515_v13  ;;  %v6052_v20 = vld [vmem:[#allocation10 + $0x360] sm:$0xf0]  ;;  %v6578_v13 = vld [vmem:[#allocation10 + $0x11c] sm:$0xf0]  ;;  %v6019_v61 = vor.u32 %v6642_v14, %v6018_v38 }
 0x4a9   : > { %v6055_v26 = vor.u32 %v6646_v29, %v6052_v20  ;;  %v6020_v36 = vld [vmem:[#allocation10 + $0x320] sm:$0xf0]  ;;  %v6626_v23 = vld [vmem:[#allocation10 + $0x29c] sm:$0xf0] }
 0x4aa   : > { %3178 = vmatpush.bf16.msrb.mxu2 %v5519_v54  ;;  %v6558_v21 = vld [vmem:[#allocation10 + $0x84] sm:$0xf]  ;;  %v5922_v38 = vld [vmem:[#allocation10 + $0x240] sm:$0xf] }
 0x4ab   : > { %3165 = vmatpush.bf16.msrb.mxu1 %v5571_v27  ;;  %3193 = vmatpush.bf16.msrb.mxu3 %v5575_v46  ;;  %v6574_v27 = vld [vmem:[#allocation10 + $0x104] sm:$0xf] }
 0x4ac   : > { %3151 = vmatpush.bf16.msrb.mxu0 %v5507_v17  ;;  %v5763_v17 = vor.u32 %v6578_v13, %v5762_v0  ;;  %v5767_v19 = vor.u32 %v6574_v27, %v5764_v51  ;;  %v6622_v45 = vld [vmem:[#allocation10 + $0x284] sm:$0xf]  ;;  %v5666_v0 = vld [vmem:[#allocation10 + $0x40] sm:$0xf] }
 0x4ad   : > { %v5956_v42 = vld [vmem:[#allocation10 + $0x2a0] sm:$0xf0]  ;;  %v6554_v13 = vld [vmem:[#allocation10 + $0x5c] sm:$0xf0] }
 0x4ae   : > { %3179 = vmatpush.bf16.msrb.mxu2 %v5511_v52  ;;  %v5730_v52 = vld [vmem:[#allocation10 + $0xc0] sm:$0xf]  ;;  %v5959_v40 = vor.u32 %v6622_v45, %v5956_v42  ;;  %v5668_v14 = vld [vmem:[#allocation10 + $0x60] sm:$0xf0]  ;;  %v6659_v42 = vld [vmem:[#allocation10 + $0x3a4] sm:$0xf0] }
 0x4af   : > { %4064 = vmatpush.bf16.msra.mxu3 %v6119_v63 }
 0x4b0   : > { %4022 = vmatpush.bf16.msra.mxu0 %v5859_v7 }
 0x4b3   : > { %4065 = vmatpush.bf16.msra.mxu3 %v6087_v10 }
 0x4b7   : > { %4066 = vmatpush.bf16.msra.mxu3 %v6055_v26  ;;  %v6550_v26 = vld [vmem:[#allocation10 + $0x44] sm:$0xf] }
 0x4b8   : > { %v5671_v51 = vor.u32 %v6550_v26, %v5668_v14  ;;  %v6579_v26 = vld [vmem:[#allocation10 + $0x124] sm:$0xf0] }
 0x4b9   : > { %v6026_v14 = vld [vmem:[#allocation10 + $0x308] sm:$0xf] }
 0x507   : > { %v6905_v5 = vpop.permute.xlu0 %6904 }
 0x508   : > { %v6907_v44 = vunpack.i.h.bf16 %v6905_v5  ;;  %v6906_v28 = vunpack.i.l.bf16 %v6905_v5  ;;  %v6900_v15 = vpop.permute.xlu1 %6899  ;;  %v6570_v5 = vld [vmem:[#allocation10 + $0xdc] sm:$0xf0] }
 0x509   : > { %v6902_v16 = vunpack.i.h.bf16 %v6900_v15  ;;  %v6901_v60 = vunpack.i.l.bf16 %v6900_v15  ;;  %v6023_v15 = vor.u32 %v6638_v47, %v6020_v36  ;;  %v5731_v33 = vor.u32 %v6570_v5, %v5730_v52  ;;  %v6614_v47 = vld [vmem:[#allocation10 + $0x244] sm:$0xf]  ;;  %v6610_v5 = vld [vmem:[#allocation10 + $0x21c] sm:$0xf0] }
 0x50a   : > { %v2948_v34 = vsel %vm2278_vm9, %v8525_v8, %v6906_v28  ;;  %v2949_v25 = vsel %vm2278_vm9, %v8529_v56, %v6907_v44  ;;  %v6114_v8 = vld [vmem:[#allocation10 + $0x3c0] sm:$0xf]  ;;  %v6598_v56 = vld [vmem:[#allocation10 + $0x1c4] sm:$0xf] }
 0x50b   : > { %v2951_v59 = vpack.c.bf16 %v2949_v25, %v2948_v34  ;;  %v2946_v55 = vsel %vm2278_vm9, %v8533_v39, %v6901_v60  ;;  %v2947_v58 = vsel %vm2278_vm9, %v8536_v49, %v6902_v16  ;;  %v6115_v11 = vor.u32 %v6666_v22, %v6114_v8  ;;  %v5826_v39 = vld [vmem:[#allocation10 + $0x180] sm:$0xf]  ;;  %v6566_v25 = vld [vmem:[#allocation10 + $0xc4] sm:$0xf]  ;;  %4067 = vmatpush.bf16.msra.mxu3 %v6023_v15 }
 0x50c   : > { %v2950_v9 = vpack.c.bf16 %v2947_v58, %v2946_v55  ;;  %v5863_v2 = vor.u32 %v6598_v56, %v5860_v18  ;;  %v6594_v49 = vld [vmem:[#allocation10 + $0x19c] sm:$0xf0]  ;;  %v5732_v16 = vld [vmem:[#allocation10 + $0xe0] sm:$0xf0] }
 0x50d   : > { %3166 = vmatmul.bf16.vlgmr.msrb.gmra.mxu1 %v2951_v59  ;;  %3194 = vmatmul.bf16.vlgmr.msrb.gmra.mxu3 %v2951_v59  ;;  %v5827_v3 = vor.u32 %v6594_v49, %v5826_v39  ;;  %v5986_v44 = vld [vmem:[#allocation10 + $0x2c0] sm:$0xf]  ;;  %v6630_v60 = vld [vmem:[#allocation10 + $0x2c4] sm:$0xf]  ;;  %v5735_v7 = vor.u32 %v6566_v25, %v5732_v16 }
 0x50e   : > { %3152 = vmatmul.bf16.vlgmr.msrb.gmra.mxu0 %v2950_v9  ;;  %3180 = vmatmul.bf16.vlgmr.msrb.gmra.mxu2 %v2950_v9  ;;  %v6634_v34 = vld [vmem:[#allocation10 + $0x2dc] sm:$0xf0]  ;;  %v5988_v59 = vld [vmem:[#allocation10 + $0x2e0] sm:$0xf0] }
 0x50f   : > { %4036 = vmatpush.bf16.msra.mxu1 %v6115_v11  ;;  %4050 = vmatpush.bf16.msra.mxu2 %v5863_v2  ;;  %v6982_v55 = vld [vmem:[%s7574_s23] sm:$0xff]  ;;  %v5987_v8 = vor.u32 %v6634_v34, %v5986_v44  ;;  %v5991_v11 = vor.u32 %v6630_v60, %v5988_v59  ;;  %v6983_v39 = vld [vmem:[%s7574_s23 + $0x8] sm:$0xff] }
 0x510   : > { %4023 = vmatpush.bf16.msra.mxu0 %v5827_v3  ;;  %v5698_v22 = vld [vmem:[#allocation10 + $0x80] sm:$0xf]  ;;  %v5700_v49 = vld [vmem:[#allocation10 + $0xa0] sm:$0xf0]  ;;  %v5866_v60 = vld [vmem:[#allocation10 + $0x1c8] sm:$0xf] }
 0x511   : > { %v6562_v56 = vld [vmem:[#allocation10 + $0x9c] sm:$0xf0]  ;;  %4068 = vmatpush.bf16.msra.mxu3 %v5991_v11  ;;  %v5703_v53 = vor.u32 %v6558_v21, %v5700_v49  ;;  %v5924_v36 = vld [vmem:[#allocation10 + $0x260] sm:$0xf0]  ;;  %v6124_v11 = vld [vmem:[#allocation10 + $0x3e8] sm:$0xf0] }
 0x512   : > { %v5954_v2 = vld [vmem:[#allocation10 + $0x280] sm:$0xf]  ;;  %v5699_v48 = vor.u32 %v6562_v56, %v5698_v22  ;;  %v6542_v44 = vld [vmem:[#allocation10 + $0x4] sm:$0xf]  ;;  %v5868_v22 = vld [vmem:[#allocation10 + $0x1e8] sm:$0xf0] }
 0x513   : > { %4037 = vmatpush.bf16.msra.mxu1 %v6083_v43  ;;  %4051 = vmatpush.bf16.msra.mxu2 %v5831_v6  ;;  %v5955_v6 = vor.u32 %v6626_v23, %v5954_v2  ;;  %v6606_v25 = vld [vmem:[#allocation10 + $0x204] sm:$0xf]  ;;  %v6663_v56 = vld [vmem:[#allocation10 + $0x3cc] sm:$0xf]  ;;  %v5834_v23 = vld [vmem:[#allocation10 + $0x188] sm:$0xf] }
 0x514   : > { %4024 = vmatpush.bf16.msra.mxu0 %v5795_v32  ;;  %v5892_v16 = vld [vmem:[#allocation10 + $0x220] sm:$0xf0]  ;;  %v6127_v2 = vor.u32 %v6663_v56, %v6124_v11  ;;  %v6595_v21 = vld [vmem:[#allocation10 + $0x1a4] sm:$0xf0] }
 0x515   : > { %4069 = vmatpush.bf16.msra.mxu3 %v5959_v40  ;;  %v5895_v59 = vor.u32 %v6606_v25, %v5892_v16  ;;  %v5835_v45 = vor.u32 %v6595_v21, %v5834_v23  ;;  %v6635_v25 = vld [vmem:[#allocation10 + $0x2e4] sm:$0xf0]  ;;  %v6567_v16 = vld [vmem:[#allocation10 + $0xcc] sm:$0xf] }
 0x516   : > { %v6563_v56 = vld [vmem:[#allocation10 + $0xa4] sm:$0xf0]  ;;  %v6559_v23 = vld [vmem:[#allocation10 + $0x8c] sm:$0xf] }
 0x517   : > { %4038 = vmatpush.bf16.msra.mxu1 %v6051_v37  ;;  %4052 = vmatpush.bf16.msra.mxu2 %v5799_v41  ;;  %v5708_v21 = vld [vmem:[#allocation10 + $0xa8] sm:$0xf0] }
 0x518   : > { %4025 = vmatpush.bf16.msra.mxu0 %v5763_v17  ;;  %v5634_v17 = vld [vmem:[#allocation10] sm:$0xf] }
 0x51b   : > { %4039 = vmatpush.bf16.msra.mxu1 %v6019_v61  ;;  %4053 = vmatpush.bf16.msra.mxu2 %v5767_v19  ;;  %v6546_v61 = vld [vmem:[#allocation10 + $0x1c] sm:$0xf0] }
 0x51c   : > { %4026 = vmatpush.bf16.msra.mxu0 %v5731_v33  ;;  %v5890_v19 = vld [vmem:[#allocation10 + $0x200] sm:$0xf]  ;;  %v5635_v52 = vor.u32 %v6546_v61, %v5634_v17  ;;  %v6667_v33 = vld [vmem:[#allocation10 + $0x3e4] sm:$0xf0] }
 0x51d   : > { %v5891_v15 = vor.u32 %v6610_v5, %v5890_v19  ;;  %v6639_v19 = vld [vmem:[#allocation10 + $0x30c] sm:$0xf]  ;;  %v5738_v5 = vld [vmem:[#allocation10 + $0xc8] sm:$0xf] }
 0x51f   : > { %4040 = vmatpush.bf16.msra.mxu1 %v5987_v8  ;;  %4054 = vmatpush.bf16.msra.mxu2 %v5735_v7  ;;  %v6599_v7 = vld [vmem:[#allocation10 + $0x1cc] sm:$0xf] }
 0x520   : > { %4027 = vmatpush.bf16.msra.mxu0 %v5699_v48 }
 0x523   : > { %4041 = vmatpush.bf16.msra.mxu1 %v5955_v6  ;;  %4055 = vmatpush.bf16.msra.mxu2 %v5703_v53  ;;  %v6655_v6 = vld [vmem:[#allocation10 + $0x38c] sm:$0xf] }
 0x524   : > { %v6092_v53 = vld [vmem:[#allocation10 + $0x3a8] sm:$0xf0] }
 0x525   : > { %v6095_v40 = vor.u32 %v6655_v6, %v6092_v53  ;;  %v5930_v6 = vld [vmem:[#allocation10 + $0x248] sm:$0xf] }
 0x527   : > { %4056 = vmatpush.bf16.msra.mxu2 %v5671_v51  ;;  %v6643_v51 = vld [vmem:[#allocation10 + $0x324] sm:$0xf0] }
 0x528   : > { %v6027_v17 = vor.u32 %v6643_v51, %v6026_v14  ;;  %v6611_v14 = vld [vmem:[#allocation10 + $0x224] sm:$0xf0]  ;;  %v5644_v51 = vld [vmem:[#allocation10 + $0x28] sm:$0xf0] }
 0x58a   : > { %v3167_v54 = vpop.f32.mrf.mxu1 }
 0x58b   : > { %v3153_v12 = vpop.f32.mrf.mxu0 }
 0x58c   : > { %v3168_v46 = vadd.f32 %v3167_v54, %v3153_v12  ;;  %v5667_v54 = vor.u32 %v6554_v13, %v5666_v0  ;;  %v6618_v12 = vld [vmem:[#allocation10 + $0x25c] sm:$0xf0]  ;;  %v6647_v0 = vld [vmem:[#allocation10 + $0x34c] sm:$0xf] }
 0x58d   : > { %v5923_v27 = vor.u32 %v6618_v12, %v5922_v38  ;;  %v6060_v13 = vld [vmem:[#allocation10 + $0x368] sm:$0xf0]  ;;  %v5770_v12 = vld [vmem:[#allocation10 + $0x108] sm:$0xf] }
 0x58e   : > { %v8547_v58 = vadd.f32 %v6982_v55, %v3168_v46  ;;  %4028 = vmatpush.bf16.msra.mxu0 %v5667_v54  ;;  %v5927_v46 = vor.u32 %v6614_v47, %v5924_v36  ;;  %v6603_v55 = vld [vmem:[#allocation10 + $0x1e4] sm:$0xf0]  ;;  %v6063_v54 = vor.u32 %v6647_v0, %v6060_v13  ;;  %v6575_v47 = vld [vmem:[#allocation10 + $0x10c] sm:$0xf] }
 0x58f   : > { %4042 = vmatpush.bf16.msra.mxu1 %v5923_v27  ;;  %v5771_v27 = vor.u32 %v6579_v26, %v5770_v12  ;;  %v5772_v36 = vld [vmem:[#allocation10 + $0x128] sm:$0xf0]  ;;  %v5898_v12 = vld [vmem:[#allocation10 + $0x208] sm:$0xf] }
 0x590   : > { %v3195_v28 = vpop.f32.mrf.mxu3  ;;  %v3205_v43 = vmul.f32 %v8547_v58, %v8547_v58  ;;  %4070 = vmatpush.bf16.msra.mxu3 %v5927_v46  ;;  %v5775_v61 = vor.u32 %v6575_v47, %v5772_v36 }
 0x591   : > { %v3181_v9 = vpop.f32.mrf.mxu2 }
 0x592   : > { %v3196_v35 = vadd.f32 %v3195_v28, %v3181_v9  ;;  %v3169_v3 = vpop.f32.mrf.mxu1  ;;  %v5636_v28 = vld [vmem:[#allocation10 + $0x20] sm:$0xf0]  ;;  %v6122_v9 = vld [vmem:[#allocation10 + $0x3c8] sm:$0xf]  ;;  %4029 = vmatpush.bf16.msra.mxu0 %v5635_v52  ;;  %v6028_v52 = vld [vmem:[#allocation10 + $0x328] sm:$0xf0] }
 0x593   : > { %v3155_v18 = vpop.f32.mrf.mxu0  ;;  %v5639_v34 = vor.u32 %v6542_v44, %v5636_v28  ;;  %v6123_v8 = vor.u32 %v6667_v33, %v6122_v9  ;;  %4043 = vmatpush.bf16.msra.mxu1 %v5891_v15  ;;  %v6031_v28 = vor.u32 %v6639_v19, %v6028_v52  ;;  %v6571_v15 = vld [vmem:[#allocation10 + $0xe4] sm:$0xf0]  ;;  %v5899_v52 = vor.u32 %v6611_v14, %v5898_v12  ;;  %v5812_v12 = vld [vmem:[#allocation10 + $0x170] sm:$0xf0] }
 0x594   : > { %v8550_v63 = vadd.f32 %v6983_v39, %v3196_v35  ;;  %v3170_v62 = vadd.f32 %v3169_v3, %v3155_v18  ;;  %v5867_v35 = vor.u32 %v6603_v55, %v5866_v60  ;;  %v5871_v18 = vor.u32 %v6599_v7, %v5868_v22  ;;  %4071 = vmatpush.bf16.msra.mxu3 %v5895_v59  ;;  %v6090_v39 = vld [vmem:[#allocation10 + $0x388] sm:$0xf]  ;;  %v6591_v3 = vld [vmem:[#allocation10 + $0x18c] sm:$0xf]  ;;  %v6068_v14 = vld [vmem:[#allocation10 + $0x370] sm:$0xf0] }
 0x595   : > { %4057 = vmatpush.bf16.msra.mxu2 %v5639_v34  ;;  %v5994_v34 = vld [vmem:[#allocation10 + $0x2c8] sm:$0xf]  ;;  %v5740_v60 = vld [vmem:[#allocation10 + $0xe8] sm:$0xf0]  ;;  %v5739_v33 = vor.u32 %v6571_v15, %v5738_v5 }
 0x596   : > { %v3206_v24 = vmul.f32 %v8550_v63, %v8550_v63  ;;  %v8557_v50 = vadd.f32 %v6984_v31, %v3170_v62  ;;  %4078 = vmatpush.bf16.msrb.mxu0 %v5867_v35  ;;  %v6091_v62 = vor.u32 %v6659_v42, %v6090_v39  ;;  %v6631_v59 = vld [vmem:[#allocation10 + $0x2cc] sm:$0xf]  ;;  %v5743_v7 = vor.u32 %v6567_v16, %v5740_v60  ;;  %v5706_v22 = vld [vmem:[#allocation10 + $0x88] sm:$0xf] }
 0x597   : > { %4092 = vmatpush.bf16.msrb.mxu1 %v6123_v8  ;;  %v5996_v35 = vld [vmem:[#allocation10 + $0x2e8] sm:$0xf0]  ;;  %v5707_v42 = vor.u32 %v6563_v56, %v5706_v22  ;;  %v6668_v22 = vld [vmem:[#allocation10 + $0x3ec] sm:$0xf0] }
 0x598   : > { %v3209_v1 = vadd.f32 %v3206_v24, %v3205_v43  ;;  %v3197_v10 = vpop.f32.mrf.mxu3  ;;  %v3207_v20 = vmul.f32 %v8557_v50, %v8557_v50  ;;  %v5836_v43 = vld [vmem:[#allocation10 + $0x1a8] sm:$0xf0]  ;;  %4120 = vmatpush.bf16.msrb.mxu3 %v6127_v2  ;;  %v5999_v11 = vor.u32 %v6631_v59, %v5996_v35  ;;  %v6627_v2 = vld [vmem:[#allocation10 + $0x2a4] sm:$0xf0] }
 0x599   : > { %v3183_v57 = vpop.f32.mrf.mxu2  ;;  %4106 = vmatpush.bf16.msrb.mxu2 %v5871_v18  ;;  %v5839_v24 = vor.u32 %v6591_v3, %v5836_v43  ;;  %v5962_v18 = vld [vmem:[#allocation10 + $0x288] sm:$0xf] }
 0x59a   : > { %v3198_v32 = vadd.f32 %v3197_v10, %v3183_v57  ;;  %3210 = vadd.xlane.f32.xlu2 %v3209_v1  ;;  %4079 = vmatpush.bf16.msrb.mxu0 %v5835_v45  ;;  %v5802_v10 = vld [vmem:[#allocation10 + $0x148] sm:$0xf]  ;;  %v5964_v45 = vld [vmem:[#allocation10 + $0x2a8] sm:$0xf0] }
 0x59b   : > { %v6587_v57 = vld [vmem:[#allocation10 + $0x164] sm:$0xf0]  ;;  %4093 = vmatpush.bf16.msrb.mxu1 %v6091_v62  ;;  %v5711_v62 = vor.u32 %v6559_v23, %v5708_v21  ;;  %v5876_v23 = vld [vmem:[#allocation10 + $0x1f0] sm:$0xf0] }
 0x59c   : > { %v8560_v29 = vadd.f32 %v6985_v30, %v3198_v32  ;;  %v5803_v31 = vor.u32 %v6587_v57, %v5802_v10  ;;  %v6058_v32 = vld [vmem:[#allocation10 + $0x348] sm:$0xf]  ;;  %4121 = vmatpush.bf16.msrb.mxu3 %v6095_v40  ;;  %v6551_v10 = vld [vmem:[#allocation10 + $0x4c] sm:$0xf]  ;;  %v6664_v21 = vld [vmem:[#allocation10 + $0x3d4] sm:$0xf] }
 0x59d   : > { %4107 = vmatpush.bf16.msrb.mxu2 %v5839_v24  ;;  %v6651_v30 = vld [vmem:[#allocation10 + $0x364] sm:$0xf0]  ;;  %v5676_v57 = vld [vmem:[#allocation10 + $0x68] sm:$0xf0] }
 0x59e   : > { %v3208_v37 = vmul.f32 %v8560_v29, %v8560_v29  ;;  %4080 = vmatpush.bf16.msrb.mxu0 %v5803_v31  ;;  %v5674_v3 = vld [vmem:[#allocation10 + $0x48] sm:$0xf]  ;;  %v5679_v13 = vor.u32 %v6551_v10, %v5676_v57  ;;  %v5844_v10 = vld [vmem:[#allocation10 + $0x1b0] sm:$0xf0] }
 0x59f   : > { %v6555_v24 = vld [vmem:[#allocation10 + $0x64] sm:$0xf0]  ;;  %v6656_v57 = vld [vmem:[#allocation10 + $0x394] sm:$0xf] }
 0x5a0   : > { %v3212_v41 = vadd.f32 %v3208_v37, %v3207_v20  ;;  %v6583_v20 = vld [vmem:[#allocation10 + $0x14c] sm:$0xf]  ;;  %v6059_v37 = vor.u32 %v6651_v30, %v6058_v32  ;;  %4122 = vmatpush.bf16.msrb.mxu3 %v6063_v54  ;;  %v6619_v40 = vld [vmem:[#allocation10 + $0x264] sm:$0xf0] }
 0x5a1   : > { %v6615_v32 = vld [vmem:[#allocation10 + $0x24c] sm:$0xf]  ;;  %v5931_v0 = vor.u32 %v6619_v40, %v5930_v6  ;;  %v6547_v54 = vld [vmem:[#allocation10 + $0x24] sm:$0xf0]  ;;  %v6098_v6 = vld [vmem:[#allocation10 + $0x390] sm:$0xf] }
 0x5a2   : > { %3213 = vadd.xlane.f32.xlu2 %v3212_v41  ;;  %v5804_v41 = vld [vmem:[#allocation10 + $0x168] sm:$0xf0]  ;;  %4094 = vmatpush.bf16.msrb.mxu1 %v6059_v37  ;;  %v5675_v37 = vor.u32 %v6555_v24, %v5674_v3  ;;  %v6592_v40 = vld [vmem:[#allocation10 + $0x194] sm:$0xf] }
 0x5a3   : > { %v5807_v38 = vor.u32 %v6583_v20, %v5804_v41  ;;  %4081 = vmatpush.bf16.msrb.mxu0 %v5771_v27  ;;  %v5932_v30 = vld [vmem:[#allocation10 + $0x268] sm:$0xf0] }
 0x5a4   : > { %4123 = vmatpush.bf16.msrb.mxu3 %v6031_v28  ;;  %v5935_v26 = vor.u32 %v6615_v32, %v5932_v30  ;;  %v6543_v27 = vld [vmem:[#allocation10 + $0xc] sm:$0xf]  ;;  %v3204_v28 = vld [vmem:[%s8933_s4] sm:$0x3] }
 0x5a5   : > { %4108 = vmatpush.bf16.msrb.mxu2 %v5807_v38  ;;  %v5642_v38 = vld [vmem:[#allocation10 + $0x8] sm:$0xf]  ;;  %v5647_v5 = vor.u32 %v6543_v27, %v5644_v51  ;;  %v3245_v16 = vperm.slane %v3204_v28, 1 }
 0x5a6   : > { %4095 = vmatpush.bf16.msrb.mxu1 %v6027_v17  ;;  %v5900_v17 = vld [vmem:[#allocation10 + $0x228] sm:$0xf0] }
 0x5a7   : > { %4082 = vmatpush.bf16.msrb.mxu0 %v5739_v33 }
 0x5a8   : > { %4124 = vmatpush.bf16.msrb.mxu3 %v5999_v11 }
 0x5a9   : > { %4109 = vmatpush.bf16.msrb.mxu2 %v5775_v61  ;;  %v5643_v61 = vor.u32 %v6547_v54, %v5642_v38  ;;  %v6652_v38 = vld [vmem:[#allocation10 + $0x36c] sm:$0xf0]  ;;  %v6584_v54 = vld [vmem:[#allocation10 + $0x154] sm:$0xf] }
 0x5ab   : > { %4083 = vmatpush.bf16.msrb.mxu0 %v5707_v42 }
 0x5ad   : > { %4110 = vmatpush.bf16.msrb.mxu2 %v5743_v7  ;;  %v6130_v7 = vld [vmem:[#allocation10 + $0x3d0] sm:$0xf] }
 0x5ae   : > { %v6131_v3 = vor.u32 %v6668_v22, %v6130_v7 }
 0x5af   : > { %4084 = vmatpush.bf16.msrb.mxu0 %v5675_v37  ;;  %v6588_v37 = vld [vmem:[#allocation10 + $0x16c] sm:$0xf0] }
 0x5b1   : > { %4111 = vmatpush.bf16.msrb.mxu2 %v5711_v62 }
 0x5b3   : > { %4085 = vmatpush.bf16.msrb.mxu0 %v5643_v61  ;;  %v6034_v61 = vld [vmem:[#allocation10 + $0x310] sm:$0xf] }
 0x5b5   : > { %4112 = vmatpush.bf16.msrb.mxu2 %v5679_v13  ;;  %v6066_v13 = vld [vmem:[#allocation10 + $0x350] sm:$0xf] }
 0x5b6   : > { %v6067_v51 = vor.u32 %v6652_v38, %v6066_v13  ;;  %v5906_v13 = vld [vmem:[#allocation10 + $0x210] sm:$0xf] }
 0x5b7   : > { %v6612_v38 = vld [vmem:[#allocation10 + $0x22c] sm:$0xf0] }
 0x5b9   : > { %4113 = vmatpush.bf16.msrb.mxu2 %v5647_v5  ;;  %v5780_v5 = vld [vmem:[#allocation10 + $0x130] sm:$0xf0] }
 0x60d   : > { %v3211_v49 = vpop.xlane.xlu2 %3210 }
 0x60e   : > { %v3215_v48 = vmul.f32 %v3211_v49, %v7623_v4  ;;  %v6623_v49 = vld [vmem:[#allocation10 + $0x28c] sm:$0xf] }
 0x60f   : > { %v5967_v53 = vor.u32 %v6623_v49, %v5964_v45 }
 0x610   : > { %v8567_v1 = vadd.f32 1e-05, %v3215_v48  ;;  %v5963_v48 = vor.u32 %v6627_v2, %v5962_v18 }
 0x611   : > { %4125 = vmatpush.bf16.msrb.mxu3 %v5967_v53  ;;  %v6660_v53 = vld [vmem:[#allocation10 + $0x3ac] sm:$0xf0] }
 0x612   : > { %6946 = vrsqrt.f32 %v8567_v1  ;;  %vm3225_vm9 = vweird.f32 %v8567_v1  ;;  %v6099_v30 = vor.u32 %v6660_v53, %v6098_v6 }
 0x615   : > { %v3214_v46 = vpop.xlane.xlu2 %3213  ;;  %4126 = vmatpush.bf16.msrb.mxu3 %v5935_v26  ;;  %v6648_v26 = vld [vmem:[#allocation10 + $0x354] sm:$0xf] }
 0x616   : > { %v3216_v44 = vmul.f32 %v3214_v46, %v7623_v4  ;;  %v5995_v4 = vor.u32 %v6635_v25, %v5994_v34  ;;  %v6607_v46 = vld [vmem:[#allocation10 + $0x20c] sm:$0xf] }
 0x618   : > { %v8571_v55 = vpop.eup %6946  ;;  %v8573_v9 = vadd.f32 1e-05, %v3216_v44  ;;  %4096 = vmatpush.bf16.msrb.mxu1 %v5995_v4  ;;  %v5903_v44 = vor.u32 %v6607_v46, %v5900_v17  ;;  %v6604_v4 = vld [vmem:[#allocation10 + $0x1ec] sm:$0xf0]  ;;  %v5815_v46 = vor.u32 %v6584_v54, %v5812_v12  ;;  %v6071_v17 = vor.u32 %v6648_v26, %v6068_v14  ;;  %v6544_v26 = vld [vmem:[#allocation10 + $0x14] sm:$0xf] }
 0x619   : > { %v3220_v8 = vmul.f32 %v8571_v55, %v8567_v1  ;;  %vm3226_vm7 = vweird.f32 %v8571_v55  ;;  %v3244_v1 = vperm.slane %v3204_v28, 0  ;;  %v6036_v28 = vld [vmem:[#allocation10 + $0x330] sm:$0xf0] }
 0x61a   : > { %6948 = vrsqrt.f32 %v8573_v9  ;;  %vm3227_vm15 = vmor %vm3225_vm9, %vm3226_vm7  ;;  %vm3235_vm1 = vweird.f32 %v8573_v9  ;;  %4127 = vmatpush.bf16.msrb.mxu3 %v5903_v44  ;;  %v6640_v44 = vld [vmem:[#allocation10 + $0x314] sm:$0xf] }
 0x61b   : > { %v3221_v39 = vmul.f32 %v8571_v55, %v3220_v8  ;;  %v5874_v8 = vld [vmem:[#allocation10 + $0x1d0] sm:$0xf]  ;;  %v5652_v14 = vld [vmem:[#allocation10 + $0x30] sm:$0xf0] }
 0x61c   : > { %4097 = vmatpush.bf16.msrb.mxu1 %v5963_v48  ;;  %v5875_v42 = vor.u32 %v6604_v4, %v5874_v8  ;;  %v6596_v48 = vld [vmem:[#allocation10 + $0x1ac] sm:$0xf0]  ;;  %v6632_v8 = vld [vmem:[#allocation10 + $0x2d4] sm:$0xf] }
 0x61d   : > { %v3222_v43 = vmul.f32 0.5, %v3221_v39  ;;  %v6132_v39 = vld [vmem:[#allocation10 + $0x3f0] sm:$0xf0] }
 0x61e   : > { %v6135_v24 = vor.u32 %v6664_v21, %v6132_v39  ;;  %v6004_v4 = vld [vmem:[#allocation10 + $0x2f0] sm:$0xf0] }
 0x61f   : > { %v3223_v31 = vsub.f32 1.5, %v3222_v43  ;;  %v5842_v43 = vld [vmem:[#allocation10 + $0x190] sm:$0xf]  ;;  %v6560_v21 = vld [vmem:[#allocation10 + $0x94] sm:$0xf] }
 0x620   : > { %v6949_v20 = vpop.eup %6948  ;;  %4098 = vmatpush.bf16.msrb.mxu1 %v5931_v0  ;;  %v5843_v32 = vor.u32 %v6596_v48, %v5842_v43  ;;  %v5716_v39 = vld [vmem:[#allocation10 + $0xb0] sm:$0xf0] }
 0x621   : > { %v3230_v41 = vmul.f32 %v6949_v20, %v8573_v9  ;;  %v3224_v47 = vmul.f32 %v8571_v55, %v3223_v31  ;;  %vm3236_vm0 = vweird.f32 %v6949_v20  ;;  %v6600_v9 = vld [vmem:[#allocation10 + $0x1d4] sm:$0xf]  ;;  %v5719_v6 = vor.u32 %v6560_v21, %v5716_v39  ;;  %v6074_v21 = vld [vmem:[#allocation10 + $0x358] sm:$0xf] }
 0x622   : > { %vm3237_vm2 = vmor %vm3235_vm1, %vm3236_vm0  ;;  %v5879_v62 = vor.u32 %v6600_v9, %v5876_v23  ;;  %v6100_v31 = vld [vmem:[#allocation10 + $0x3b0] sm:$0xf0]  ;;  %v5714_v9 = vld [vmem:[#allocation10 + $0x90] sm:$0xf] }
 0x623   : > { %v3231_v36 = vmul.f32 %v6949_v20, %v3230_v41  ;;  %v3228_v15 = vsel %vm3227_vm15, %v8571_v55, %v3224_v47  ;;  %v5847_v41 = vor.u32 %v6592_v40, %v5844_v10  ;;  %v6103_v0 = vor.u32 %v6656_v57, %v6100_v31  ;;  %v5778_v47 = vld [vmem:[#allocation10 + $0x110] sm:$0xf]  ;;  %v6552_v57 = vld [vmem:[#allocation10 + $0x54] sm:$0xf]  ;;  %v6653_v39 = vld [vmem:[#allocation10 + $0x374] sm:$0xf0] }
 0x624   : > { %4099 = vmatpush.bf16.msrb.mxu1 %v5899_v52  ;;  %v3239_v60 = vmul.f32 %v3228_v15, %v8547_v58  ;;  %v3240_v59 = vmul.f32 %v3228_v15, %v8550_v63  ;;  %v6576_v52 = vld [vmem:[#allocation10 + $0x114] sm:$0xf]  ;;  %v6628_v23 = vld [vmem:[#allocation10 + $0x2ac] sm:$0xf0] }
 0x625   : > { %v3232_v19 = vmul.f32 0.5, %v3231_v36  ;;  %v6580_v36 = vld [vmem:[#allocation10 + $0x12c] sm:$0xf0]  ;;  %v5684_v31 = vld [vmem:[#allocation10 + $0x70] sm:$0xf0] }
 0x626   : > { %v3248_v56 = vmul.f32 %v3244_v1, %v3239_v60  ;;  %v3249_v18 = vmul.f32 %v3245_v16, %v3240_v59  ;;  %v5779_v15 = vor.u32 %v6580_v36, %v5778_v47  ;;  %v6039_v60 = vor.u32 %v6640_v44, %v6036_v28  ;;  %v6002_v59 = vld [vmem:[#allocation10 + $0x2d0] sm:$0xf]  ;;  %v5882_v47 = vld [vmem:[#allocation10 + $0x1d8] sm:$0xf]  ;;  %v6665_v44 = vld [vmem:[#allocation10 + $0x3dc] sm:$0xf] }
 0x627   : > { %v3233_v34 = vsub.f32 1.5, %v3232_v19  ;;  %v6644_v19 = vld [vmem:[#allocation10 + $0x32c] sm:$0xf0]  ;;  %v5687_v54 = vor.u32 %v6552_v57, %v5684_v31  ;;  %v6605_v36 = vld [vmem:[#allocation10 + $0x1f4] sm:$0xf0] }
 0x628   : > { %v5938_v40 = vld [vmem:[#allocation10 + $0x250] sm:$0xf]  ;;  %v6140_v28 = vld [vmem:[#allocation10 + $0x3f8] sm:$0xf0]  ;;  %v6042_v57 = vld [vmem:[#allocation10 + $0x318] sm:$0xf] }
 0x629   : > { %v3234_v25 = vmul.f32 %v6949_v20, %v3233_v34  ;;  %v6035_v34 = vor.u32 %v6644_v19, %v6034_v61  ;;  %v6620_v10 = vld [vmem:[#allocation10 + $0x26c] sm:$0xf0]  ;;  %v6601_v61 = vld [vmem:[#allocation10 + $0x1dc] sm:$0xf]  ;;  %v6645_v31 = vld [vmem:[#allocation10 + $0x334] sm:$0xf0] }
 0x62b   : > { %v3238_v33 = vsel %vm3237_vm2, %v6949_v20, %v3234_v25  ;;  %v5810_v20 = vld [vmem:[#allocation10 + $0x150] sm:$0xf] }
 0x62c   : > { %v3241_v35 = vmul.f32 %v3238_v33, %v8557_v50  ;;  %v3242_v55 = vmul.f32 %v3238_v33, %v8560_v29  ;;  %v5811_v27 = vor.u32 %v6588_v37, %v5810_v20  ;;  %v5746_v25 = vld [vmem:[#allocation10 + $0xd0] sm:$0xf] }
 0x62d   : > { %v6636_v33 = vld [vmem:[#allocation10 + $0x2ec] sm:$0xf0] }
 0x62e   : > { %v3250_v11 = vmul.f32 %v3244_v1, %v3241_v35  ;;  %v3251_v2 = vmul.f32 %v3245_v16, %v3242_v55  ;;  %v6572_v1 = vld [vmem:[#allocation10 + $0xec] sm:$0xf0]  ;;  %v5783_v16 = vor.u32 %v6576_v52, %v5780_v5  ;;  %v6568_v35 = vld [vmem:[#allocation10 + $0xd4] sm:$0xf]  ;;  %v6003_v22 = vor.u32 %v6636_v33, %v6002_v59  ;;  %v5884_v5 = vld [vmem:[#allocation10 + $0x1f8] sm:$0xf0] }
 0x62f   : > { %v5748_v55 = vld [vmem:[#allocation10 + $0xf0] sm:$0xf0]  ;;  %v5747_v7 = vor.u32 %v6572_v1, %v5746_v25  ;;  %v5650_v20 = vld [vmem:[#allocation10 + $0x10] sm:$0xf]  ;;  %v5907_v52 = vor.u32 %v6612_v38, %v5906_v13  ;;  %v5883_v25 = vor.u32 %v6605_v36, %v5882_v47  ;;  %v5887_v59 = vor.u32 %v6601_v61, %v5884_v5  ;;  %v5754_v13 = vld [vmem:[#allocation10 + $0xd8] sm:$0xf] }
 0x630   : > { %v8592_v49 = vpack.c.bf16 %v3250_v11, %v3248_v56  ;;  %v8594_v45 = vpack.c.bf16 %v3251_v2, %v3249_v18  ;;  %v6564_v56 = vld [vmem:[#allocation10 + $0xac] sm:$0xf0]  ;;  %v5751_v18 = vor.u32 %v6568_v35, %v5748_v55  ;;  %v6007_v11 = vor.u32 %v6632_v8, %v6004_v4  ;;  %v6106_v35 = vld [vmem:[#allocation10 + $0x398] sm:$0xf]  ;;  %v6593_v8 = vld [vmem:[#allocation10 + $0x19c] sm:$0xf] }
 0x631   : > { %v5970_v2 = vld [vmem:[#allocation10 + $0x290] sm:$0xf]  ;;  %v5715_v43 = vor.u32 %v6564_v56, %v5714_v9  ;;  %v6143_v33 = vor.u32 %v6665_v44, %v6140_v28  ;;  %v6661_v55 = vld [vmem:[#allocation10 + $0x3b4] sm:$0xf0]  ;;  %v5852_v4 = vld [vmem:[#allocation10 + $0x1b8] sm:$0xf0] }
 0x632   : > { %4030 = vmatmul.bf16.vlgmr.msra.gmra.mxu0 %v8592_v49  ;;  %4044 = vmatmul.bf16.vlgmr.msra.gmra.mxu1 %v8594_v45  ;;  %v5971_v48 = vor.u32 %v6628_v23, %v5970_v2  ;;  %v6107_v56 = vor.u32 %v6661_v55, %v6106_v35  ;;  %v5855_v2 = vor.u32 %v6593_v8, %v5852_v4  ;;  %v6573_v38 = vld [vmem:[#allocation10 + $0xf4] sm:$0xf0]  ;;  %v6633_v47 = vld [vmem:[#allocation10 + $0x2dc] sm:$0xf] }
 0x633   : > { %4058 = vmatmul.bf16.vlgmr.msra.gmra.mxu2 %v8592_v49  ;;  %4072 = vmatmul.bf16.vlgmr.msra.gmra.mxu3 %v8594_v45  ;;  %v6012_v36 = vld [vmem:[#allocation10 + $0x2f8] sm:$0xf0]  ;;  %v5722_v61 = vld [vmem:[#allocation10 + $0x98] sm:$0xf] }
 0x634   : > { %4134 = vmatpush.bf16.msra.mxu0 %v5875_v42  ;;  %4148 = vmatpush.bf16.msra.mxu1 %v6131_v3  ;;  %v6624_v42 = vld [vmem:[#allocation10 + $0x294] sm:$0xf]  ;;  %v6015_v5 = vor.u32 %v6633_v47, %v6012_v36  ;;  %v5978_v44 = vld [vmem:[#allocation10 + $0x298] sm:$0xf]  ;;  %v6186_v47 = vld [vmem:[#allocation11 + $0x40] sm:$0xf] }
 0x635   : > { %4162 = vmatpush.bf16.msra.mxu2 %v5879_v62  ;;  %4176 = vmatpush.bf16.msra.mxu3 %v6135_v24  ;;  %v5972_v3 = vld [vmem:[#allocation10 + $0x2b0] sm:$0xf0]  ;;  %v5682_v62 = vld [vmem:[#allocation10 + $0x50] sm:$0xf]  ;;  %v6629_v28 = vld [vmem:[#allocation10 + $0x2b4] sm:$0xf0] }
 0x636   : > { %v6556_v24 = vld [vmem:[#allocation10 + $0x6c] sm:$0xf0]  ;;  %v5975_v53 = vor.u32 %v6624_v42, %v5972_v3  ;;  %v6585_v42 = vld [vmem:[#allocation10 + $0x15c] sm:$0xf]  ;;  %v5946_v8 = vld [vmem:[#allocation10 + $0x258] sm:$0xf] }
 0x637   : > { %v5683_v37 = vor.u32 %v6556_v24, %v5682_v62  ;;  %v5820_v3 = vld [vmem:[#allocation10 + $0x178] sm:$0xf0]  ;;  %v6075_v24 = vor.u32 %v6653_v39, %v6074_v21  ;;  %v6621_v4 = vld [vmem:[#allocation10 + $0x274] sm:$0xf0]  ;;  %v6679_v36 = vld [vmem:[#allocation11 + $0x44] sm:$0xf0] }
 0x638   : > { %4135 = vmatpush.bf16.msra.mxu0 %v5843_v32  ;;  %4149 = vmatpush.bf16.msra.mxu1 %v6099_v30  ;;  %v6616_v32 = vld [vmem:[#allocation10 + $0x254] sm:$0xf] }
 0x639   : > { %4163 = vmatpush.bf16.msra.mxu2 %v5847_v41  ;;  %4177 = vmatpush.bf16.msra.mxu3 %v6103_v0  ;;  %v5940_v30 = vld [vmem:[#allocation10 + $0x270] sm:$0xf0]  ;;  %v5939_v41 = vor.u32 %v6620_v10, %v5938_v40  ;;  %v6548_v0 = vld [vmem:[#allocation10 + $0x2c] sm:$0xf0]  ;;  %v5823_v40 = vor.u32 %v6585_v42, %v5820_v3  ;;  %v5914_v42 = vld [vmem:[#allocation10 + $0x218] sm:$0xf] }
 0x63a   : > { %v5943_v12 = vor.u32 %v6616_v32, %v5940_v30  ;;  %v5651_v19 = vor.u32 %v6548_v0, %v5650_v20  ;;  %v6577_v32 = vld [vmem:[#allocation10 + $0x11c] sm:$0xf]  ;;  %v6043_v0 = vor.u32 %v6645_v31, %v6042_v57  ;;  %v6613_v3 = vld [vmem:[#allocation10 + $0x234] sm:$0xf0]  ;;  %v6210_v57 = vld [vmem:[#allocation11 + $0x70] sm:$0xf] }
 0x63b   : > { %v5788_v30 = vld [vmem:[#allocation10 + $0x138] sm:$0xf0]  ;;  %v6685_v31 = vld [vmem:[#allocation11 + $0x74] sm:$0xf0] }
 0x63c   : > { %4136 = vmatpush.bf16.msra.mxu0 %v5811_v27  ;;  %4150 = vmatpush.bf16.msra.mxu1 %v6067_v51  ;;  %v6608_v27 = vld [vmem:[#allocation10 + $0x214] sm:$0xf]  ;;  %v6641_v20 = vld [vmem:[#allocation10 + $0x31c] sm:$0xf] }
 0x63d   : > { %4164 = vmatpush.bf16.msra.mxu2 %v5815_v46  ;;  %4178 = vmatpush.bf16.msra.mxu3 %v6071_v17  ;;  %v5908_v51 = vld [vmem:[#allocation10 + $0x230] sm:$0xf0]  ;;  %v6138_v46 = vld [vmem:[#allocation10 + $0x3d8] sm:$0xf] }
 0x63e   : > { %v6669_v17 = vld [vmem:[#allocation10 + $0x3f4] sm:$0xf0] }
 0x63f   : > { %v6139_v1 = vor.u32 %v6669_v17, %v6138_v46  ;;  %v5755_v46 = vor.u32 %v6573_v38, %v5754_v13  ;;  %v6194_v38 = vld [vmem:[#allocation11 + $0x50] sm:$0xf] }
 0x640   : > { %4137 = vmatpush.bf16.msra.mxu0 %v5779_v15  ;;  %4151 = vmatpush.bf16.msra.mxu1 %v6035_v34  ;;  %v5655_v15 = vor.u32 %v6544_v26, %v5652_v14  ;;  %v5911_v34 = vor.u32 %v6608_v27, %v5908_v51  ;;  %v6010_v26 = vld [vmem:[#allocation10 + $0x2d8] sm:$0xf]  ;;  %v6569_v27 = vld [vmem:[#allocation10 + $0xdc] sm:$0xf] }
 0x641   : > { %4165 = vmatpush.bf16.msra.mxu2 %v5783_v16  ;;  %4179 = vmatpush.bf16.msra.mxu3 %v6039_v60  ;;  %v5850_v16 = vld [vmem:[#allocation10 + $0x198] sm:$0xf]  ;;  %v5756_v51 = vld [vmem:[#allocation10 + $0xf8] sm:$0xf0] }
 0x642   : > { %4086 = vmatmul.bf16.vlgmr.msrb.gmra.mxu0 %v8592_v49  ;;  %4100 = vmatmul.bf16.vlgmr.msrb.gmra.mxu1 %v8594_v45  ;;  %v6597_v60 = vld [vmem:[#allocation10 + $0x1b4] sm:$0xf0] }
 0x643   : > { %4114 = vmatmul.bf16.vlgmr.msrb.gmra.mxu2 %v8592_v49  ;;  %4128 = vmatmul.bf16.vlgmr.msrb.gmra.mxu3 %v8594_v45  ;;  %v5851_v9 = vor.u32 %v6597_v60, %v5850_v16  ;;  %v6637_v14 = vld [vmem:[#allocation10 + $0x2f4] sm:$0xf0]  ;;  %v5979_v60 = vor.u32 %v6629_v28, %v5978_v44 }
 0x644   : > { %4138 = vmatpush.bf16.msra.mxu0 %v5747_v7  ;;  %4152 = vmatpush.bf16.msra.mxu1 %v6003_v22  ;;  %v6657_v7 = vld [vmem:[#allocation10 + $0x39c] sm:$0xf]  ;;  %v6011_v17 = vor.u32 %v6637_v14, %v6010_v26  ;;  %v6677_v44 = vld [vmem:[#allocation11 + $0x34] sm:$0xf0] }
 0x645   : > { %4166 = vmatpush.bf16.msra.mxu2 %v5751_v18  ;;  %4180 = vmatpush.bf16.msra.mxu3 %v6007_v11  ;;  %v6108_v22 = vld [vmem:[#allocation10 + $0x3b8] sm:$0xf0]  ;;  %v5818_v18 = vld [vmem:[#allocation10 + $0x158] sm:$0xf] }
 0x646   : > { %v6589_v11 = vld [vmem:[#allocation10 + $0x174] sm:$0xf0]  ;;  %v6111_v23 = vor.u32 %v6657_v7, %v6108_v22  ;;  %v6553_v7 = vld [vmem:[#allocation10 + $0x5c] sm:$0xf] }
 0x647   : > { %v5819_v62 = vor.u32 %v6589_v11, %v5818_v18  ;;  %v5692_v22 = vld [vmem:[#allocation10 + $0x78] sm:$0xf0]  ;;  %v5947_v11 = vor.u32 %v6621_v4, %v5946_v8  ;;  %v6170_v8 = vld [vmem:[#allocation11 + $0x20] sm:$0xf]  ;;  %v6675_v4 = vld [vmem:[#allocation11 + $0x24] sm:$0xf0] }
 0x648   : > { %4139 = vmatpush.bf16.msra.mxu0 %v5715_v43  ;;  %4153 = vmatpush.bf16.msra.mxu1 %v5971_v48  ;;  %v6649_v43 = vld [vmem:[#allocation10 + $0x35c] sm:$0xf]  ;;  %v5695_v21 = vor.u32 %v6553_v7, %v5692_v22 }
 0x649   : > { %4167 = vmatpush.bf16.msra.mxu2 %v5719_v6  ;;  %4181 = vmatpush.bf16.msra.mxu3 %v5975_v53  ;;  %v6076_v48 = vld [vmem:[#allocation10 + $0x378] sm:$0xf0]  ;;  %v5786_v6 = vld [vmem:[#allocation10 + $0x118] sm:$0xf] }
 0x64a   : > { %v6581_v53 = vld [vmem:[#allocation10 + $0x134] sm:$0xf0]  ;;  %v6079_v10 = vor.u32 %v6649_v43, %v6076_v48  ;;  %v6545_v43 = vld [vmem:[#allocation10 + $0x1c] sm:$0xf] }
 0x64b   : > { %v5660_v48 = vld [vmem:[#allocation10 + $0x38] sm:$0xf0] }
 0x64c   : > { %4140 = vmatpush.bf16.msra.mxu0 %v5683_v37  ;;  %4154 = vmatpush.bf16.msra.mxu1 %v5939_v41  ;;  %v6044_v37 = vld [vmem:[#allocation10 + $0x338] sm:$0xf0]  ;;  %v5787_v41 = vor.u32 %v6581_v53, %v5786_v6  ;;  %v5915_v53 = vor.u32 %v6613_v3, %v5914_v42  ;;  %v6673_v42 = vld [vmem:[#allocation11 + $0x14] sm:$0xf0] }
 0x64d   : > { %4168 = vmatpush.bf16.msra.mxu2 %v5687_v54  ;;  %4182 = vmatpush.bf16.msra.mxu3 %v5943_v12  ;;  %v5791_v54 = vor.u32 %v6577_v32, %v5788_v30  ;;  %v6047_v12 = vor.u32 %v6641_v20, %v6044_v37  ;;  %v6211_v32 = vor.u32 %v6685_v31, %v6210_v57  ;;  %v6202_v30 = vld [vmem:[#allocation11 + $0x60] sm:$0xf]  ;;  %v6683_v20 = vld [vmem:[#allocation11 + $0x64] sm:$0xf0] }
 0x64e   : > { %v6203_v37 = vor.u32 %v6683_v20, %v6202_v30  ;;  %v6154_v31 = vld [vmem:[#allocation11] sm:$0xf] }
 0x650   : > { %4141 = vmatpush.bf16.msra.mxu0 %v5651_v19  ;;  %4155 = vmatpush.bf16.msra.mxu1 %v5907_v52  ;;  %v6565_v19 = vld [vmem:[#allocation10 + $0xb4] sm:$0xf0]  ;;  %v5759_v52 = vor.u32 %v6569_v27, %v5756_v51  ;;  %v6699_v27 = vld [vmem:[#allocation11 + $0xe4] sm:$0xf0] }
 0x651   : > { %4169 = vmatpush.bf16.msra.mxu2 %v5655_v15  ;;  %4183 = vmatpush.bf16.msra.mxu3 %v5911_v34  ;;  %v6561_v15 = vld [vmem:[#allocation10 + $0x9c] sm:$0xf]  ;;  %v5723_v16 = vor.u32 %v6565_v19, %v5722_v61  ;;  %v6258_v61 = vld [vmem:[#allocation11 + $0xd0] sm:$0xf]  ;;  %v6697_v19 = vld [vmem:[#allocation11 + $0xd4] sm:$0xf0] }
 0x652   : > { %v5724_v34 = vld [vmem:[#allocation10 + $0xb8] sm:$0xf0] }
 0x653   : > { %4142 = vmatmul.bf16.vlgmr.msra.gmra.mxu0 %v8592_v49  ;;  %4156 = vmatmul.bf16.vlgmr.msra.gmra.mxu1 %v8594_v45  ;;  %v5727_v35 = vor.u32 %v6561_v15, %v5724_v34 }
 0x654   : > { %4190 = vmatpush.bf16.msrb.mxu0 %v5883_v25  ;;  %4204 = vmatpush.bf16.msrb.mxu1 %v6139_v1  ;;  %v6625_v25 = vld [vmem:[#allocation10 + $0x29c] sm:$0xf] }
 0x655   : > { %4218 = vmatpush.bf16.msrb.mxu2 %v5887_v59  ;;  %4232 = vmatpush.bf16.msrb.mxu3 %v6143_v33  ;;  %v5980_v1 = vld [vmem:[#allocation10 + $0x2b8] sm:$0xf0]  ;;  %v5690_v59 = vld [vmem:[#allocation10 + $0x58] sm:$0xf] }
 0x656   : > { %4170 = vmatmul.bf16.vlgmr.msra.gmra.mxu2 %v8592_v49  ;;  %4184 = vmatmul.bf16.vlgmr.msra.gmra.mxu3 %v8594_v45  ;;  %v6557_v33 = vld [vmem:[#allocation10 + $0x74] sm:$0xf0]  ;;  %v5983_v55 = vor.u32 %v6625_v25, %v5980_v1 }
 0x657   : > { %v5691_v18 = vor.u32 %v6557_v33, %v5690_v59  ;;  %v6695_v59 = vld [vmem:[#allocation11 + $0xc4] sm:$0xf0] }
 0x658   : > { %4191 = vmatpush.bf16.msrb.mxu0 %v5851_v9  ;;  %4205 = vmatpush.bf16.msrb.mxu1 %v6107_v56  ;;  %v6617_v9 = vld [vmem:[#allocation10 + $0x25c] sm:$0xf] }
 0x659   : > { %4219 = vmatpush.bf16.msrb.mxu2 %v5855_v2  ;;  %4233 = vmatpush.bf16.msrb.mxu3 %v6111_v23  ;;  %v5948_v56 = vld [vmem:[#allocation10 + $0x278] sm:$0xf0]  ;;  %v5658_v2 = vld [vmem:[#allocation10 + $0x18] sm:$0xf] }
 0x65a   : > { %v6549_v23 = vld [vmem:[#allocation10 + $0x34] sm:$0xf0]  ;;  %v5951_v39 = vor.u32 %v6617_v9, %v5948_v56  ;;  %v6171_v9 = vor.u32 %v6675_v4, %v6170_v8 }
 0x65b   : > { %v5659_v6 = vor.u32 %v6549_v23, %v5658_v2  ;;  %v6162_v23 = vld [vmem:[#allocation11 + $0x10] sm:$0xf] }
 0x65c   : > { %4192 = vmatpush.bf16.msrb.mxu0 %v5819_v62  ;;  %4206 = vmatpush.bf16.msrb.mxu1 %v6075_v24  ;;  %v6609_v62 = vld [vmem:[#allocation10 + $0x21c] sm:$0xf] }
 0x65d   : > { %4220 = vmatpush.bf16.msrb.mxu2 %v5823_v40  ;;  %4234 = vmatpush.bf16.msrb.mxu3 %v6079_v10  ;;  %v5916_v24 = vld [vmem:[#allocation10 + $0x238] sm:$0xf0]  ;;  %v5663_v40 = vor.u32 %v6545_v43, %v5660_v48 }
 0x65e   : > { %v5919_v10 = vor.u32 %v6609_v62, %v5916_v24  ;;  %v6163_v62 = vor.u32 %v6673_v42, %v6162_v23  ;;  %v6234_v24 = vld [vmem:[#allocation11 + $0xa0] sm:$0xf] }
 0x660   : > { %4193 = vmatpush.bf16.msrb.mxu0 %v5787_v41  ;;  %4207 = vmatpush.bf16.msrb.mxu1 %v6043_v0  ;;  %v6274_v41 = vld [vmem:[#allocation11 + $0xf0] sm:$0xf]  ;;  %v6701_v0 = vld [vmem:[#allocation11 + $0xf4] sm:$0xf0] }
 0x661   : > { %4221 = vmatpush.bf16.msrb.mxu2 %v5791_v54  ;;  %4235 = vmatpush.bf16.msrb.mxu3 %v6047_v12  ;;  %v6275_v13 = vor.u32 %v6701_v0, %v6274_v41  ;;  %v6681_v54 = vld [vmem:[#allocation11 + $0x54] sm:$0xf0] }
 0x662   : > { %v6195_v12 = vor.u32 %v6681_v54, %v6194_v38  ;;  %v6338_v38 = vld [vmem:[#allocation11 + $0x170] sm:$0xf]  ;;  %v6717_v54 = vld [vmem:[#allocation11 + $0x174] sm:$0xf0] }
 0x664   : > { %4194 = vmatpush.bf16.msrb.mxu0 %v5755_v46  ;;  %4208 = vmatpush.bf16.msrb.mxu1 %v6011_v17  ;;  %v6187_v17 = vor.u32 %v6679_v36, %v6186_v47  ;;  %v6330_v47 = vld [vmem:[#allocation11 + $0x160] sm:$0xf]  ;;  %v6715_v36 = vld [vmem:[#allocation11 + $0x164] sm:$0xf0] }
 0x665   : > { %4222 = vmatpush.bf16.msrb.mxu2 %v5759_v52  ;;  %4236 = vmatpush.bf16.msrb.mxu3 %v6015_v5  ;;  %v6259_v52 = vor.u32 %v6697_v19, %v6258_v61  ;;  %v6178_v5 = vld [vmem:[#allocation11 + $0x30] sm:$0xf] }
 0x666   : > { %v6179_v34 = vor.u32 %v6677_v44, %v6178_v5  ;;  %v6682_v5 = vld [vmem:[#allocation11 + $0x64] sm:$0xf] }
 0x668   : > { %4195 = vmatpush.bf16.msrb.mxu0 %v5723_v16  ;;  %4209 = vmatpush.bf16.msrb.mxu1 %v5979_v60  ;;  %v6250_v60 = vld [vmem:[#allocation11 + $0xc0] sm:$0xf] }
 0x669   : > { %4223 = vmatpush.bf16.msrb.mxu2 %v5727_v35  ;;  %4237 = vmatpush.bf16.msrb.mxu3 %v5983_v55  ;;  %v6251_v35 = vor.u32 %v6695_v59, %v6250_v60  ;;  %v6331_v59 = vor.u32 %v6715_v36, %v6330_v47 }
 0x66c   : > { %4196 = vmatpush.bf16.msrb.mxu0 %v5691_v18  ;;  %4210 = vmatpush.bf16.msrb.mxu1 %v5947_v11  ;;  %v6242_v18 = vld [vmem:[#allocation11 + $0xb0] sm:$0xf]  ;;  %v6693_v11 = vld [vmem:[#allocation11 + $0xb4] sm:$0xf0] }
 0x66d   : > { %4224 = vmatpush.bf16.msrb.mxu2 %v5695_v21  ;;  %4238 = vmatpush.bf16.msrb.mxu3 %v5951_v39  ;;  %v6243_v2 = vor.u32 %v6693_v11, %v6242_v18 }
 0x670   : > { %4197 = vmatpush.bf16.msrb.mxu0 %v5659_v6  ;;  %4211 = vmatpush.bf16.msrb.mxu1 %v5915_v53  ;;  %v6691_v6 = vld [vmem:[#allocation11 + $0xa4] sm:$0xf0] }
 0x671   : > { %4225 = vmatpush.bf16.msrb.mxu2 %v5663_v40  ;;  %4239 = vmatpush.bf16.msrb.mxu3 %v5919_v10  ;;  %v6235_v40 = vor.u32 %v6691_v6, %v6234_v24  ;;  %v6402_v24 = vld [vmem:[#allocation11 + $0x1f0] sm:$0xf]  ;;  %v6733_v6 = vld [vmem:[#allocation11 + $0x1f4] sm:$0xf0] }
 0x673   : > { %4198 = vmatmul.bf16.vlgmr.msrb.gmra.mxu0 %v8592_v49  ;;  %4212 = vmatmul.bf16.vlgmr.msrb.gmra.mxu1 %v8594_v45 }
 0x674   : > { %4226 = vmatmul.bf16.vlgmr.msrb.gmra.mxu2 %v8592_v49  ;;  %4240 = vmatmul.bf16.vlgmr.msrb.gmra.mxu3 %v8594_v45  ;;  %v6266_v49 = vld [vmem:[#allocation11 + $0xe0] sm:$0xf] }
 0x675   : > { %4802 = vmatpush.bf16.msra.mxu0 %v6211_v32  ;;  %4816 = vmatpush.bf16.msra.mxu1 %v6275_v13  ;;  %v6267_v51 = vor.u32 %v6699_v27, %v6266_v49  ;;  %v6671_v32 = vld [vmem:[#allocation11 + $0x4] sm:$0xf0] }
 0x679   : > { %4803 = vmatpush.bf16.msra.mxu0 %v6203_v37  ;;  %4817 = vmatpush.bf16.msra.mxu1 %v6267_v51  ;;  %v6155_v37 = vor.u32 %v6671_v32, %v6154_v31  ;;  %v6689_v51 = vld [vmem:[#allocation11 + $0x94] sm:$0xf0] }
 0x67d   : > { %4804 = vmatpush.bf16.msra.mxu0 %v6195_v12  ;;  %4818 = vmatpush.bf16.msra.mxu1 %v6259_v52  ;;  %v6684_v12 = vld [vmem:[#allocation11 + $0x74] sm:$0xf]  ;;  %v6339_v52 = vor.u32 %v6717_v54, %v6338_v38 }
 0x67f   : > { %4830 = vmatpush.bf16.msra.mxu2 %v6339_v52 }
 0x681   : > { %4805 = vmatpush.bf16.msra.mxu0 %v6187_v17  ;;  %4819 = vmatpush.bf16.msra.mxu1 %v6251_v35 }
 0x683   : > { %4831 = vmatpush.bf16.msra.mxu2 %v6331_v59  ;;  %v6276_v59 = vld [vmem:[#allocation11 + $0xf8] sm:$0xf0] }
 0x685   : > { %4806 = vmatpush.bf16.msra.mxu0 %v6179_v34  ;;  %4820 = vmatpush.bf16.msra.mxu1 %v6243_v2  ;;  %v6687_v34 = vld [vmem:[#allocation11 + $0x84] sm:$0xf0] }
 0x689   : > { %4807 = vmatpush.bf16.msra.mxu0 %v6171_v9  ;;  %4821 = vmatpush.bf16.msra.mxu1 %v6235_v40 }
 0x68d   : > { %4808 = vmatpush.bf16.msra.mxu0 %v6163_v62 }
 0x691   : > { %4809 = vmatpush.bf16.msra.mxu0 %v6155_v37 }
 0x6af   : > { %v4031_v26 = vpop.f32.mrf.mxu0  ;;  %v4045_v14 = vpop.f32.mrf.mxu1 }
 0x6b0   : > { %v8612_v45 = vadd.f32 %v4045_v14, %v4031_v26  ;;  %v6212_v26 = vld [vmem:[#allocation11 + $0x78] sm:$0xf0]  ;;  %v6226_v14 = vld [vmem:[#allocation11 + $0x90] sm:$0xf] }
 0x6b1   : > { %v6227_v60 = vor.u32 %v6689_v51, %v6226_v14 }
 0x6b2   : > { %v6144_v46 = vmul.f32 -1.442695, %v8612_v45 }
 0x6b3   : > { %4822 = vmatpush.bf16.msra.mxu1 %v6227_v60 }
 0x6b4   : > { %6950 = vpow2.f32 %v6144_v46 }
 0x6b6   : > { %v4059_v28 = vpop.f32.mrf.mxu2  ;;  %v4073_v15 = vpop.f32.mrf.mxu3 }
 0x6b7   : > { %v8615_v25 = vadd.f32 %v4073_v15, %v4059_v28  ;;  %v4033_v1 = vpop.f32.mrf.mxu0  ;;  %v4047_v16 = vpop.f32.mrf.mxu1  ;;  %v6204_v28 = vld [vmem:[#allocation11 + $0x68] sm:$0xf0]  ;;  %v6218_v15 = vld [vmem:[#allocation11 + $0x80] sm:$0xf] }
 0x6b8   : > { %v8617_v33 = vadd.f32 %v4047_v16, %v4033_v1  ;;  %v6215_v16 = vor.u32 %v6684_v12, %v6212_v26  ;;  %v6207_v9 = vor.u32 %v6682_v5, %v6204_v28  ;;  %v6219_v18 = vor.u32 %v6687_v34, %v6218_v15  ;;  %v6314_v28 = vld [vmem:[#allocation11 + $0x140] sm:$0xf] }
 0x6b9   : > { %v6145_v55 = vmul.f32 -1.442695, %v8615_v25  ;;  %v6403_v12 = vor.u32 %v6733_v6, %v6402_v24  ;;  %v6680_v6 = vld [vmem:[#allocation11 + $0x54] sm:$0xf] }
 0x6ba   : > { %v6951_v7 = vpop.eup %6950  ;;  %v6148_v22 = vmul.f32 -1.442695, %v8617_v33  ;;  %4858 = vmatpush.bf16.msrb.mxu0 %v6215_v16  ;;  %4823 = vmatpush.bf16.msra.mxu1 %v6219_v18 }
 0x6bb   : > { %v8621_v56 = vadd.f32 1.0, %v6951_v7  ;;  %6952 = vpow2.f32 %v6145_v55  ;;  %4844 = vmatpush.bf16.msra.mxu3 %v6403_v12  ;;  %v6268_v12 = vld [vmem:[#allocation11 + $0xe8] sm:$0xf0] }
 0x6bc   : > { %6954 = vpow2.f32 %v6148_v22 }
 0x6bd   : > { %6956 = vrcp.f32 %v8621_v56  ;;  %v4287_v23 = vand.u32 2147483647, %v8621_v56  ;;  %v4289_v40 = vand.u32 2147483648, %v8621_v56  ;;  %vm4283_vm3 = vweird.f32 %v8621_v56 }
 0x6be   : > { %v4061_v21 = vpop.f32.mrf.mxu2  ;;  %v4075_v39 = vpop.f32.mrf.mxu3  ;;  %4859 = vmatpush.bf16.msrb.mxu0 %v6207_v9 }
 0x6bf   : > { %v8624_v3 = vadd.f32 %v4075_v39, %v4061_v21  ;;  %v4087_v43 = vpop.f32.mrf.mxu0  ;;  %v4101_v48 = vpop.f32.mrf.mxu1  ;;  %vm8672_vm5 = vcmp.eq.f32.partialorder %v4287_v23, 8.507059e+37  ;;  %v4290_v47 = vor.u32 1.1754944e-38, %v4289_v40  ;;  %v6196_v40 = vld [vmem:[#allocation11 + $0x58] sm:$0xf0] }
 0x6c0   : > { %v8626_v53 = vadd.f32 %v4101_v48, %v4087_v43 }
 0x6c1   : > { %v6953_v10 = vpop.eup %6952  ;;  %v6149_v57 = vmul.f32 -1.442695, %v8624_v3 }
 0x6c2   : > { %v6955_v30 = vpop.eup %6954  ;;  %v8629_v20 = vadd.f32 1.0, %v6953_v10  ;;  %v6146_v13 = vmul.f32 -1.442695, %v8626_v53 }
 0x6c3   : > { %v8631_v41 = vadd.f32 1.0, %v6955_v30  ;;  %6958 = vpow2.f32 %v6149_v57  ;;  %v8633_v0 = vpop.eup %6956 }
 0x6c4   : > { %6960 = vrcp.f32 %v8629_v20  ;;  %v4279_v46 = vmul.f32 %v8633_v0, %v8621_v56  ;;  %v4304_v10 = vand.u32 2147483648, %v8629_v20  ;;  %vm4284_vm4 = vweird.f32 %v8633_v0 }
 0x6c5   : > { %6962 = vrcp.f32 %v8631_v41  ;;  %v4347_v31 = vand.u32 2147483647, %v8631_v41  ;;  %v4302_v14 = vand.u32 2147483647, %v8629_v20  ;;  %vm4298_vm6 = vweird.f32 %v8629_v20  ;;  %vm8698_vm11 = vmor %vm4283_vm3, %vm4284_vm4 }
 0x6c6   : > { %v4115_v49 = vpop.f32.mrf.mxu2  ;;  %v4129_v27 = vpop.f32.mrf.mxu3  ;;  %6964 = vpow2.f32 %v6146_v13  ;;  %v4280_v7 = vsub.f32 1.0, %v4279_v46  ;;  %v8685_v36 = vor.u32 1.1754944e-38, %v4304_v10  ;;  %v4349_v46 = vand.u32 2147483648, %v8631_v41  ;;  %v6394_v10 = vld [vmem:[#allocation11 + $0x1e0] sm:$0xf] }
 0x6c7   : > { %v8640_v17 = vadd.f32 %v4129_v27, %v4115_v49  ;;  %v4089_v61 = vpop.f32.mrf.mxu0  ;;  %v4103_v19 = vpop.f32.mrf.mxu1  ;;  %vm8690_vm10 = vcmp.eq.f32.partialorder %v4347_v31, 8.507059e+37  ;;  %vm8710_vm13 = vcmp.eq.f32.partialorder %v4302_v14, 8.507059e+37  ;;  %vm4343_vm14 = vweird.f32 %v8631_v41  ;;  %v6731_v31 = vld [vmem:[#allocation11 + $0x1e4] sm:$0xf0] }
 0x6c8   : > { %v8642_v44 = vadd.f32 %v4103_v19, %v4089_v61  ;;  %v4281_v48 = vmul.f32 %v8633_v0, %v4280_v7  ;;  %v6713_v7 = vld [vmem:[#allocation11 + $0x154] sm:$0xf0]  ;;  %v4350_v23 = vor.u32 1.1754944e-38, %v4349_v46 }
 0x6c9   : > { %v6959_v1 = vpop.eup %6958  ;;  %v6147_v8 = vmul.f32 -1.442695, %v8640_v17 }
 0x6ca   : > { %v8644_v35 = vpop.eup %6960  ;;  %v8646_v55 = vadd.f32 1.0, %v6959_v1  ;;  %v6150_v22 = vmul.f32 -1.442695, %v8642_v44  ;;  %v4282_v26 = vadd.f32 %v8633_v0, %v4281_v48  ;;  %v6700_v1 = vld [vmem:[#allocation11 + $0xf4] sm:$0xf] }
 0x6cb   : > { %v8649_v4 = vpop.eup %6962  ;;  %v4294_v2 = vmul.f32 %v8644_v35, %v8629_v20  ;;  %vm4299_vm8 = vweird.f32 %v8644_v35  ;;  %v6306_v20 = vld [vmem:[#allocation11 + $0x130] sm:$0xf] }
 0x6cc   : > { %v4339_v11 = vmul.f32 %v8649_v4, %v8631_v41  ;;  %6966 = vrcp.f32 %v8646_v55  ;;  %v6965_v43 = vpop.eup %6964  ;;  %vm4344_vm12 = vweird.f32 %v8649_v4  ;;  %v4286_v16 = vsel %vm8698_vm11, %v8633_v0, %v4282_v26  ;;  %vm8720_vm7 = vmor %vm4298_vm6, %vm4299_vm8 }
 0x6cd   : > { %6968 = vpow2.f32 %v6147_v8  ;;  %v4295_v57 = vsub.f32 1.0, %v4294_v2  ;;  %v8677_v54 = vadd.f32 1.0, %v6965_v43  ;;  %v6322_v8 = vld [vmem:[#allocation11 + $0x150] sm:$0xf]  ;;  %v4362_v0 = vand.u32 2147483647, %v8646_v55  ;;  %vm8734_vm9 = vmor %vm4343_vm14, %vm4344_vm12 }
 0x6ce   : > { %v4340_v21 = vsub.f32 1.0, %v4339_v11  ;;  %v4117_v39 = vpop.f32.mrf.mxu2  ;;  %v4131_v42 = vpop.f32.mrf.mxu3  ;;  %6970 = vpow2.f32 %v6150_v22  ;;  %v4364_v9 = vand.u32 2147483648, %v8646_v55  ;;  %v6323_v43 = vor.u32 %v6713_v7, %v6322_v8  ;;  %v6386_v8 = vld [vmem:[#allocation11 + $0x1d0] sm:$0xf]  ;;  %v6729_v7 = vld [vmem:[#allocation11 + $0x1d4] sm:$0xf0] }
 0x6cf   : > { %v8659_v62 = vadd.f32 %v4131_v42, %v4117_v39  ;;  %v4296_v19 = vmul.f32 %v8644_v35, %v4295_v57  ;;  %6972 = vrcp.f32 %v8677_v54  ;;  %v6279_v42 = vor.u32 %v6700_v1, %v6276_v59 }
 0x6d0   : > { %v8665_v32 = vpop.f32.mrf.mxu0  ;;  %v8667_v30 = vpop.f32.mrf.mxu1  ;;  %v4341_v38 = vmul.f32 %v8649_v4, %v4340_v21  ;;  %v4291_v57 = vsel %vm8672_vm5, %v4290_v47, %v4286_v16  ;;  %vm4358_vm0 = vweird.f32 %v8646_v55  ;;  %vm8754_vm2 = vcmp.eq.f32.partialorder %v4362_v0, 8.507059e+37  ;;  %4832 = vmatpush.bf16.msra.mxu2 %v6323_v43  ;;  %v6678_v16 = vld [vmem:[#allocation11 + $0x44] sm:$0xf] }
 0x6d1   : > { %v6151_v27 = vmul.f32 -1.442695, %v8659_v62  ;;  %v4297_v2 = vadd.f32 %v8644_v35, %v4296_v19  ;;  %4872 = vmatpush.bf16.msrb.mxu1 %v6279_v42  ;;  %v4398_v1 = vmul.f32 %v4291_v57, %v8612_v45  ;;  %v4317_v52 = vand.u32 2147483647, %v8677_v54  ;;  %v6696_v45 = vld [vmem:[#allocation11 + $0xd4] sm:$0xf] }
 0x6d2   : > { %v8669_v37 = vpop.eup %6966  ;;  %v4342_v15 = vadd.f32 %v8649_v4, %v4341_v38  ;;  %v6698_v38 = vld [vmem:[#allocation11 + $0xe4] sm:$0xf]  ;;  %v6387_v57 = vor.u32 %v6729_v7, %v6386_v8  ;;  %v6692_v7 = vld [vmem:[#allocation11 + $0xb4] sm:$0xf]  ;;  %vm4313_vm4 = vweird.f32 %v8677_v54 }
 0x6d3   : > { %v4354_v49 = vmul.f32 %v8669_v37, %v8646_v55  ;;  %v6969_v51 = vpop.eup %6968  ;;  %6974 = vpow2.f32 %v6151_v27  ;;  %vm4359_vm15 = vweird.f32 %v8669_v37  ;;  %v4158_v55 = vadd.f32 %v8667_v30, %v8665_v32 }
 0x6d4   : > { %v6971_v61 = vpop.eup %6970  ;;  %v8726_v18 = vadd.f32 1.0, %v6969_v51  ;;  %v4346_v39 = vsel %vm8734_vm9, %v8649_v4, %v4342_v15  ;;  %vm8750_vm1 = vmor %vm4358_vm0, %vm4359_vm15  ;;  %v4301_v27 = vsel %vm8720_vm7, %v8644_v35, %v4297_v2  ;;  %v6199_v32 = vor.u32 %v6680_v6, %v6196_v40  ;;  %v6711_v15 = vld [vmem:[#allocation11 + $0x144] sm:$0xf0]  ;;  %v6378_v6 = vld [vmem:[#allocation11 + $0x1c0] sm:$0xf] }
 0x6d5   : > { %v4355_v5 = vsub.f32 1.0, %v4354_v49  ;;  %v8705_v34 = vadd.f32 1.0, %v6971_v61  ;;  %v8746_v26 = vpop.eup %6972  ;;  %v4365_v49 = vor.u32 1.1754944e-38, %v4364_v9  ;;  %v4351_v51 = vsel %vm8690_vm10, %v4350_v23, %v4346_v39 }
 0x6d6   : > { %v6395_v30 = vor.u32 %v6731_v31, %v6394_v10  ;;  %v4309_v35 = vmul.f32 %v8746_v26, %v8677_v54  ;;  %v4402_v59 = vmul.f32 %v4351_v51, %v8617_v33  ;;  %4860 = vmatpush.bf16.msrb.mxu0 %v6199_v32  ;;  %v4406_v9 = vmul.f32 %v4398_v1, %v4158_v55  ;;  %v6709_v33 = vld [vmem:[#allocation11 + $0x134] sm:$0xf0]  ;;  %v6727_v31 = vld [vmem:[#allocation11 + $0x1c4] sm:$0xf0]  ;;  %v6674_v51 = vld [vmem:[#allocation11 + $0x24] sm:$0xf] }
 0x6d7   : > { %v4356_v56 = vmul.f32 %v8669_v37, %v4355_v5  ;;  %6976 = vrcp.f32 %v8705_v34  ;;  %v6271_v5 = vor.u32 %v6698_v38, %v6268_v12  ;;  %v6315_v42 = vor.u32 %v6711_v15, %v6314_v28  ;;  %v6694_v38 = vld [vmem:[#allocation11 + $0xc4] sm:$0xf]  ;;  %v6370_v28 = vld [vmem:[#allocation11 + $0x1b0] sm:$0xf]  ;;  %v6725_v15 = vld [vmem:[#allocation11 + $0x1b4] sm:$0xf0] }
 0x6d8   : > { %v4145_v48 = vpop.f32.mrf.mxu0  ;;  %v4159_v24 = vpop.f32.mrf.mxu1  ;;  %6978 = vrcp.f32 %v8726_v18  ;;  %4845 = vmatpush.bf16.msra.mxu3 %v6395_v30  ;;  %v4310_v10 = vsub.f32 1.0, %v4309_v35  ;;  %v4319_v35 = vand.u32 2147483648, %v8677_v54  ;;  %vm4314_vm3 = vweird.f32 %v8746_v26 }
 0x6d9   : > { %v8729_v41 = vpop.f32.mrf.mxu2  ;;  %v4185_v11 = vpop.f32.mrf.mxu3  ;;  %v4357_v21 = vadd.f32 %v8669_v37, %v4356_v56  ;;  %v4160_v46 = vadd.f32 %v4159_v24, %v4145_v48  ;;  %v6188_v56 = vld [vmem:[#allocation11 + $0x48] sm:$0xf0]  ;;  %4873 = vmatpush.bf16.msrb.mxu1 %v6271_v5  ;;  %v6676_v48 = vld [vmem:[#allocation11 + $0x34] sm:$0xf]  ;;  %v6180_v24 = vld [vmem:[#allocation11 + $0x38] sm:$0xf0]  ;;  %4833 = vmatpush.bf16.msra.mxu2 %v6315_v42  ;;  %v6379_v5 = vor.u32 %v6727_v31, %v6378_v6  ;;  %vm4373_vm10 = vweird.f32 %v8705_v34 }
 0x6da   : > { %v6975_v13 = vpop.eup %6974  ;;  %v6191_v43 = vor.u32 %v6678_v16, %v6188_v56  ;;  %v6183_v30 = vor.u32 %v6676_v48, %v6180_v24  ;;  %v4311_v1 = vmul.f32 %v8746_v26, %v4310_v10  ;;  %vm8814_vm5 = vcmp.eq.f32.partialorder %v4317_v52, 8.507059e+37  ;;  %v6690_v24 = vld [vmem:[#allocation11 + $0xa4] sm:$0xf]  ;;  %v6236_v6 = vld [vmem:[#allocation11 + $0xa8] sm:$0xf0]  ;;  %vm8820_vm6 = vmor %vm4313_vm4, %vm4314_vm3 }
 0x6db   : > { %v4361_v47 = vsel %vm8750_vm1, %v8669_v37, %v4357_v21  ;;  %v8771_v19 = vadd.f32 1.0, %v6975_v13  ;;  %v4306_v37 = vsel %vm8710_vm13, %v8685_v36, %v4301_v27  ;;  %v6260_v36 = vld [vmem:[#allocation11 + $0xd8] sm:$0xf0]  ;;  %v4186_v21 = vadd.f32 %v4185_v11, %v8729_v41  ;;  %v6252_v41 = vld [vmem:[#allocation11 + $0xc8] sm:$0xf0] }
 0x6dc   : > { %v4366_v22 = vsel %vm8754_vm2, %v4365_v49, %v4361_v47  ;;  %v4410_v39 = vmul.f32 %v4402_v59, %v4160_v46  ;;  %v4399_v40 = vmul.f32 %v4306_v37, %v8615_v25  ;;  %4861 = vmatpush.bf16.msrb.mxu0 %v6191_v43  ;;  %v6298_v11 = vld [vmem:[#allocation11 + $0x120] sm:$0xf]  ;;  %v6707_v49 = vld [vmem:[#allocation11 + $0x124] sm:$0xf0]  ;;  %4846 = vmatpush.bf16.msra.mxu3 %v6387_v57  ;;  %v6172_v47 = vld [vmem:[#allocation11 + $0x28] sm:$0xf0]  ;;  %vm4328_vm12 = vweird.f32 %v8726_v18 }
 0x6dd   : > { %v8769_v61 = vpop.eup %6976  ;;  %6980 = vrcp.f32 %v8771_v19  ;;  %v4403_v12 = vmul.f32 %v4366_v22, %v8624_v3  ;;  %v6263_v25 = vor.u32 %v6696_v45, %v6260_v36  ;;  %v6307_v27 = vor.u32 %v6709_v33, %v6306_v20  ;;  %v6244_v45 = vld [vmem:[#allocation11 + $0xb8] sm:$0xf0]  ;;  %v6290_v22 = vld [vmem:[#allocation11 + $0x110] sm:$0xf]  ;;  %v6362_v33 = vld [vmem:[#allocation11 + $0x1a0] sm:$0xf] }
 0x6de   : > { %v4369_v0 = vmul.f32 %v8769_v61, %v8705_v34  ;;  %v8786_v23 = vpop.eup %6978  ;;  %v8791_v4 = vpack.c.bf16 %v4410_v39, %v4406_v9  ;;  %v4407_v3 = vmul.f32 %v4399_v40, %v4186_v21  ;;  %v6255_v56 = vor.u32 %v6694_v38, %v6252_v41  ;;  %v6164_v36 = vld [vmem:[#allocation11 + $0x18] sm:$0xf0]  ;;  %v6723_v21 = vld [vmem:[#allocation11 + $0x1a4] sm:$0xf0]  ;;  %v6282_v31 = vld [vmem:[#allocation11 + $0x100] sm:$0xf] }
 0x6df   : > { %v8795_v55 = vmul.f32 %v8786_v23, %v8726_v18  ;;  %4874 = vmatpush.bf16.msrb.mxu1 %v6263_v25  ;;  %4834 = vmatpush.bf16.msra.mxu2 %v6307_v27  ;;  %v6299_v59 = vor.u32 %v6707_v49, %v6298_v11  ;;  %v6175_v8 = vor.u32 %v6674_v51, %v6172_v47  ;;  %v4320_v43 = vor.u32 1.1754944e-38, %v4319_v35  ;;  %v6703_v38 = vld [vmem:[#allocation11 + $0x104] sm:$0xf0]  ;;  %v6670_v41 = vld [vmem:[#allocation11 + $0x4] sm:$0xf] }
 0x6e0   : > { %v4370_v13 = vsub.f32 1.0, %v4369_v0  ;;  %4810 = vmatmul.bf16.vlgmr.msra.gmra.mxu0 %v8791_v4  ;;  %4847 = vmatpush.bf16.msra.mxu3 %v6379_v5  ;;  %v6371_v9 = vor.u32 %v6725_v15, %v6370_v28  ;;  %v4312_v39 = vadd.f32 %v8746_v26, %v4311_v1  ;;  %v6247_v48 = vor.u32 %v6692_v7, %v6244_v45  ;;  %v6156_v11 = vld [vmem:[#allocation11 + $0x8] sm:$0xf0]  ;;  %v6716_v49 = vld [vmem:[#allocation11 + $0x174] sm:$0xf] }
 0x6e1   : > { %v4173_v2 = vpop.f32.mrf.mxu2  ;;  %v4187_v60 = vpop.f32.mrf.mxu3  ;;  %4862 = vmatpush.bf16.msrb.mxu0 %v6183_v30  ;;  %v4325_v20 = vsub.f32 1.0, %v8795_v55  ;;  %v4379_v10 = vand.u32 2147483648, %v8705_v34  ;;  %vm4374_vm8 = vweird.f32 %v8769_v61  ;;  %v6340_v27 = vld [vmem:[#allocation11 + $0x178] sm:$0xf0]  ;;  %v6354_v51 = vld [vmem:[#allocation11 + $0x190] sm:$0xf]  ;;  %v6239_v30 = vor.u32 %v6690_v24, %v6236_v6 }
 0x6e2   : > { %v4188_v14 = vadd.f32 %v4187_v60, %v4173_v2  ;;  %v4371_v0 = vmul.f32 %v8769_v61, %v4370_v13  ;;  %v6705_v2 = vld [vmem:[#allocation11 + $0x114] sm:$0xf0]  ;;  %v6672_v60 = vld [vmem:[#allocation11 + $0x14] sm:$0xf]  ;;  %v4332_v5 = vand.u32 2147483647, %v8726_v18  ;;  %vm8836_vm11 = vmor %vm4373_vm10, %vm4374_vm8  ;;  %v6283_v1 = vor.u32 %v6703_v38, %v6282_v31 }
 0x6e3   : > { %v8797_v46 = vpop.eup %6980  ;;  %4875 = vmatpush.bf16.msrb.mxu1 %v6255_v56  ;;  %4835 = vmatpush.bf16.msra.mxu2 %v6299_v59  ;;  %v6291_v54 = vor.u32 %v6705_v2, %v6290_v22  ;;  %v6167_v52 = vor.u32 %v6672_v60, %v6164_v36  ;;  %v4326_v55 = vmul.f32 %v8786_v23, %v4325_v20  ;;  %v6721_v47 = vld [vmem:[#allocation11 + $0x194] sm:$0xf0]  ;;  %v6688_v35 = vld [vmem:[#allocation11 + $0x94] sm:$0xf]  ;;  %v4380_v56 = vor.u32 1.1754944e-38, %v4379_v10 }
 0x6e4   : > { %v4411_v32 = vmul.f32 %v4403_v12, %v4188_v14  ;;  %v4384_v16 = vmul.f32 %v8797_v46, %v8771_v19  ;;  %v4372_v12 = vadd.f32 %v8769_v61, %v4371_v0  ;;  %4848 = vmatpush.bf16.msra.mxu3 %v6371_v9  ;;  %v6363_v14 = vor.u32 %v6723_v21, %v6362_v33  ;;  %v6714_v7 = vld [vmem:[#allocation11 + $0x164] sm:$0xf]  ;;  %v6332_v22 = vld [vmem:[#allocation11 + $0x168] sm:$0xf0]  ;;  %v6346_v0 = vld [vmem:[#allocation11 + $0x180] sm:$0xf] }
 0x6e5   : > { %4863 = vmatpush.bf16.msrb.mxu0 %v6175_v8  ;;  %v6343_v59 = vor.u32 %v6716_v49, %v6340_v27  ;;  %v6355_v8 = vor.u32 %v6721_v47, %v6354_v51  ;;  %v4327_v45 = vadd.f32 %v8786_v23, %v4326_v55  ;;  %vm4329_vm13 = vweird.f32 %v8786_v23  ;;  %v6719_v9 = vld [vmem:[#allocation11 + $0x184] sm:$0xf0]  ;;  %v6732_v36 = vld [vmem:[#allocation11 + $0x1f4] sm:$0xf]  ;;  %v6404_v20 = vld [vmem:[#allocation11 + $0x1f8] sm:$0xf0] }
 0x6e6   : > { %v8804_v37 = vpack.c.bf16 %v4411_v32, %v4407_v3  ;;  %v4385_v57 = vsub.f32 1.0, %v4384_v16  ;;  %v4316_v3 = vsel %vm8820_vm6, %v8746_v26, %v4312_v39  ;;  %v4377_v32 = vand.u32 2147483647, %v8705_v34  ;;  %v6228_v16 = vld [vmem:[#allocation11 + $0x98] sm:$0xf0]  ;;  %vm8857_vm15 = vmor %vm4328_vm12, %vm4329_vm13 }
 0x6e7   : > { %4876 = vmatpush.bf16.msrb.mxu1 %v6247_v48  ;;  %4836 = vmatpush.bf16.msra.mxu2 %v6291_v54  ;;  %v6159_v26 = vor.u32 %v6670_v41, %v6156_v11  ;;  %v4376_v34 = vsel %vm8836_vm11, %v8769_v61, %v4372_v12  ;;  %v4321_v2 = vsel %vm8814_vm5, %v4320_v43, %v4316_v3  ;;  %v4334_v60 = vand.u32 2147483648, %v8726_v18  ;;  %v6686_v39 = vld [vmem:[#allocation11 + $0x84] sm:$0xf]  ;;  %v6220_v48 = vld [vmem:[#allocation11 + $0x88] sm:$0xf0] }
 0x6e8   : > { %4824 = vmatmul.bf16.vlgmr.msra.gmra.mxu1 %v8804_v37  ;;  %v4386_v15 = vmul.f32 %v8797_v46, %v4385_v57  ;;  %4849 = vmatpush.bf16.msra.mxu3 %v6363_v14  ;;  %vm4378_vm14 = vcmp.eq.f32.partialorder %v4377_v32, 8.507059e+37  ;;  %v6231_v61 = vor.u32 %v6688_v35, %v6228_v16  ;;  %vm4388_vm7 = vweird.f32 %v8771_v19  ;;  %v6712_v14 = vld [vmem:[#allocation11 + $0x154] sm:$0xf]  ;;  %v6324_v41 = vld [vmem:[#allocation11 + $0x158] sm:$0xf0] }
 0x6e9   : > { %4864 = vmatpush.bf16.msrb.mxu0 %v6167_v52  ;;  %v4381_v33 = vsel %vm4378_vm14, %v4380_v56, %v4376_v34  ;;  %vm4389_vm9 = vweird.f32 %v8797_v46  ;;  %v4394_v43 = vand.u32 2147483648, %v8771_v19  ;;  %v6335_v6 = vor.u32 %v6714_v7, %v6332_v22  ;;  %v6730_v55 = vld [vmem:[#allocation11 + $0x1e4] sm:$0xf]  ;;  %v6708_v7 = vld [vmem:[#allocation11 + $0x134] sm:$0xf] }
 0x6ea   : > { %v4387_v21 = vadd.f32 %v8797_v46, %v4386_v15  ;;  %v6347_v40 = vor.u32 %v6719_v9, %v6346_v0  ;;  %v4400_v54 = vmul.f32 %v4321_v2, %v8626_v53  ;;  %v4331_v52 = vsel %vm8857_vm15, %v8786_v23, %v4327_v45  ;;  %vm8872_vm0 = vmor %vm4388_vm7, %vm4389_vm9  ;;  %v6710_v32 = vld [vmem:[#allocation11 + $0x144] sm:$0xf]  ;;  %v6728_v15 = vld [vmem:[#allocation11 + $0x1d4] sm:$0xf] }
 0x6eb   : > { %4877 = vmatpush.bf16.msrb.mxu1 %v6239_v30  ;;  %4837 = vmatpush.bf16.msra.mxu2 %v6283_v1  ;;  %v4392_v18 = vand.u32 2147483647, %v8771_v19  ;;  %v6407_v31 = vor.u32 %v6732_v36, %v6404_v20  ;;  %v4404_v11 = vmul.f32 %v4381_v33, %v8642_v44  ;;  %v6223_v53 = vor.u32 %v6686_v39, %v6220_v48  ;;  %v6316_v30 = vld [vmem:[#allocation11 + $0x148] sm:$0xf0]  ;;  %v6388_v1 = vld [vmem:[#allocation11 + $0x1d8] sm:$0xf0] }
 0x6ec   : > { %4850 = vmatpush.bf16.msra.mxu3 %v6355_v8  ;;  %vm4333_vm1 = vcmp.eq.f32.partialorder %v4332_v5, 8.507059e+37  ;;  %v4391_v44 = vsel %vm8872_vm0, %v8797_v46, %v4387_v21  ;;  %v4395_v27 = vor.u32 1.1754944e-38, %v4394_v43  ;;  %v6327_v47 = vor.u32 %v6712_v14, %v6324_v41  ;;  %v6308_v45 = vld [vmem:[#allocation11 + $0x138] sm:$0xf0]  ;;  %v6726_v22 = vld [vmem:[#allocation11 + $0x1c4] sm:$0xf] }
 0x6ed   : > { %4865 = vmatpush.bf16.msrb.mxu0 %v6159_v26  ;;  %vm4393_vm2 = vcmp.eq.f32.partialorder %v4392_v18, 8.507059e+37  ;;  %v6319_v35 = vor.u32 %v6710_v32, %v6316_v30  ;;  %v6391_v8 = vor.u32 %v6728_v15, %v6388_v1  ;;  %v6380_v0 = vld [vmem:[#allocation11 + $0x1c8] sm:$0xf0]  ;;  %v6706_v36 = vld [vmem:[#allocation11 + $0x124] sm:$0xf] }
 0x6ee   : > { %v4396_v28 = vsel %vm4393_vm2, %v4395_v27, %v4391_v44  ;;  %v6300_v20 = vld [vmem:[#allocation11 + $0x128] sm:$0xf0]  ;;  %v6372_v33 = vld [vmem:[#allocation11 + $0x1b8] sm:$0xf0]  ;;  %v6704_v39 = vld [vmem:[#allocation11 + $0x114] sm:$0xf] }
 0x6ef   : > { %4886 = vmatpush.bf16.msrb.mxu2 %v6343_v59  ;;  %4878 = vmatpush.bf16.msrb.mxu1 %v6231_v61  ;;  %v4405_v56 = vmul.f32 %v4396_v28, %v8659_v62  ;;  %v6383_v61 = vor.u32 %v6726_v22, %v6380_v0  ;;  %v6724_v62 = vld [vmem:[#allocation11 + $0x1b4] sm:$0xf]  ;;  %v6292_v48 = vld [vmem:[#allocation11 + $0x118] sm:$0xf0]  ;;  %v6722_v42 = vld [vmem:[#allocation11 + $0x1a4] sm:$0xf] }
 0x6f0   : > { %v4199_v13 = vpop.f32.mrf.mxu0  ;;  %v4213_v25 = vpop.f32.mrf.mxu1  ;;  %4866 = vmatmul.bf16.vlgmr.msrb.gmra.mxu0 %v8791_v4  ;;  %4851 = vmatpush.bf16.msra.mxu3 %v6347_v40  ;;  %v6375_v21 = vor.u32 %v6724_v62, %v6372_v33  ;;  %v6364_v43 = vld [vmem:[#allocation11 + $0x1a8] sm:$0xf0]  ;;  %v6702_v40 = vld [vmem:[#allocation11 + $0x104] sm:$0xf] }
 0x6f1   : > { %v4214_v24 = vadd.f32 %v4213_v25, %v4199_v13  ;;  %v6396_v13 = vld [vmem:[#allocation11 + $0x1e8] sm:$0xf0]  ;;  %v4335_v25 = vor.u32 1.1754944e-38, %v4334_v60 }
 0x6f2   : > { %v6399_v4 = vor.u32 %v6730_v55, %v6396_v13 }
 0x6f3   : > { %v4408_v51 = vmul.f32 %v4400_v54, %v4214_v24  ;;  %4887 = vmatpush.bf16.msrb.mxu2 %v6335_v6  ;;  %v4336_v3 = vsel %vm4333_vm1, %v4335_v25, %v4331_v52  ;;  %4879 = vmatpush.bf16.msrb.mxu1 %v6223_v53  ;;  %v6295_v24 = vor.u32 %v6704_v39, %v6292_v48  ;;  %v6356_v54 = vld [vmem:[#allocation11 + $0x198] sm:$0xf0] }
 0x6f4   : > { %4900 = vmatpush.bf16.msrb.mxu3 %v6407_v31  ;;  %v4401_v46 = vmul.f32 %v4336_v3, %v8640_v17  ;;  %v6311_v17 = vor.u32 %v6708_v7, %v6308_v45  ;;  %v6367_v6 = vor.u32 %v6722_v42, %v6364_v43  ;;  %v6718_v31 = vld [vmem:[#allocation11 + $0x184] sm:$0xf] }
 0x6f7   : > { %v4227_v10 = vpop.f32.mrf.mxu2  ;;  %v4241_v57 = vpop.f32.mrf.mxu3  ;;  %4888 = vmatpush.bf16.msrb.mxu2 %v6327_v47 }
 0x6f8   : > { %v4201_v38 = vpop.f32.mrf.mxu0  ;;  %v4215_v12 = vpop.f32.mrf.mxu1  ;;  %v4242_v26 = vadd.f32 %v4241_v57, %v4227_v10  ;;  %4880 = vmatmul.bf16.vlgmr.msrb.gmra.mxu1 %v8804_v37  ;;  %4901 = vmatpush.bf16.msrb.mxu3 %v6399_v4  ;;  %v6303_v37 = vor.u32 %v6706_v36, %v6300_v20  ;;  %v6284_v10 = vld [vmem:[#allocation11 + $0x108] sm:$0xf0]  ;;  %v6720_v57 = vld [vmem:[#allocation11 + $0x194] sm:$0xf] }
 0x6f9   : > { %v4216_v23 = vadd.f32 %v4215_v12, %v4201_v38  ;;  %v6287_v52 = vor.u32 %v6702_v40, %v6284_v10  ;;  %v6359_v18 = vor.u32 %v6720_v57, %v6356_v54  ;;  %v6348_v38 = vld [vmem:[#allocation11 + $0x188] sm:$0xf0] }
 0x6fa   : > { %v4409_v9 = vmul.f32 %v4401_v46, %v4242_v26  ;;  %v6351_v12 = vor.u32 %v6718_v31, %v6348_v38 }
 0x6fb   : > { %v4412_v19 = vmul.f32 %v4404_v11, %v4216_v23  ;;  %4889 = vmatpush.bf16.msrb.mxu2 %v6319_v35 }
 0x6fc   : > { %4902 = vmatpush.bf16.msrb.mxu3 %v6391_v8 }
 0x6fd   : > { %v4416_v5 = vpack.c.bf16 %v4412_v19, %v4408_v51 }
 0x6ff   : > { %v4229_v16 = vpop.f32.mrf.mxu2  ;;  %v4243_v34 = vpop.f32.mrf.mxu3  ;;  %4838 = vmatmul.bf16.vlgmr.msra.gmra.mxu2 %v4416_v5 }
 0x700   : > { %v4244_v59 = vadd.f32 %v4243_v34, %v4229_v16  ;;  %4890 = vmatpush.bf16.msrb.mxu2 %v6311_v17  ;;  %4903 = vmatpush.bf16.msrb.mxu3 %v6383_v61 }
 0x702   : > { %v4413_v2 = vmul.f32 %v4405_v56, %v4244_v59 }
 0x704   : > { %v4417_v60 = vpack.c.bf16 %v4413_v2, %v4409_v9  ;;  %4891 = vmatpush.bf16.msrb.mxu2 %v6303_v37  ;;  %4904 = vmatpush.bf16.msrb.mxu3 %v6375_v21 }
 0x706   : > { %4852 = vmatmul.bf16.vlgmr.msra.gmra.mxu3 %v4417_v60 }
 0x708   : > { %4892 = vmatpush.bf16.msrb.mxu2 %v6295_v24  ;;  %4905 = vmatpush.bf16.msrb.mxu3 %v6367_v6 }
 0x70c   : > { %4893 = vmatpush.bf16.msrb.mxu2 %v6287_v52  ;;  %4906 = vmatpush.bf16.msrb.mxu3 %v6359_v18 }
 0x70f   : > { %4894 = vmatmul.bf16.vlgmr.msrb.gmra.mxu2 %v4416_v5 }
 0x710   : > { %4907 = vmatpush.bf16.msrb.mxu3 %v6351_v12 }
 0x716   : > { %4908 = vmatmul.bf16.vlgmr.msrb.gmra.mxu3 %v4417_v60 }
 0x75d   : > { %v4811_v41 = vpop.f32.mrf.mxu0 }
 0x765   : > { %v4825_v14 = vpop.f32.mrf.mxu1  ;;  %v4813_v44 = vpop.f32.mrf.mxu0 }
 0x766   : > { %v4826_v49 = vadd.f32 %v4825_v14, %v4811_v41 }
 0x76d   : > { %v4827_v13 = vpop.f32.mrf.mxu1 }
 0x76e   : > { %v4828_v51 = vadd.f32 %v4827_v13, %v4813_v44 }
 0x775   : > { %v4881_v32 = vpop.f32.mrf.mxu1 }
 0x77d   : > { %v4883_v26 = vpop.f32.mrf.mxu1 }
 0x782   : > { %v4839_v11 = vpop.f32.mrf.mxu2 }
 0x783   : > { %v4840_v53 = vadd.f32 %v4839_v11, %v4826_v49 }
 0x789   : > { %v4853_v23 = vpop.f32.mrf.mxu3 }
 0x78a   : > { %v4854_v55 = vadd.f32 %v4853_v23, %v4840_v53  ;;  %v4841_v27 = vpop.f32.mrf.mxu2 }
 0x78b   : > { %v4842_v19 = vadd.f32 %v4841_v27, %v4828_v51 }
 0x78c   : > { %v4914_v25 = vadd.f32 %v4854_v55, %v8547_v58  ;;  %v4867_v58 = vpop.f32.mrf.mxu0 }
 0x78d   : > { %v4882_v28 = vadd.f32 %v4881_v32, %v4867_v58 }
 0x78e   : > { %4918 = vst [vmem:[%s8886_s25] sm:$0xff] %v4914_v25 }
 0x791   : > { %v4855_v47 = vpop.f32.mrf.mxu3 }
 0x792   : > { %v4856_v3 = vadd.f32 %v4855_v47, %v4842_v19  ;;  %v4895_v30 = vpop.f32.mrf.mxu2 }
 0x793   : > { %v4896_v5 = vadd.f32 %v4895_v30, %v4882_v28 }
 0x794   : > { %v4916_v4 = vadd.f32 %v4856_v3, %v8557_v50  ;;  %v4869_v35 = vpop.f32.mrf.mxu0 }
 0x795   : > { %v4884_v34 = vadd.f32 %v4883_v26, %v4869_v35 }
 0x796   : > { %4920 = vst [vmem:[%s8886_s25 + $0x10] sm:$0xff] %v4916_v4 }
 0x799   : > { %v4909_v15 = vpop.f32.mrf.mxu3 }
 0x79a   : > { %v4910_v1 = vadd.f32 %v4909_v15, %v4896_v5  ;;  %v4897_v16 = vpop.f32.mrf.mxu2 }
 0x79b   : > { %v4898_v50 = vadd.f32 %v4897_v16, %v4884_v34 }
 0x79c   : > { %v4915_v46 = vadd.f32 %v4910_v1, %v8550_v63 }
 0x79e   : > { %4919 = vst [vmem:[%s8886_s25 + $0x8] sm:$0xff] %v4915_v46 }
 0x7a1   : > { %v4911_v56 = vpop.f32.mrf.mxu3 }
 0x7a2   : > { %v4912_v59 = vadd.f32 %v4911_v56, %v4898_v50 }
 0x7a4   : > { %v4917_v8 = vadd.f32 %v4912_v59, %v8560_v29 }
 0x7a6   : > { %4921 = vst [vmem:[%s8886_s25 + $0x18] sm:$0xff] %v4917_v8 }
 0x7a7   : > { %7283 = shalt.err (!%p7280_p9)
}
 0x7a8   : > { %s7364_s12 = smov 256   ;;  %s7365_s1 = smov 16  }
 0x7a9   : > { %6777 = dma.vmem_to_hbm [thread:$0]  (%p7537_p5), %s4936_s11, 512, %s4938_s29, %s4923_s20, %s7364_s12, %s7364_s12, %s7365_s1  }
 0x7aa PF: > { %s4952_s25 = sand.u32 1, %s7326_s13   ;;  %p9011_p10 = scmp.ge.s32.totalorder %s7338_s16, 2 }
 0x7ab   : > { %s4953_s26 = scalar_lea.sflag [#allocation4], %s4952_s25 }
 0x7ac   : > { %p6809_p13 = pnand %p9011_p10, %p7541_p6 }
 0x7ae   : > { %p6810_p11 = pneg %p6809_p13 }
 0x7b0   : > { %7321 = dma.done.wait (%p6810_p11), %s4953_s26, 512  }
 0x7b1   : > { %7323 = vsyncadd (%p6810_p11), %s4953_s26, 4294966784  ;;  %p27_p0 = scmp.ge.s32.totalorder %s7511_s28, 4   ;;  %s9012_s13 = smov %s7330_s14 }
 0x7b2   : > { %s9013_s14 = smov %s7334_s15  ;;  %s9014_s15 = smov %s7522_s22 }
 0x7b3   : > { %s9015_s16 = smov %s7511_s28  ;;  %29 = sbr.rel (!%p27_p0) target bundleno = 15 (0xf), region = 137 }
 0x7b8   :  { %4959 = vsyncpa [#allocation3], 1 }
 0x7b9   :  { %4961 = vsyncpa [#allocation3 + $0x1], 1 }
 0x7ba   :  { %4962 = vsyncpa [#allocation6], 1 }
 0x7bb   :  { %4963 = vsyncpa [#allocation9], 1 }
 0x7bc   :  { %4964 = vsyncpa [#allocation12], 1 }
 0x7bd   :  { %4965 = vsyncpa [#allocation15], 1 }
 0x7be   :  { %4966 = vsyncpa [#allocation4], 1 }
 0x7bf   :  { %4968 = vsyncpa [#allocation4 + $0x1], 1 }

</bundles_post_ra>
